<compile_context>
chip_gen: v6e
topology: v6e:2x2x1
jax: 0.10.0
libtpu: 0.0.40
codegen_flags: <defaults>
</compile_context>

<pallas_src>
import functools

import jax
import jax.numpy as jnp
from jax.experimental import pallas as pl
from jax.experimental.pallas import tpu as pltpu

EPS = 1e-5
LANE = 128


def _rup(x, m):
    return (x + m - 1) // m * m


def _hw_config():
    """Generation-aware row-tile target and scoped-VMEM limit."""
    cap = 64 * 1024 * 1024
    try:
        info = pltpu.get_tpu_info()
        cap = int(getattr(info, "vmem_capacity_bytes", cap))
    except Exception:
        pass
    if cap >= 100 * 1024 * 1024:          # v5e / v6e class: 128 MiB VMEM per core
        return 1024, 100 * 1024 * 1024
    return 512, 48 * 1024 * 1024          # v7x class: 64 MiB VMEM per core


_ROW_TILE_TARGET, _VMEM_LIMIT = _hw_config()


def _pick_tile(m, target=_ROW_TILE_TARGET):
    """Largest multiple-of-8 divisor of m that is <= target, so no row padding (and hence no
    per-tile masking work) is needed; falls back to a padded tile when none exists."""
    hi = min(target, m)
    hi -= hi % 8
    for cand in range(hi, 7, -8):
        if m % cand == 0:
            return cand
    return min(_rup(m, 8), _rup(target, 8))


def _cparams():
    return pltpu.CompilerParams(
        dimension_semantics=("parallel",),
        vmem_limit_bytes=_VMEM_LIMIT)


# ----------------------------- Pallas kernels ------------------------------

def matmul_stats_kernel(x_ref, w_ref, y_ref, p_ref):
    """y = x @ w (bf16 MXU, f32 accumulation) + per-tile (sum, sum_sq) BN partials.
    Callers zero-pad rows past the true M, so padded rows contribute nothing."""
    y = jnp.dot(x_ref[...], w_ref[...], preferred_element_type=jnp.float32)
    y_ref[...] = y
    p_ref[0] = jnp.concatenate(
        [jnp.sum(y, axis=0, keepdims=True), jnp.sum(y * y, axis=0, keepdims=True)], axis=0)


def conv2_fused_s1_kernel(y1_ref, s_ref, b_ref, w_ref, y2_ref, p2_ref, pad_ref, *, h, w):
    """Fused: a = relu(bn1(y1)) written into a VMEM scratch with a zero halo, then the 3x3
    stride-1 conv as 9 accumulating shifted matmuls, plus BN2 partial stats.  Only the halo
    border strips are zeroed (cheap, and keeps grid steps independent)."""
    c = pad_ref.shape[-1]
    cout = w_ref.shape[-1]
    pad_ref[0:1, :, :] = jnp.zeros((1, w + 2, c), jnp.float32)
    pad_ref[h + 1:h + 2, :, :] = jnp.zeros((1, w + 2, c), jnp.float32)
    pad_ref[:, 0:1, :] = jnp.zeros((h + 2, 1, c), jnp.float32)
    pad_ref[:, w + 1:w + 2, :] = jnp.zeros((h + 2, 1, c), jnp.float32)
    a = jnp.maximum(y1_ref[0] * s_ref[...] + b_ref[...], 0.0)
    pad_ref[1:h + 1, 1:w + 1, :] = a
    acc = jnp.zeros((h * w, cout), jnp.float32)
    for t, (dy, dx) in enumerate([(dy, dx) for dy in range(3) for dx in range(3)]):
        win = pad_ref[dy:dy + h, dx:dx + w, :]
        acc = acc + jnp.dot(win.reshape(h * w, c).astype(jnp.bfloat16), w_ref[t],
                            preferred_element_type=jnp.float32)
    y2_ref[...] = acc.reshape(1, h, w, cout)
    p2_ref[0] = jnp.concatenate(
        [jnp.sum(acc, axis=0, keepdims=True), jnp.sum(acc * acc, axis=0, keepdims=True)], axis=0)


def conv2_fused_s2_kernel(y1_ref, s_ref, b_ref, w_ref, y2_ref, p2_ref, pad_ref, *, ho, wo):
    """Fused stride-2 path.  The input block is (1, Ho, 2, Wo, 2C): column pairs are packed in
    the lane dim (free reshape outside), row parity is its own axis.  BN1+ReLU is applied per
    row-parity phase and written into a phase-split padded scratch; every tap then becomes a
    contiguous ref window read (no strided sublane access), and taps dx=1,2 share one K=2C
    matmul with stacked weights."""
    c2 = y1_ref.shape[-1]
    c = c2 // 2
    cout = w_ref.shape[-1]
    # Zero only the halo strips that are actually read: row-phase 0 index 0, column-pair 0.
    pad_ref[0, 0:1, :, :] = jnp.zeros((1, wo + 1, c2), jnp.float32)
    pad_ref[:, :, 0:1, :] = jnp.zeros((2, ho + 1, 1, c2), jnp.float32)
    # BN1-apply + ReLU per row parity (a rows 0,2,.. / 1,3,..) -> padded rows 1,3,.. / 2,4,..
    a_even = jnp.maximum(y1_ref[0, :, 0, :, :] * s_ref[...] + b_ref[...], 0.0)
    a_odd = jnp.maximum(y1_ref[0, :, 1, :, :] * s_ref[...] + b_ref[...], 0.0)
    pad_ref[1, 0:ho, 1:wo + 1, :] = a_even
    pad_ref[0, 1:ho + 1, 1:wo + 1, :] = a_odd
    acc = jnp.zeros((ho * wo, cout), jnp.float32)
    # taps: dy -> (row-phase, row offset); columns: pair q>=1 holds padded x = 2q-1, 2q.
    for dy, (ph, r0) in enumerate(((0, 0), (1, 0), (0, 1))):
        right = pad_ref[ph, r0:r0 + ho, 1:wo + 1, :]      # taps dx=1 (low half) & dx=2 (high)
        left = pad_ref[ph, r0:r0 + ho, 0:wo, c:c2]        # tap dx=0
        acc = acc + jnp.dot(right.reshape(ho * wo, c2).astype(jnp.bfloat16),
                            w_ref[dy, c:3 * c, :], preferred_element_type=jnp.float32)
        acc = acc + jnp.dot(left.reshape(ho * wo, c).astype(jnp.bfloat16),
                            w_ref[dy, 0:c, :], preferred_element_type=jnp.float32)
    y2_ref[...] = acc.reshape(1, ho, wo, cout)
    p2_ref[0] = jnp.concatenate(
        [jnp.sum(acc, axis=0, keepdims=True), jnp.sum(acc * acc, axis=0, keepdims=True)], axis=0)


def stage3_proj_kernel(y2_ref, s_ref, b_ref, w3_ref, xs_ref, wsc_ref,
                       y3_ref, ysc_ref, p3_ref, psc_ref, *, mask_rows, tile_m, m_valid):
    """Fused: a = relu(bn2(y2)); y3 = a @ w3; ysc = xs @ wsc (projection shortcut), plus BN3
    and BN_sc partial stats.  Row masking is only traced in when tiles do not divide M2."""
    a = jnp.maximum(y2_ref[...] * s_ref[...] + b_ref[...], 0.0)
    if mask_rows:
        row = pl.program_id(0) * tile_m + jax.lax.broadcasted_iota(jnp.int32, a.shape, 0)
        a = jnp.where(row < m_valid, a, 0.0)
    y3 = jnp.dot(a.astype(jnp.bfloat16), w3_ref[...], preferred_element_type=jnp.float32)
    ysc = jnp.dot(xs_ref[...], wsc_ref[...], preferred_element_type=jnp.float32)
    y3_ref[...] = y3
    ysc_ref[...] = ysc
    p3_ref[0] = jnp.concatenate(
        [jnp.sum(y3, axis=0, keepdims=True), jnp.sum(y3 * y3, axis=0, keepdims=True)], axis=0)
    psc_ref[0] = jnp.concatenate(
        [jnp.sum(ysc, axis=0, keepdims=True), jnp.sum(ysc * ysc, axis=0, keepdims=True)], axis=0)


def stage3_id_kernel(y2_ref, s_ref, b_ref, w3_ref, y3_ref, p3_ref,
                     *, mask_rows, tile_m, m_valid):
    a = jnp.maximum(y2_ref[...] * s_ref[...] + b_ref[...], 0.0)
    if mask_rows:
        row = pl.program_id(0) * tile_m + jax.lax.broadcasted_iota(jnp.int32, a.shape, 0)
        a = jnp.where(row < m_valid, a, 0.0)
    y3 = jnp.dot(a.astype(jnp.bfloat16), w3_ref[...], preferred_element_type=jnp.float32)
    y3_ref[...] = y3
    p3_ref[0] = jnp.concatenate(
        [jnp.sum(y3, axis=0, keepdims=True), jnp.sum(y3 * y3, axis=0, keepdims=True)], axis=0)


def final_proj_kernel(y3_ref, sc_ref, s3_ref, b3_ref, ssc_ref, bsc_ref, o_ref):
    main = jnp.maximum(y3_ref[...] * s3_ref[...] + b3_ref[...], 0.0)
    sc = sc_ref[...] * ssc_ref[...] + bsc_ref[...]
    o_ref[...] = jnp.maximum(main + sc, 0.0)


def final_id_kernel(y3_ref, x_ref, s3_ref, b3_ref, o_ref):
    main = jnp.maximum(y3_ref[...] * s3_ref[...] + b3_ref[...], 0.0)
    o_ref[...] = jnp.maximum(main + x_ref[...], 0.0)


# --------------------------- pallas_call wrappers ---------------------------

def matmul_stats(x2d, w, tile_m):
    mp, k = x2d.shape
    c = w.shape[1]
    grid = mp // tile_m
    return pl.pallas_call(
        matmul_stats_kernel,
        grid=(grid,),
        in_specs=[pl.BlockSpec((tile_m, k), lambda i: (i, 0)),
                  pl.BlockSpec((k, c), lambda i: (0, 0))],
        out_specs=[pl.BlockSpec((tile_m, c), lambda i: (i, 0)),
                   pl.BlockSpec((1, 2, c), lambda i: (i, 0, 0))],
        out_shape=[jax.ShapeDtypeStruct((mp, c), jnp.float32),
                   jax.ShapeDtypeStruct((grid, 2, c), jnp.float32)],
        compiler_params=_cparams(),
        cost_estimate=pl.CostEstimate(
            flops=2 * mp * k * c, transcendentals=0,
            bytes_accessed=mp * k * 2 + k * c * 2 + mp * c * 4),
    )(x2d, w)


# TODO(synk): for production-size images, tile conv2 over output rows as well as N
# (grid=(N, Ho/tile_h) with a halo'd input window) so the accumulator / scratch stay small
# on v7x's 64 MiB VMEM and the grid is deep enough to feed both TensorCores.
def conv2_bn1_fused_s1(y1_4d, scale1, shift1, w2s1):
    n, h, w, c = y1_4d.shape
    cout = w2s1.shape[-1]
    kern = functools.partial(conv2_fused_s1_kernel, h=h, w=w)
    vec = pl.BlockSpec((1, c), lambda i: (0, 0))
    return pl.pallas_call(
        kern,
        grid=(n,),
        in_specs=[pl.BlockSpec((1, h, w, c), lambda i: (i, 0, 0, 0)), vec, vec,
                  pl.BlockSpec((9, c, cout), lambda i: (0, 0, 0))],
        out_specs=[pl.BlockSpec((1, h, w, cout), lambda i: (i, 0, 0, 0)),
                   pl.BlockSpec((1, 2, cout), lambda i: (i, 0, 0))],
        out_shape=[jax.ShapeDtypeStruct((n, h, w, cout), jnp.float32),
                   jax.ShapeDtypeStruct((n, 2, cout), jnp.float32)],
        scratch_shapes=[pltpu.VMEM((h + 2, w + 2, c), jnp.float32)],
        compiler_params=_cparams(),
        cost_estimate=pl.CostEstimate(
            flops=2 * n * h * w * 9 * c * cout, transcendentals=0,
            bytes_accessed=y1_4d.size * 4 + w2s1.size * 2 + n * h * w * cout * 4),
    )(y1_4d, scale1, shift1, w2s1)


def conv2_bn1_fused_s2(y1_5d, scale1p, shift1p, w2s2):
    n, ho, _, wo, c2 = y1_5d.shape
    c = c2 // 2
    cout = w2s2.shape[-1]
    kern = functools.partial(conv2_fused_s2_kernel, ho=ho, wo=wo)
    vec = pl.BlockSpec((1, c2), lambda i: (0, 0))
    return pl.pallas_call(
        kern,
        grid=(n,),
        in_specs=[pl.BlockSpec((1, ho, 2, wo, c2), lambda i: (i, 0, 0, 0, 0)), vec, vec,
                  pl.BlockSpec((3, 3 * c, cout), lambda i: (0, 0, 0))],
        out_specs=[pl.BlockSpec((1, ho, wo, cout), lambda i: (i, 0, 0, 0)),
                   pl.BlockSpec((1, 2, cout), lambda i: (i, 0, 0))],
        out_shape=[jax.ShapeDtypeStruct((n, ho, wo, cout), jnp.float32),
                   jax.ShapeDtypeStruct((n, 2, cout), jnp.float32)],
        scratch_shapes=[pltpu.VMEM((2, ho + 1, wo + 1, c2), jnp.float32)],
        compiler_params=_cparams(),
        cost_estimate=pl.CostEstimate(
            flops=2 * n * ho * wo * 9 * c * cout, transcendentals=0,
            bytes_accessed=y1_5d.size * 4 + w2s2.size * 2 + n * ho * wo * cout * 4),
    )(y1_5d, scale1p, shift1p, w2s2)


def stage3_proj(y2_2d, scale2, shift2, w3, xs, wsc, tile_m, m_valid):
    mp, k = y2_2d.shape
    cout = w3.shape[1]
    kin = xs.shape[1]
    grid = mp // tile_m
    kern = functools.partial(stage3_proj_kernel, mask_rows=(mp != m_valid),
                             tile_m=tile_m, m_valid=m_valid)
    vec = pl.BlockSpec((1, k), lambda i: (0, 0))
    return pl.pallas_call(
        kern,
        grid=(grid,),
        in_specs=[pl.BlockSpec((tile_m, k), lambda i: (i, 0)), vec, vec,
                  pl.BlockSpec((k, cout), lambda i: (0, 0)),
                  pl.BlockSpec((tile_m, kin), lambda i: (i, 0)),
                  pl.BlockSpec((kin, cout), lambda i: (0, 0))],
        out_specs=[pl.BlockSpec((tile_m, cout), lambda i: (i, 0)),
                   pl.BlockSpec((tile_m, cout), lambda i: (i, 0)),
                   pl.BlockSpec((1, 2, cout), lambda i: (i, 0, 0)),
                   pl.BlockSpec((1, 2, cout), lambda i: (i, 0, 0))],
        out_shape=[jax.ShapeDtypeStruct((mp, cout), jnp.float32),
                   jax.ShapeDtypeStruct((mp, cout), jnp.float32),
                   jax.ShapeDtypeStruct((grid, 2, cout), jnp.float32),
                   jax.ShapeDtypeStruct((grid, 2, cout), jnp.float32)],
        compiler_params=_cparams(),
        cost_estimate=pl.CostEstimate(
            flops=2 * mp * (k + kin) * cout, transcendentals=0,
            bytes_accessed=mp * (k * 4 + kin * 2 + cout * 8) + (k + kin) * cout * 2),
    )(y2_2d, scale2, shift2, w3, xs, wsc)


def stage3_id(y2_2d, scale2, shift2, w3, tile_m, m_valid):
    mp, k = y2_2d.shape
    cout = w3.shape[1]
    grid = mp // tile_m
    kern = functools.partial(stage3_id_kernel, mask_rows=(mp != m_valid),
                             tile_m=tile_m, m_valid=m_valid)
    vec = pl.BlockSpec((1, k), lambda i: (0, 0))
    return pl.pallas_call(
        kern,
        grid=(grid,),
        in_specs=[pl.BlockSpec((tile_m, k), lambda i: (i, 0)), vec, vec,
                  pl.BlockSpec((k, cout), lambda i: (0, 0))],
        out_specs=[pl.BlockSpec((tile_m, cout), lambda i: (i, 0)),
                   pl.BlockSpec((1, 2, cout), lambda i: (i, 0, 0))],
        out_shape=[jax.ShapeDtypeStruct((mp, cout), jnp.float32),
                   jax.ShapeDtypeStruct((grid, 2, cout), jnp.float32)],
        compiler_params=_cparams(),
        cost_estimate=pl.CostEstimate(
            flops=2 * mp * k * cout, transcendentals=0,
            bytes_accessed=mp * (k * 4 + cout * 4) + k * cout * 2),
    )(y2_2d, scale2, shift2, w3)


def final_proj(y3, ysc, s3, b3, ssc, bsc, tile_m):
    mp, c = y3.shape
    grid = mp // tile_m
    row = pl.BlockSpec((tile_m, c), lambda i: (i, 0))
    vec = pl.BlockSpec((1, c), lambda i: (0, 0))
    return pl.pallas_call(
        final_proj_kernel,
        grid=(grid,),
        in_specs=[row, row, vec, vec, vec, vec],
        out_specs=row,
        out_shape=jax.ShapeDtypeStruct((mp, c), jnp.float32),
        compiler_params=_cparams(),
    )(y3, ysc, s3, b3, ssc, bsc)


def final_id(y3, xid, s3, b3, tile_m):
    mp, c = y3.shape
    grid = mp // tile_m
    row = pl.BlockSpec((tile_m, c), lambda i: (i, 0))
    vec = pl.BlockSpec((1, c), lambda i: (0, 0))
    return pl.pallas_call(
        final_id_kernel,
        grid=(grid,),
        in_specs=[row, row, vec, vec],
        out_specs=row,
        out_shape=jax.ShapeDtypeStruct((mp, c), jnp.float32),
        compiler_params=_cparams(),
    )(y3, xid, s3, b3)


# --------------------------- BN stats finalize (tiny glue) -------------------

def _finalize_stats(part, m, gamma_p, beta_p):
    """Per-tile (sum, sum_sq) partials -> per-channel scale/shift (training-mode BN)."""
    tot = jnp.sum(part, axis=0)                                  # (2, C)
    mean = tot[0] / m
    var = jnp.maximum(tot[1] / m - mean * mean, 0.0)
    scale = gamma_p * jax.lax.rsqrt(var + EPS)
    shift = beta_p - mean * scale
    return scale.reshape(1, -1), shift.reshape(1, -1)


# ------------------------------ forward pass --------------------------------

@functools.partial(jax.jit, static_argnames=("downsample",))
def res_bottleneck_block(x_nchw, params, downsample):
    N, Cin, H, W = x_nchw.shape
    mid = params["conv1_w"].shape[0]
    Cout = params["conv3_w"].shape[0]
    s = 2 if downsample else 1
    Ho = (H + 2 - 3) // s + 1
    Wo = (W + 2 - 3) // s + 1
    Cin_p, Mid_p, Cout_p = _rup(Cin, LANE), _rup(mid, LANE), _rup(Cout, LANE)

    x = jnp.transpose(x_nchw, (0, 2, 3, 1)).astype(jnp.float32)  # NHWC
    M1, M2 = N * H * W, N * Ho * Wo
    tile1, tile2 = _pick_tile(M1), _pick_tile(M2)
    M1p, M2p = _rup(M1, tile1), _rup(M2, tile2)

    bf16 = jnp.bfloat16
    pad2 = lambda a, r, c: jnp.pad(a, ((0, r - a.shape[0]), (0, c - a.shape[1])))
    padv = lambda v, n: jnp.pad(v.astype(jnp.float32), (0, n - v.shape[0]))

    # Lane-dense bf16 weights; conv biases dropped (they cancel in training-mode BatchNorm).
    w1 = pad2(params["conv1_w"].reshape(mid, Cin).T, Cin_p, Mid_p).astype(bf16)
    w3 = pad2(params["conv3_w"].reshape(Cout, mid).T, Mid_p, Cout_p).astype(bf16)
    w2t = jnp.transpose(params["conv2_w"], (2, 3, 1, 0))         # (kh, kw, in, out)
    w2t = jnp.pad(w2t, ((0, 0), (0, 0), (0, Mid_p - mid), (0, Mid_p - mid)))
    g1, b1 = padv(params["bn1_g"], Mid_p), padv(params["bn1_b"], Mid_p)
    g2, b2 = padv(params["bn2_g"], Mid_p), padv(params["bn2_b"], Mid_p)
    g3, b3 = padv(params["bn3_g"], Cout_p), padv(params["bn3_b"], Cout_p)

    # ---- stage 1: 1x1 conv (bf16 MXU) + BN1 partial stats ----
    x2d = jnp.pad(x.reshape(M1, Cin).astype(bf16), ((0, M1p - M1), (0, Cin_p - Cin)))
    y1, p1 = matmul_stats(x2d, w1, tile1)
    scale1, shift1 = _finalize_stats(p1, M1, g1, b1)
    if M1p != M1:
        y1 = y1[:M1]

    # ---- stage 2: fused bn1-apply + ReLU + halo pad + 3x3 conv + BN2 partial stats ----
    if s == 1:
        w2s1 = w2t.reshape(9, Mid_p, Mid_p).astype(bf16)
        y2_4d, p2 = conv2_bn1_fused_s1(y1.reshape(N, H, W, Mid_p), scale1, shift1, w2s1)
    else:
        assert H % 2 == 0 and W % 2 == 0, "stride-2 path assumes even spatial dims"
        # Free row-major reshape: column pairs land in the lane dim, row parity in its own axis.
        y1_5d = y1.reshape(N, Ho, 2, Wo, 2 * Mid_p)
        sp1 = jnp.concatenate([scale1, scale1], axis=-1)
        bp1 = jnp.concatenate([shift1, shift1], axis=-1)
        w2s2 = w2t.reshape(3, 3 * Mid_p, Mid_p).astype(bf16)     # [dy, dx*Mid_p + cin, cout]
        y2_4d, p2 = conv2_bn1_fused_s2(y1_5d, sp1, bp1, w2s2)
    scale2, shift2 = _finalize_stats(p2, M2, g2, b2)

    # ---- stage 3: fused bn2-apply + ReLU + 1x1 conv (+ projection shortcut) + stats ----
    y2_2d = y2_4d.reshape(M2, Mid_p)
    if M2p != M2:
        y2_2d = jnp.pad(y2_2d, ((0, M2p - M2), (0, 0)))
    proj = downsample or Cin != Cout
    if proj:
        wsc = pad2(params["sc_w"].reshape(Cout, Cin).T, Cin_p, Cout_p).astype(bf16)
        gsc, bsc = padv(params["bnsc_g"], Cout_p), padv(params["bnsc_b"], Cout_p)
        # TODO(synk): the stride-2 spatial subsample of the (tiny, Cin-channel) input could be
        # folded into the stage-3 kernel via an (n, out-row) grid; kept in XLA as it is small
        # compared with the mid/out activations.
        xs = x[:, ::s, ::s, :].reshape(M2, Cin).astype(bf16)
        xs = jnp.pad(xs, ((0, M2p - M2), (0, Cin_p - Cin)))
        y3, ysc, p3, psc = stage3_proj(y2_2d, scale2, shift2, w3, xs, wsc, tile2, M2)
        scale3, shift3 = _finalize_stats(p3, M2, g3, b3)
        scalesc, shiftsc = _finalize_stats(psc, M2, gsc, bsc)
        out2d = final_proj(y3, ysc, scale3, shift3, scalesc, shiftsc, tile2)
    else:
        y3, p3 = stage3_id(y2_2d, scale2, shift2, w3, tile2, M2)
        scale3, shift3 = _finalize_stats(p3, M2, g3, b3)
        xid = jnp.pad(x.reshape(M1, Cin), ((0, M2p - M1), (0, Cout_p - Cin)))
        out2d = final_id(y3, xid, scale3, shift3, tile2)

    out = out2d[:M2, :Cout].reshape(N, Ho, Wo, Cout)
    return jnp.transpose(out, (0, 3, 1, 2))                      # back to NCHW


# ------------------------------ params / reference --------------------------

def init_params(key, in_channels, out_channels, downsample):
    mid = out_channels // 4
    ks = jax.random.split(key, 20)
    w = lambda k, shape: 0.1 * jax.random.normal(k, shape, dtype=jnp.float32)
    p = {
        "conv1_w": w(ks[0], (mid, in_channels, 1, 1)), "conv1_b": w(ks[1], (mid,)),
        "conv2_w": w(ks[2], (mid, mid, 3, 3)),         "conv2_b": w(ks[3], (mid,)),
        "conv3_w": w(ks[4], (out_channels, mid, 1, 1)), "conv3_b": w(ks[5], (out_channels,)),
        "bn1_g": 1.0 + w(ks[6], (mid,)),  "bn1_b": w(ks[7], (mid,)),
        "bn2_g": 1.0 + w(ks[8], (mid,)),  "bn2_b": w(ks[9], (mid,)),
        "bn3_g": 1.0 + w(ks[10], (out_channels,)), "bn3_b": w(ks[11], (out_channels,)),
    }
    if downsample or in_channels != out_channels:
        p.update({
            "sc_w": w(ks[12], (out_channels, in_channels, 1, 1)),
            "sc_b": w(ks[13], (out_channels,)),
            "bnsc_g": 1.0 + w(ks[14], (out_channels,)),
            "bnsc_b": w(ks[15], (out_channels,)),
        })
    return p


def ref_forward(x_nchw, params, downsample):
    """Pure-JAX reference (lax.conv + training-mode BatchNorm).  Conv inputs are cast to bf16
    (f32 accumulation) to mirror the kernels' MXU precision; BN math stays in f32.  Conv biases
    are kept here (they cancel through BN, matching the bias-free kernels)."""
    x = jnp.transpose(x_nchw, (0, 2, 3, 1)).astype(jnp.float32)
    s = 2 if downsample else 1

    def conv(inp, wt4, b, stride, pad):
        wt = jnp.transpose(wt4, (2, 3, 1, 0)).astype(jnp.bfloat16)  # OIHW -> HWIO
        y = jax.lax.conv_general_dilated(
            inp.astype(jnp.bfloat16), wt, window_strides=(stride, stride),
            padding=[(pad, pad), (pad, pad)],
            dimension_numbers=("NHWC", "HWIO", "NHWC"),
            preferred_element_type=jnp.float32)
        return y + b.reshape(1, 1, 1, -1)

    def bn(y, g, bt):
        m = jnp.mean(y, axis=(0, 1, 2), keepdims=True)
        v = jnp.mean((y - m) ** 2, axis=(0, 1, 2), keepdims=True)
        return (y - m) * jax.lax.rsqrt(v + EPS) * g.reshape(1, 1, 1, -1) + bt.reshape(1, 1, 1, -1)

    relu = lambda t: jnp.maximum(t, 0.0)
    cin = x.shape[-1]
    cout = params["conv3_w"].shape[0]
    if downsample or cin != cout:
        sc = bn(conv(x, params["sc_w"], params["sc_b"], s, 0),
                params["bnsc_g"], params["bnsc_b"])
    else:
        sc = x
    y = relu(bn(conv(x, params["conv1_w"], params["conv1_b"], 1, 0),
                params["bn1_g"], params["bn1_b"]))
    y = relu(bn(conv(y, params["conv2_w"], params["conv2_b"], s, 1),
                params["bn2_g"], params["bn2_b"]))
    y = relu(bn(conv(y, params["conv3_w"], params["conv3_b"], 1, 0),
                params["bn3_g"], params["bn3_b"]))
    return jnp.transpose(relu(y + sc), (0, 3, 1, 2))


# ----------------------------------- main ------------------------------------

if __name__ == "__main__":
    key = jax.random.PRNGKey(0)
    configs = [
        # (N, Cin, H, W, Cout, downsample)
        (2, 8, 16, 16, 32, True),    # projection shortcut, stride-2 3x3
        (2, 32, 8, 8, 32, False),    # identity shortcut, stride-1 3x3
    ]
    max_err = 0.0
    for n, cin, h, w, cout, ds in configs:
        kx, kp, key = jax.random.split(key, 3)
        x = jax.random.normal(kx, (n, cin, h, w), dtype=jnp.float32)
        params = init_params(kp, cin, cout, ds)
        out = jax.block_until_ready(res_bottleneck_block(x, params, ds))
        ref = jax.block_until_ready(ref_forward(x, params, ds))
        assert out.shape == ref.shape, (out.shape, ref.shape)
        max_err = max(max_err, float(jnp.max(jnp.abs(out - ref))))
    # Tolerance covers bf16 MXU inputs (f32 accumulation) vs the reference's rounding points.
    if max_err < 1e-2:
        print("KERNEL_OK")
    else:
        print("MISMATCH", max_err)
</pallas_src>

<mosaic_0001>
module attributes {stable_mosaic.version = 11 : i64} {
  func.func @matmul_stats_kernel(%arg0: i32, %arg1: memref<512x128xbf16, #tpu.memory_space<vmem>>, %arg2: memref<128x128xbf16, #tpu.memory_space<vmem>>, %arg3: memref<512x128xf32, #tpu.memory_space<vmem>>, %arg4: memref<1x2x128xf32, #tpu.memory_space<vmem>>) attributes {dimension_semantics = [#tpu.dimension_semantics<parallel>], iteration_bounds = array<i64: 1>, scalar_prefetch = 0 : i64, scratch_operands = 0 : i64, tpu.core_type = #tpu.core_type<tc>, window_params = [{transform_indices = @transform_0, window_bounds = array<i64: 512, 128>}, {pipeline_mode = #tpu.pipeline_mode<synchronous>, transform_indices = @transform_1, window_bounds = array<i64: 128, 128>}, {transform_indices = @transform_2, window_bounds = array<i64: 512, 128>}, {transform_indices = @transform_3, window_bounds = array<i64: 1, 2, 128>}]} {
    %c0 = arith.constant 0 : index
    %c0_0 = arith.constant 0 : index
    %0 = vector.load %arg1[%c0, %c0_0] : memref<512x128xbf16, #tpu.memory_space<vmem>>, vector<512x128xbf16>
    %c0_1 = arith.constant 0 : index
    %c0_2 = arith.constant 0 : index
    %1 = vector.load %arg2[%c0_1, %c0_2] : memref<128x128xbf16, #tpu.memory_space<vmem>>, vector<128x128xbf16>
    %cst = arith.constant dense<0.000000e+00> : vector<512x128xf32>
    %2 = tpu.matmul %0, %1, %cst {dimension_numbers = #tpu.dot_dimension_numbers<[1], [0], [0], [1], [0, 0, 1, 1], [], []>} : vector<512x128xbf16>, vector<128x128xbf16>, vector<512x128xf32> -> vector<512x128xf32>
    %c0_3 = arith.constant 0 : index
    %c0_4 = arith.constant 0 : index
    %3 = vector.load %arg3[%c0_3, %c0_4] : memref<512x128xf32, #tpu.memory_space<vmem>>, vector<512x128xf32>
    tpu.vector_store %arg3[%c0_3, %c0_4], %2 {strides = array<i32>} : memref<512x128xf32, #tpu.memory_space<vmem>>, vector<512x128xf32>,
    %cst_5 = arith.constant dense<0.000000e+00> : vector<128xf32>
    %4 = vector.multi_reduction <add>, %2, %cst_5 [0] : vector<512x128xf32> to vector<128xf32>
    %5 = vector.shape_cast %4 : vector<128xf32> to vector<1x128xf32>
    %6 = arith.mulf %2, %2 : vector<512x128xf32>
    %cst_6 = arith.constant dense<0.000000e+00> : vector<128xf32>
    %7 = vector.multi_reduction <add>, %6, %cst_6 [0] : vector<512x128xf32> to vector<128xf32>
    %8 = vector.shape_cast %7 : vector<128xf32> to vector<1x128xf32>
    %9 = tpu.concatenate %5, %8 in 0 : vector<1x128xf32>, vector<1x128xf32> -> vector<2x128xf32>
    %c0_7 = arith.constant 0 : index
    %c0_8 = arith.constant 0 : index
    %c0_9 = arith.constant 0 : index
    %10 = vector.load %arg4[%c0_7, %c0_8, %c0_9] : memref<1x2x128xf32, #tpu.memory_space<vmem>>, vector<1x2x128xf32>
    %11 = vector.shape_cast %10 : vector<1x2x128xf32> to vector<2x128xf32>
    %12 = vector.shape_cast %9 : vector<2x128xf32> to vector<1x2x128xf32>
    tpu.vector_store %arg4[%c0_7, %c0_8, %c0_9], %12 {strides = array<i32>} : memref<1x2x128xf32, #tpu.memory_space<vmem>>, vector<1x2x128xf32>,
    return
  }
  func.func @transform_0(%arg0: i32) -> (i32, i32) {
    %c0_i32 = arith.constant 0 : i32
    %c0_i32_0 = arith.constant 0 : i32
    return %arg0, %c0_i32 : i32, i32
  }
  func.func @transform_1(%arg0: i32) -> (i32, i32) {
    %c0_i32 = arith.constant 0 : i32
    %c0_i32_0 = arith.constant 0 : i32
    %c0_i32_1 = arith.constant 0 : i32
    return %c0_i32, %c0_i32_0 : i32, i32
  }
  func.func @transform_2(%arg0: i32) -> (i32, i32) {
    %c0_i32 = arith.constant 0 : i32
    %c0_i32_0 = arith.constant 0 : i32
    return %arg0, %c0_i32 : i32, i32
  }
  func.func @transform_3(%arg0: i32) -> (i32, i32, i32) {
    %c0_i32 = arith.constant 0 : i32
    %c0_i32_0 = arith.constant 0 : i32
    %c0_i32_1 = arith.constant 0 : i32
    return %arg0, %c0_i32, %c0_i32_0 : i32, i32, i32
  }
}

module attributes {stable_mosaic.version = 11 : i64} {
  func.func @conv2_fused_s2_kernel(%arg0: i32, %arg1: memref<1x8x2x8x256xf32, #tpu.memory_space<vmem>>, %arg2: memref<1x256xf32, #tpu.memory_space<vmem>>, %arg3: memref<1x256xf32, #tpu.memory_space<vmem>>, %arg4: memref<3x384x128xbf16, #tpu.memory_space<vmem>>, %arg5: memref<1x8x8x128xf32, #tpu.memory_space<vmem>>, %arg6: memref<1x2x128xf32, #tpu.memory_space<vmem>>, %arg7: memref<2x9x9x256xf32, #tpu.memory_space<vmem>>) attributes {dimension_semantics = [#tpu.dimension_semantics<parallel>], iteration_bounds = array<i64: 2>, scalar_prefetch = 0 : i64, scratch_operands = 1 : i64, tpu.core_type = #tpu.core_type<tc>, window_params = [{transform_indices = @transform_0, window_bounds = array<i64: 1, 8, 2, 8, 256>}, {pipeline_mode = #tpu.pipeline_mode<synchronous>, transform_indices = @transform_1, window_bounds = array<i64: 1, 256>}, {pipeline_mode = #tpu.pipeline_mode<synchronous>, transform_indices = @transform_2, window_bounds = array<i64: 1, 256>}, {pipeline_mode = #tpu.pipeline_mode<synchronous>, transform_indices = @transform_3, window_bounds = array<i64: 3, 384, 128>}, {transform_indices = @transform_4, window_bounds = array<i64: 1, 8, 8, 128>}, {transform_indices = @transform_5, window_bounds = array<i64: 1, 2, 128>}]} {
    %cst = arith.constant 0.000000e+00 : f32
    %0 = vector.broadcast %cst : f32 to vector<1x9x256xf32>
    %c0 = arith.constant 0 : index
    %c0_0 = arith.constant 0 : index
    %c0_1 = arith.constant 0 : index
    %c0_2 = arith.constant 0 : index
    %1 = vector.load %arg7[%c0, %c0_0, %c0_1, %c0_2] : memref<2x9x9x256xf32, #tpu.memory_space<vmem>>, vector<1x1x9x256xf32>
    %2 = vector.shape_cast %1 : vector<1x1x9x256xf32> to vector<1x9x256xf32>
    %3 = vector.shape_cast %0 : vector<1x9x256xf32> to vector<1x1x9x256xf32>
    tpu.vector_store %arg7[%c0, %c0_0, %c0_1, %c0_2], %3 {strides = array<i32>} : memref<2x9x9x256xf32, #tpu.memory_space<vmem>>, vector<1x1x9x256xf32>,
    %cst_3 = arith.constant 0.000000e+00 : f32
    %4 = vector.broadcast %cst_3 : f32 to vector<2x9x1x256xf32>
    %c0_4 = arith.constant 0 : index
    %c0_5 = arith.constant 0 : index
    %c0_6 = arith.constant 0 : index
    %c0_7 = arith.constant 0 : index
    %5 = vector.load %arg7[%c0_4, %c0_5, %c0_6, %c0_7] : memref<2x9x9x256xf32, #tpu.memory_space<vmem>>, vector<2x9x1x256xf32>
    tpu.vector_store %arg7[%c0_4, %c0_5, %c0_6, %c0_7], %4 {strides = array<i32>} : memref<2x9x9x256xf32, #tpu.memory_space<vmem>>, vector<2x9x1x256xf32>,
    %c0_8 = arith.constant 0 : index
    %c0_9 = arith.constant 0 : index
    %c0_10 = arith.constant 0 : index
    %c0_11 = arith.constant 0 : index
    %c0_12 = arith.constant 0 : index
    %6 = vector.load %arg1[%c0_8, %c0_9, %c0_10, %c0_11, %c0_12] : memref<1x8x2x8x256xf32, #tpu.memory_space<vmem>>, vector<1x8x1x8x256xf32>
    %7 = vector.shape_cast %6 : vector<1x8x1x8x256xf32> to vector<8x8x256xf32>
    %c0_13 = arith.constant 0 : index
    %c0_14 = arith.constant 0 : index
    %8 = vector.load %arg2[%c0_13, %c0_14] : memref<1x256xf32, #tpu.memory_space<vmem>>, vector<1x256xf32>
    %9 = vector.shape_cast %8 : vector<1x256xf32> to vector<1x1x256xf32>
    %10 = vector.broadcast %9 : vector<1x1x256xf32> to vector<8x8x256xf32>
    %11 = arith.mulf %7, %10 : vector<8x8x256xf32>
    %c0_15 = arith.constant 0 : index
    %c0_16 = arith.constant 0 : index
    %12 = vector.load %arg3[%c0_15, %c0_16] : memref<1x256xf32, #tpu.memory_space<vmem>>, vector<1x256xf32>
    %13 = vector.shape_cast %12 : vector<1x256xf32> to vector<1x1x256xf32>
    %14 = vector.broadcast %13 : vector<1x1x256xf32> to vector<8x8x256xf32>
    %15 = arith.addf %11, %14 : vector<8x8x256xf32>
    %cst_17 = arith.constant 0.000000e+00 : f32
    %16 = vector.broadcast %cst_17 : f32 to vector<8x8x256xf32>
    %17 = arith.maximumf %15, %16 : vector<8x8x256xf32>
    %c0_18 = arith.constant 0 : index
    %c0_19 = arith.constant 0 : index
    %c1 = arith.constant 1 : index
    %c0_20 = arith.constant 0 : index
    %c0_21 = arith.constant 0 : index
    %18 = vector.load %arg1[%c0_18, %c0_19, %c1, %c0_20, %c0_21] : memref<1x8x2x8x256xf32, #tpu.memory_space<vmem>>, vector<1x8x1x8x256xf32>
    %19 = vector.shape_cast %18 : vector<1x8x1x8x256xf32> to vector<8x8x256xf32>
    %c0_22 = arith.constant 0 : index
    %c0_23 = arith.constant 0 : index
    %20 = vector.load %arg2[%c0_22, %c0_23] : memref<1x256xf32, #tpu.memory_space<vmem>>, vector<1x256xf32>
    %21 = vector.shape_cast %20 : vector<1x256xf32> to vector<1x1x256xf32>
    %22 = vector.broadcast %21 : vector<1x1x256xf32> to vector<8x8x256xf32>
    %23 = arith.mulf %19, %22 : vector<8x8x256xf32>
    %c0_24 = arith.constant 0 : index
    %c0_25 = arith.constant 0 : index
    %24 = vector.load %arg3[%c0_24, %c0_25] : memref<1x256xf32, #tpu.memory_space<vmem>>, vector<1x256xf32>
    %25 = vector.shape_cast %24 : vector<1x256xf32> to vector<1x1x256xf32>
    %26 = vector.broadcast %25 : vector<1x1x256xf32> to vector<8x8x256xf32>
    %27 = arith.addf %23, %26 : vector<8x8x256xf32>
    %cst_26 = arith.constant 0.000000e+00 : f32
    %28 = vector.broadcast %cst_26 : f32 to vector<8x8x256xf32>
    %29 = arith.maximumf %27, %28 : vector<8x8x256xf32>
    %c1_27 = arith.constant 1 : index
    %c0_28 = arith.constant 0 : index
    %c1_29 = arith.constant 1 : index
    %c0_30 = arith.constant 0 : index
    %30 = vector.load %arg7[%c1_27, %c0_28, %c1_29, %c0_30] : memref<2x9x9x256xf32, #tpu.memory_space<vmem>>, vector<1x8x8x256xf32>
    %31 = vector.shape_cast %30 : vector<1x8x8x256xf32> to vector<8x8x256xf32>
    %32 = vector.shape_cast %17 : vector<8x8x256xf32> to vector<1x8x8x256xf32>
    tpu.vector_store %arg7[%c1_27, %c0_28, %c1_29, %c0_30], %32 {strides = array<i32>} : memref<2x9x9x256xf32, #tpu.memory_space<vmem>>, vector<1x8x8x256xf32>,
    %c0_31 = arith.constant 0 : index
    %c1_32 = arith.constant 1 : index
    %c1_33 = arith.constant 1 : index
    %c0_34 = arith.constant 0 : index
    %33 = vector.load %arg7[%c0_31, %c1_32, %c1_33, %c0_34] : memref<2x9x9x256xf32, #tpu.memory_space<vmem>>, vector<1x8x8x256xf32>
    %34 = vector.shape_cast %33 : vector<1x8x8x256xf32> to vector<8x8x256xf32>
    %35 = vector.shape_cast %29 : vector<8x8x256xf32> to vector<1x8x8x256xf32>
    tpu.vector_store %arg7[%c0_31, %c1_32, %c1_33, %c0_34], %35 {strides = array<i32>} : memref<2x9x9x256xf32, #tpu.memory_space<vmem>>, vector<1x8x8x256xf32>,
    %cst_35 = arith.constant 0.000000e+00 : f32
    %36 = vector.broadcast %cst_35 : f32 to vector<64x128xf32>
    %c0_36 = arith.constant 0 : index
    %c0_37 = arith.constant 0 : index
    %c1_38 = arith.constant 1 : index
    %c0_39 = arith.constant 0 : index
    %37 = vector.load %arg7[%c0_36, %c0_37, %c1_38, %c0_39] : memref<2x9x9x256xf32, #tpu.memory_space<vmem>>, vector<1x8x8x256xf32>
    %38 = vector.shape_cast %37 : vector<1x8x8x256xf32> to vector<8x8x256xf32>
    %c0_40 = arith.constant 0 : index
    %c0_41 = arith.constant 0 : index
    %c0_42 = arith.constant 0 : index
    %c128 = arith.constant 128 : index
    %39 = vector.load %arg7[%c0_40, %c0_41, %c0_42, %c128] : memref<2x9x9x256xf32, #tpu.memory_space<vmem>>, vector<1x8x8x128xf32>
    %40 = vector.shape_cast %39 : vector<1x8x8x128xf32> to vector<8x8x128xf32>
    %41 = vector.shape_cast %38 : vector<8x8x256xf32> to vector<64x256xf32>
    %42 = arith.truncf %41 : vector<64x256xf32> to vector<64x256xbf16>
    %c0_43 = arith.constant 0 : index
    %c128_44 = arith.constant 128 : index
    %c0_45 = arith.constant 0 : index
    %43 = vector.load %arg4[%c0_43, %c128_44, %c0_45] : memref<3x384x128xbf16, #tpu.memory_space<vmem>>, vector<1x256x128xbf16>
    %44 = vector.shape_cast %43 : vector<1x256x128xbf16> to vector<256x128xbf16>
    %cst_46 = arith.constant dense<0.000000e+00> : vector<64x128xf32>
    %45 = tpu.matmul %42, %44, %cst_46 {dimension_numbers = #tpu.dot_dimension_numbers<[1], [0], [0], [1], [0, 0, 1, 1], [], []>} : vector<64x256xbf16>, vector<256x128xbf16>, vector<64x128xf32> -> vector<64x128xf32>
    %46 = arith.addf %36, %45 : vector<64x128xf32>
    %47 = vector.shape_cast %40 : vector<8x8x128xf32> to vector<64x128xf32>
    %48 = arith.truncf %47 : vector<64x128xf32> to vector<64x128xbf16>
    %c0_47 = arith.constant 0 : index
    %c0_48 = arith.constant 0 : index
    %c0_49 = arith.constant 0 : index
    %49 = vector.load %arg4[%c0_47, %c0_48, %c0_49] : memref<3x384x128xbf16, #tpu.memory_space<vmem>>, vector<1x128x128xbf16>
    %50 = vector.shape_cast %49 : vector<1x128x128xbf16> to vector<128x128xbf16>
    %cst_50 = arith.constant dense<0.000000e+00> : vector<64x128xf32>
    %51 = tpu.matmul %48, %50, %cst_50 {dimension_numbers = #tpu.dot_dimension_numbers<[1], [0], [0], [1], [0, 0, 1, 1], [], []>} : vector<64x128xbf16>, vector<128x128xbf16>, vector<64x128xf32> -> vector<64x128xf32>
    %52 = arith.addf %46, %51 : vector<64x128xf32>
    %c1_51 = arith.constant 1 : index
    %c0_52 = arith.constant 0 : index
    %c1_53 = arith.constant 1 : index
    %c0_54 = arith.constant 0 : index
    %53 = vector.load %arg7[%c1_51, %c0_52, %c1_53, %c0_54] : memref<2x9x9x256xf32, #tpu.memory_space<vmem>>, vector<1x8x8x256xf32>
    %54 = vector.shape_cast %53 : vector<1x8x8x256xf32> to vector<8x8x256xf32>
    %c1_55 = arith.constant 1 : index
    %c0_56 = arith.constant 0 : index
    %c0_57 = arith.constant 0 : index
    %c128_58 = arith.constant 128 : index
    %55 = vector.load %arg7[%c1_55, %c0_56, %c0_57, %c128_58] : memref<2x9x9x256xf32, #tpu.memory_space<vmem>>, vector<1x8x8x128xf32>
    %56 = vector.shape_cast %55 : vector<1x8x8x128xf32> to vector<8x8x128xf32>
    %57 = vector.shape_cast %54 : vector<8x8x256xf32> to vector<64x256xf32>
    %58 = arith.truncf %57 : vector<64x256xf32> to vector<64x256xbf16>
    %c1_59 = arith.constant 1 : index
    %c128_60 = arith.constant 128 : index
    %c0_61 = arith.constant 0 : index
    %59 = vector.load %arg4[%c1_59, %c128_60, %c0_61] : memref<3x384x128xbf16, #tpu.memory_space<vmem>>, vector<1x256x128xbf16>
    %60 = vector.shape_cast %59 : vector<1x256x128xbf16> to vector<256x128xbf16>
    %cst_62 = arith.constant dense<0.000000e+00> : vector<64x128xf32>
    %61 = tpu.matmul %58, %60, %cst_62 {dimension_numbers = #tpu.dot_dimension_numbers<[1], [0], [0], [1], [0, 0, 1, 1], [], []>} : vector<64x256xbf16>, vector<256x128xbf16>, vector<64x128xf32> -> vector<64x128xf32>
    %62 = arith.addf %52, %61 : vector<64x128xf32>
    %63 = vector.shape_cast %56 : vector<8x8x128xf32> to vector<64x128xf32>
    %64 = arith.truncf %63 : vector<64x128xf32> to vector<64x128xbf16>
    %c1_63 = arith.constant 1 : index
    %c0_64 = arith.constant 0 : index
    %c0_65 = arith.constant 0 : index
    %65 = vector.load %arg4[%c1_63, %c0_64, %c0_65] : memref<3x384x128xbf16, #tpu.memory_space<vmem>>, vector<1x128x128xbf16>
    %66 = vector.shape_cast %65 : vector<1x128x128xbf16> to vector<128x128xbf16>
    %cst_66 = arith.constant dense<0.000000e+00> : vector<64x128xf32>
    %67 = tpu.matmul %64, %66, %cst_66 {dimension_numbers = #tpu.dot_dimension_numbers<[1], [0], [0], [1], [0, 0, 1, 1], [], []>} : vector<64x128xbf16>, vector<128x128xbf16>, vector<64x128xf32> -> vector<64x128xf32>
    %68 = arith.addf %62, %67 : vector<64x128xf32>
    %c0_67 = arith.constant 0 : index
    %c1_68 = arith.constant 1 : index
    %c1_69 = arith.constant 1 : index
    %c0_70 = arith.constant 0 : index
    %69 = vector.load %arg7[%c0_67, %c1_68, %c1_69, %c0_70] : memref<2x9x9x256xf32, #tpu.memory_space<vmem>>, vector<1x8x8x256xf32>
    %70 = vector.shape_cast %69 : vector<1x8x8x256xf32> to vector<8x8x256xf32>
    %c0_71 = arith.constant 0 : index
    %c1_72 = arith.constant 1 : index
    %c0_73 = arith.constant 0 : index
    %c128_74 = arith.constant 128 : index
    %71 = vector.load %arg7[%c0_71, %c1_72, %c0_73, %c128_74] : memref<2x9x9x256xf32, #tpu.memory_space<vmem>>, vector<1x8x8x128xf32>
    %72 = vector.shape_cast %71 : vector<1x8x8x128xf32> to vector<8x8x128xf32>
    %73 = vector.shape_cast %70 : vector<8x8x256xf32> to vector<64x256xf32>
    %74 = arith.truncf %73 : vector<64x256xf32> to vector<64x256xbf16>
    %c2 = arith.constant 2 : index
    %c128_75 = arith.constant 128 : index
    %c0_76 = arith.constant 0 : index
    %75 = vector.load %arg4[%c2, %c128_75, %c0_76] : memref<3x384x128xbf16, #tpu.memory_space<vmem>>, vector<1x256x128xbf16>
    %76 = vector.shape_cast %75 : vector<1x256x128xbf16> to vector<256x128xbf16>
    %cst_77 = arith.constant dense<0.000000e+00> : vector<64x128xf32>
    %77 = tpu.matmul %74, %76, %cst_77 {dimension_numbers = #tpu.dot_dimension_numbers<[1], [0], [0], [1], [0, 0, 1, 1], [], []>} : vector<64x256xbf16>, vector<256x128xbf16>, vector<64x128xf32> -> vector<64x128xf32>
    %78 = arith.addf %68, %77 : vector<64x128xf32>
    %79 = vector.shape_cast %72 : vector<8x8x128xf32> to vector<64x128xf32>
    %80 = arith.truncf %79 : vector<64x128xf32> to vector<64x128xbf16>
    %c2_78 = arith.constant 2 : index
    %c0_79 = arith.constant 0 : index
    %c0_80 = arith.constant 0 : index
    %81 = vector.load %arg4[%c2_78, %c0_79, %c0_80] : memref<3x384x128xbf16, #tpu.memory_space<vmem>>, vector<1x128x128xbf16>
    %82 = vector.shape_cast %81 : vector<1x128x128xbf16> to vector<128x128xbf16>
    %cst_81 = arith.constant dense<0.000000e+00> : vector<64x128xf32>
    %83 = tpu.matmul %80, %82, %cst_81 {dimension_numbers = #tpu.dot_dimension_numbers<[1], [0], [0], [1], [0, 0, 1, 1], [], []>} : vector<64x128xbf16>, vector<128x128xbf16>, vector<64x128xf32> -> vector<64x128xf32>
    %84 = arith.addf %78, %83 : vector<64x128xf32>
    %85 = vector.shape_cast %84 : vector<64x128xf32> to vector<1x8x8x128xf32>
    %c0_82 = arith.constant 0 : index
    %c0_83 = arith.constant 0 : index
    %c0_84 = arith.constant 0 : index
    %c0_85 = arith.constant 0 : index
    %86 = vector.load %arg5[%c0_82, %c0_83, %c0_84, %c0_85] : memref<1x8x8x128xf32, #tpu.memory_space<vmem>>, vector<1x8x8x128xf32>
    tpu.vector_store %arg5[%c0_82, %c0_83, %c0_84, %c0_85], %85 {strides = array<i32>} : memref<1x8x8x128xf32, #tpu.memory_space<vmem>>, vector<1x8x8x128xf32>,
    %cst_86 = arith.constant dense<0.000000e+00> : vector<128xf32>
    %87 = vector.multi_reduction <add>, %84, %cst_86 [0] : vector<64x128xf32> to vector<128xf32>
    %88 = vector.shape_cast %87 : vector<128xf32> to vector<1x128xf32>
    %89 = arith.mulf %84, %84 : vector<64x128xf32>
    %cst_87 = arith.constant dense<0.000000e+00> : vector<128xf32>
    %90 = vector.multi_reduction <add>, %89, %cst_87 [0] : vector<64x128xf32> to vector<128xf32>
    %91 = vector.shape_cast %90 : vector<128xf32> to vector<1x128xf32>
    %92 = tpu.concatenate %88, %91 in 0 : vector<1x128xf32>, vector<1x128xf32> -> vector<2x128xf32>
    %c0_88 = arith.constant 0 : index
    %c0_89 = arith.constant 0 : index
    %c0_90 = arith.constant 0 : index
    %93 = vector.load %arg6[%c0_88, %c0_89, %c0_90] : memref<1x2x128xf32, #tpu.memory_space<vmem>>, vector<1x2x128xf32>
    %94 = vector.shape_cast %93 : vector<1x2x128xf32> to vector<2x128xf32>
    %95 = vector.shape_cast %92 : vector<2x128xf32> to vector<1x2x128xf32>
    tpu.vector_store %arg6[%c0_88, %c0_89, %c0_90], %95 {strides = array<i32>} : memref<1x2x128xf32, #tpu.memory_space<vmem>>, vector<1x2x128xf32>,
    return
  }
  func.func @transform_0(%arg0: i32) -> (i32, i32, i32, i32, i32) {
    %c0_i32 = arith.constant 0 : i32
    %c0_i32_0 = arith.constant 0 : i32
    %c0_i32_1 = arith.constant 0 : i32
    %c0_i32_2 = arith.constant 0 : i32
    %c0_i32_3 = arith.constant 0 : i32
    return %arg0, %c0_i32, %c0_i32_0, %c0_i32_1, %c0_i32_2 : i32, i32, i32, i32, i32
  }
  func.func @transform_1(%arg0: i32) -> (i32, i32) {
    %c0_i32 = arith.constant 0 : i32
    %c0_i32_0 = arith.constant 0 : i32
    %c0_i32_1 = arith.constant 0 : i32
    return %c0_i32, %c0_i32_0 : i32, i32
  }
  func.func @transform_2(%arg0: i32) -> (i32, i32) {
    %c0_i32 = arith.constant 0 : i32
    %c0_i32_0 = arith.constant 0 : i32
    %c0_i32_1 = arith.constant 0 : i32
    return %c0_i32, %c0_i32_0 : i32, i32
  }
  func.func @transform_3(%arg0: i32) -> (i32, i32, i32) {
    %c0_i32 = arith.constant 0 : i32
    %c0_i32_0 = arith.constant 0 : i32
    %c0_i32_1 = arith.constant 0 : i32
    %c0_i32_2 = arith.constant 0 : i32
    return %c0_i32, %c0_i32_0, %c0_i32_1 : i32, i32, i32
  }
  func.func @transform_4(%arg0: i32) -> (i32, i32, i32, i32) {
    %c0_i32 = arith.constant 0 : i32
    %c0_i32_0 = arith.constant 0 : i32
    %c0_i32_1 = arith.constant 0 : i32
    %c0_i32_2 = arith.constant 0 : i32
    return %arg0, %c0_i32, %c0_i32_0, %c0_i32_1 : i32, i32, i32, i32
  }
  func.func @transform_5(%arg0: i32) -> (i32, i32, i32) {
    %c0_i32 = arith.constant 0 : i32
    %c0_i32_0 = arith.constant 0 : i32
    %c0_i32_1 = arith.constant 0 : i32
    return %arg0, %c0_i32, %c0_i32_0 : i32, i32, i32
  }
}

module attributes {stable_mosaic.version = 11 : i64} {
  func.func @final_proj_kernel(%arg0: i32, %arg1: memref<128x128xf32, #tpu.memory_space<vmem>>, %arg2: memref<128x128xf32, #tpu.memory_space<vmem>>, %arg3: memref<1x128xf32, #tpu.memory_space<vmem>>, %arg4: memref<1x128xf32, #tpu.memory_space<vmem>>, %arg5: memref<1x128xf32, #tpu.memory_space<vmem>>, %arg6: memref<1x128xf32, #tpu.memory_space<vmem>>, %arg7: memref<128x128xf32, #tpu.memory_space<vmem>>) attributes {dimension_semantics = [#tpu.dimension_semantics<parallel>], iteration_bounds = array<i64: 1>, scalar_prefetch = 0 : i64, scratch_operands = 0 : i64, tpu.core_type = #tpu.core_type<tc>, window_params = [{transform_indices = @transform_0, window_bounds = array<i64: 128, 128>}, {transform_indices = @transform_1, window_bounds = array<i64: 128, 128>}, {pipeline_mode = #tpu.pipeline_mode<synchronous>, transform_indices = @transform_2, window_bounds = array<i64: 1, 128>}, {pipeline_mode = #tpu.pipeline_mode<synchronous>, transform_indices = @transform_3, window_bounds = array<i64: 1, 128>}, {pipeline_mode = #tpu.pipeline_mode<synchronous>, transform_indices = @transform_4, window_bounds = array<i64: 1, 128>}, {pipeline_mode = #tpu.pipeline_mode<synchronous>, transform_indices = @transform_5, window_bounds = array<i64: 1, 128>}, {transform_indices = @transform_6, window_bounds = array<i64: 128, 128>}]} {
    %c0 = arith.constant 0 : index
    %c0_0 = arith.constant 0 : index
    %0 = vector.load %arg1[%c0, %c0_0] : memref<128x128xf32, #tpu.memory_space<vmem>>, vector<128x128xf32>
    %c0_1 = arith.constant 0 : index
    %c0_2 = arith.constant 0 : index
    %1 = vector.load %arg3[%c0_1, %c0_2] : memref<1x128xf32, #tpu.memory_space<vmem>>, vector<1x128xf32>
    %2 = vector.broadcast %1 : vector<1x128xf32> to vector<128x128xf32>
    %3 = arith.mulf %0, %2 : vector<128x128xf32>
    %c0_3 = arith.constant 0 : index
    %c0_4 = arith.constant 0 : index
    %4 = vector.load %arg4[%c0_3, %c0_4] : memref<1x128xf32, #tpu.memory_space<vmem>>, vector<1x128xf32>
    %5 = vector.broadcast %4 : vector<1x128xf32> to vector<128x128xf32>
    %6 = arith.addf %3, %5 : vector<128x128xf32>
    %cst = arith.constant 0.000000e+00 : f32
    %7 = vector.broadcast %cst : f32 to vector<128x128xf32>
    %8 = arith.maximumf %6, %7 : vector<128x128xf32>
    %c0_5 = arith.constant 0 : index
    %c0_6 = arith.constant 0 : index
    %9 = vector.load %arg2[%c0_5, %c0_6] : memref<128x128xf32, #tpu.memory_space<vmem>>, vector<128x128xf32>
    %c0_7 = arith.constant 0 : index
    %c0_8 = arith.constant 0 : index
    %10 = vector.load %arg5[%c0_7, %c0_8] : memref<1x128xf32, #tpu.memory_space<vmem>>, vector<1x128xf32>
    %11 = vector.broadcast %10 : vector<1x128xf32> to vector<128x128xf32>
    %12 = arith.mulf %9, %11 : vector<128x128xf32>
    %c0_9 = arith.constant 0 : index
    %c0_10 = arith.constant 0 : index
    %13 = vector.load %arg6[%c0_9, %c0_10] : memref<1x128xf32, #tpu.memory_space<vmem>>, vector<1x128xf32>
    %14 = vector.broadcast %13 : vector<1x128xf32> to vector<128x128xf32>
    %15 = arith.addf %12, %14 : vector<128x128xf32>
    %16 = arith.addf %8, %15 : vector<128x128xf32>
    %cst_11 = arith.constant 0.000000e+00 : f32
    %17 = vector.broadcast %cst_11 : f32 to vector<128x128xf32>
    %18 = arith.maximumf %16, %17 : vector<128x128xf32>
    %c0_12 = arith.constant 0 : index
    %c0_13 = arith.constant 0 : index
    %19 = vector.load %arg7[%c0_12, %c0_13] : memref<128x128xf32, #tpu.memory_space<vmem>>, vector<128x128xf32>
    tpu.vector_store %arg7[%c0_12, %c0_13], %18 {strides = array<i32>} : memref<128x128xf32, #tpu.memory_space<vmem>>, vector<128x128xf32>,
    return
  }
  func.func @transform_0(%arg0: i32) -> (i32, i32) {
    %c0_i32 = arith.constant 0 : i32
    %c0_i32_0 = arith.constant 0 : i32
    return %arg0, %c0_i32 : i32, i32
  }
  func.func @transform_1(%arg0: i32) -> (i32, i32) {
    %c0_i32 = arith.constant 0 : i32
    %c0_i32_0 = arith.constant 0 : i32
    return %arg0, %c0_i32 : i32, i32
  }
  func.func @transform_2(%arg0: i32) -> (i32, i32) {
    %c0_i32 = arith.constant 0 : i32
    %c0_i32_0 = arith.constant 0 : i32
    %c0_i32_1 = arith.constant 0 : i32
    return %c0_i32, %c0_i32_0 : i32, i32
  }
  func.func @transform_3(%arg0: i32) -> (i32, i32) {
    %c0_i32 = arith.constant 0 : i32
    %c0_i32_0 = arith.constant 0 : i32
    %c0_i32_1 = arith.constant 0 : i32
    return %c0_i32, %c0_i32_0 : i32, i32
  }
  func.func @transform_4(%arg0: i32) -> (i32, i32) {
    %c0_i32 = arith.constant 0 : i32
    %c0_i32_0 = arith.constant 0 : i32
    %c0_i32_1 = arith.constant 0 : i32
    return %c0_i32, %c0_i32_0 : i32, i32
  }
  func.func @transform_5(%arg0: i32) -> (i32, i32) {
    %c0_i32 = arith.constant 0 : i32
    %c0_i32_0 = arith.constant 0 : i32
    %c0_i32_1 = arith.constant 0 : i32
    return %c0_i32, %c0_i32_0 : i32, i32
  }
  func.func @transform_6(%arg0: i32) -> (i32, i32) {
    %c0_i32 = arith.constant 0 : i32
    %c0_i32_0 = arith.constant 0 : i32
    return %arg0, %c0_i32 : i32, i32
  }
}

module attributes {stable_mosaic.version = 11 : i64} {
  func.func @stage3_proj_kernel(%arg0: i32, %arg1: memref<128x128xf32, #tpu.memory_space<vmem>>, %arg2: memref<1x128xf32, #tpu.memory_space<vmem>>, %arg3: memref<1x128xf32, #tpu.memory_space<vmem>>, %arg4: memref<128x128xbf16, #tpu.memory_space<vmem>>, %arg5: memref<128x128xbf16, #tpu.memory_space<vmem>>, %arg6: memref<128x128xbf16, #tpu.memory_space<vmem>>, %arg7: memref<128x128xf32, #tpu.memory_space<vmem>>, %arg8: memref<128x128xf32, #tpu.memory_space<vmem>>, %arg9: memref<1x2x128xf32, #tpu.memory_space<vmem>>, %arg10: memref<1x2x128xf32, #tpu.memory_space<vmem>>) attributes {dimension_semantics = [#tpu.dimension_semantics<parallel>], iteration_bounds = array<i64: 1>, scalar_prefetch = 0 : i64, scratch_operands = 0 : i64, tpu.core_type = #tpu.core_type<tc>, window_params = [{transform_indices = @transform_0, window_bounds = array<i64: 128, 128>}, {pipeline_mode = #tpu.pipeline_mode<synchronous>, transform_indices = @transform_1, window_bounds = array<i64: 1, 128>}, {pipeline_mode = #tpu.pipeline_mode<synchronous>, transform_indices = @transform_2, window_bounds = array<i64: 1, 128>}, {pipeline_mode = #tpu.pipeline_mode<synchronous>, transform_indices = @transform_3, window_bounds = array<i64: 128, 128>}, {transform_indices = @transform_4, window_bounds = array<i64: 128, 128>}, {pipeline_mode = #tpu.pipeline_mode<synchronous>, transform_indices = @transform_5, window_bounds = array<i64: 128, 128>}, {transform_indices = @transform_6, window_bounds = array<i64: 128, 128>}, {transform_indices = @transform_7, window_bounds = array<i64: 128, 128>}, {transform_indices = @transform_8, window_bounds = array<i64: 1, 2, 128>}, {transform_indices = @transform_9, window_bounds = array<i64: 1, 2, 128>}]} {
    %c0 = arith.constant 0 : index
    %c0_0 = arith.constant 0 : index
    %0 = vector.load %arg1[%c0, %c0_0] : memref<128x128xf32, #tpu.memory_space<vmem>>, vector<128x128xf32>
    %c0_1 = arith.constant 0 : index
    %c0_2 = arith.constant 0 : index
    %1 = vector.load %arg2[%c0_1, %c0_2] : memref<1x128xf32, #tpu.memory_space<vmem>>, vector<1x128xf32>
    %2 = vector.broadcast %1 : vector<1x128xf32> to vector<128x128xf32>
    %3 = arith.mulf %0, %2 : vector<128x128xf32>
    %c0_3 = arith.constant 0 : index
    %c0_4 = arith.constant 0 : index
    %4 = vector.load %arg3[%c0_3, %c0_4] : memref<1x128xf32, #tpu.memory_space<vmem>>, vector<1x128xf32>
    %5 = vector.broadcast %4 : vector<1x128xf32> to vector<128x128xf32>
    %6 = arith.addf %3, %5 : vector<128x128xf32>
    %cst = arith.constant 0.000000e+00 : f32
    %7 = vector.broadcast %cst : f32 to vector<128x128xf32>
    %8 = arith.maximumf %6, %7 : vector<128x128xf32>
    %9 = arith.truncf %8 : vector<128x128xf32> to vector<128x128xbf16>
    %c0_5 = arith.constant 0 : index
    %c0_6 = arith.constant 0 : index
    %10 = vector.load %arg4[%c0_5, %c0_6] : memref<128x128xbf16, #tpu.memory_space<vmem>>, vector<128x128xbf16>
    %cst_7 = arith.constant dense<0.000000e+00> : vector<128x128xf32>
    %11 = tpu.matmul %9, %10, %cst_7 {dimension_numbers = #tpu.dot_dimension_numbers<[1], [0], [0], [1], [0, 0, 1, 1], [], []>} : vector<128x128xbf16>, vector<128x128xbf16>, vector<128x128xf32> -> vector<128x128xf32>
    %c0_8 = arith.constant 0 : index
    %c0_9 = arith.constant 0 : index
    %12 = vector.load %arg5[%c0_8, %c0_9] : memref<128x128xbf16, #tpu.memory_space<vmem>>, vector<128x128xbf16>
    %c0_10 = arith.constant 0 : index
    %c0_11 = arith.constant 0 : index
    %13 = vector.load %arg6[%c0_10, %c0_11] : memref<128x128xbf16, #tpu.memory_space<vmem>>, vector<128x128xbf16>
    %cst_12 = arith.constant dense<0.000000e+00> : vector<128x128xf32>
    %14 = tpu.matmul %12, %13, %cst_12 {dimension_numbers = #tpu.dot_dimension_numbers<[1], [0], [0], [1], [0, 0, 1, 1], [], []>} : vector<128x128xbf16>, vector<128x128xbf16>, vector<128x128xf32> -> vector<128x128xf32>
    %c0_13 = arith.constant 0 : index
    %c0_14 = arith.constant 0 : index
    %15 = vector.load %arg7[%c0_13, %c0_14] : memref<128x128xf32, #tpu.memory_space<vmem>>, vector<128x128xf32>
    tpu.vector_store %arg7[%c0_13, %c0_14], %11 {strides = array<i32>} : memref<128x128xf32, #tpu.memory_space<vmem>>, vector<128x128xf32>,
    %c0_15 = arith.constant 0 : index
    %c0_16 = arith.constant 0 : index
    %16 = vector.load %arg8[%c0_15, %c0_16] : memref<128x128xf32, #tpu.memory_space<vmem>>, vector<128x128xf32>
    tpu.vector_store %arg8[%c0_15, %c0_16], %14 {strides = array<i32>} : memref<128x128xf32, #tpu.memory_space<vmem>>, vector<128x128xf32>,
    %cst_17 = arith.constant dense<0.000000e+00> : vector<128xf32>
    %17 = vector.multi_reduction <add>, %11, %cst_17 [0] : vector<128x128xf32> to vector<128xf32>
    %18 = vector.shape_cast %17 : vector<128xf32> to vector<1x128xf32>
    %19 = arith.mulf %11, %11 : vector<128x128xf32>
    %cst_18 = arith.constant dense<0.000000e+00> : vector<128xf32>
    %20 = vector.multi_reduction <add>, %19, %cst_18 [0] : vector<128x128xf32> to vector<128xf32>
    %21 = vector.shape_cast %20 : vector<128xf32> to vector<1x128xf32>
    %22 = tpu.concatenate %18, %21 in 0 : vector<1x128xf32>, vector<1x128xf32> -> vector<2x128xf32>
    %c0_19 = arith.constant 0 : index
    %c0_20 = arith.constant 0 : index
    %c0_21 = arith.constant 0 : index
    %23 = vector.load %arg9[%c0_19, %c0_20, %c0_21] : memref<1x2x128xf32, #tpu.memory_space<vmem>>, vector<1x2x128xf32>
    %24 = vector.shape_cast %23 : vector<1x2x128xf32> to vector<2x128xf32>
    %25 = vector.shape_cast %22 : vector<2x128xf32> to vector<1x2x128xf32>
    tpu.vector_store %arg9[%c0_19, %c0_20, %c0_21], %25 {strides = array<i32>} : memref<1x2x128xf32, #tpu.memory_space<vmem>>, vector<1x2x128xf32>,
    %cst_22 = arith.constant dense<0.000000e+00> : vector<128xf32>
    %26 = vector.multi_reduction <add>, %14, %cst_22 [0] : vector<128x128xf32> to vector<128xf32>
    %27 = vector.shape_cast %26 : vector<128xf32> to vector<1x128xf32>
    %28 = arith.mulf %14, %14 : vector<128x128xf32>
    %cst_23 = arith.constant dense<0.000000e+00> : vector<128xf32>
    %29 = vector.multi_reduction <add>, %28, %cst_23 [0] : vector<128x128xf32> to vector<128xf32>
    %30 = vector.shape_cast %29 : vector<128xf32> to vector<1x128xf32>
    %31 = tpu.concatenate %27, %30 in 0 : vector<1x128xf32>, vector<1x128xf32> -> vector<2x128xf32>
    %c0_24 = arith.constant 0 : index
    %c0_25 = arith.constant 0 : index
    %c0_26 = arith.constant 0 : index
    %32 = vector.load %arg10[%c0_24, %c0_25, %c0_26] : memref<1x2x128xf32, #tpu.memory_space<vmem>>, vector<1x2x128xf32>
    %33 = vector.shape_cast %32 : vector<1x2x128xf32> to vector<2x128xf32>
    %34 = vector.shape_cast %31 : vector<2x128xf32> to vector<1x2x128xf32>
    tpu.vector_store %arg10[%c0_24, %c0_25, %c0_26], %34 {strides = array<i32>} : memref<1x2x128xf32, #tpu.memory_space<vmem>>, vector<1x2x128xf32>,
    return
  }
  func.func @transform_0(%arg0: i32) -> (i32, i32) {
    %c0_i32 = arith.constant 0 : i32
    %c0_i32_0 = arith.constant 0 : i32
    return %arg0, %c0_i32 : i32, i32
  }
  func.func @transform_1(%arg0: i32) -> (i32, i32) {
    %c0_i32 = arith.constant 0 : i32
    %c0_i32_0 = arith.constant 0 : i32
    %c0_i32_1 = arith.constant 0 : i32
    return %c0_i32, %c0_i32_0 : i32, i32
  }
  func.func @transform_2(%arg0: i32) -> (i32, i32) {
    %c0_i32 = arith.constant 0 : i32
    %c0_i32_0 = arith.constant 0 : i32
    %c0_i32_1 = arith.constant 0 : i32
    return %c0_i32, %c0_i32_0 : i32, i32
  }
  func.func @transform_3(%arg0: i32) -> (i32, i32) {
    %c0_i32 = arith.constant 0 : i32
    %c0_i32_0 = arith.constant 0 : i32
    %c0_i32_1 = arith.constant 0 : i32
    return %c0_i32, %c0_i32_0 : i32, i32
  }
  func.func @transform_4(%arg0: i32) -> (i32, i32) {
    %c0_i32 = arith.constant 0 : i32
    %c0_i32_0 = arith.constant 0 : i32
    return %arg0, %c0_i32 : i32, i32
  }
  func.func @transform_5(%arg0: i32) -> (i32, i32) {
    %c0_i32 = arith.constant 0 : i32
    %c0_i32_0 = arith.constant 0 : i32
    %c0_i32_1 = arith.constant 0 : i32
    return %c0_i32, %c0_i32_0 : i32, i32
  }
  func.func @transform_6(%arg0: i32) -> (i32, i32) {
    %c0_i32 = arith.constant 0 : i32
    %c0_i32_0 = arith.constant 0 : i32
    return %arg0, %c0_i32 : i32, i32
  }
  func.func @transform_7(%arg0: i32) -> (i32, i32) {
    %c0_i32 = arith.constant 0 : i32
    %c0_i32_0 = arith.constant 0 : i32
    return %arg0, %c0_i32 : i32, i32
  }
  func.func @transform_8(%arg0: i32) -> (i32, i32, i32) {
    %c0_i32 = arith.constant 0 : i32
    %c0_i32_0 = arith.constant 0 : i32
    %c0_i32_1 = arith.constant 0 : i32
    return %arg0, %c0_i32, %c0_i32_0 : i32, i32, i32
  }
  func.func @transform_9(%arg0: i32) -> (i32, i32, i32) {
    %c0_i32 = arith.constant 0 : i32
    %c0_i32_0 = arith.constant 0 : i32
    %c0_i32_1 = arith.constant 0 : i32
    return %arg0, %c0_i32, %c0_i32_0 : i32, i32, i32
  }
}

</mosaic_0001>

<bundles_post_ra>
// kernel: res_bottleneck_block.4
= control target key start
LH: loop header
LB: loop body
LE: loop exit
PB: predicated region body
PF: predicated region fallthrough
CT: control target
= control target key end

     0   :  { %vm889_vm0 = vcmask 1040384   ;;  %s1643_s1 = inlined_call_operand.vmem [shape: bf16[128,128], index: 1, kind: input, shape index: {}]   ;;  %s1644_s0 = inlined_call_operand.vmem [shape: bf16[512,128], index: 0, kind: input, shape index: {}]   ;;  %s1645_s2 = inlined_call_operand.vmem [shape: f32[512,128], index: 2, kind: output, shape index: {0}]   ;;  %s1646_s3 = inlined_call_operand.vmem [shape: f32[1,2,128], index: 3, kind: output, shape index: {1}]  }
   0x1   :  { %v1076_v0 = vld [vmem:[%s1643_s1 + $0x38] sm:$0xff]   ;;  %v1077_v1 = vld [vmem:[%s1643_s1 + $0x30] sm:$0xff]   ;;  %v1078_v2 = vld [vmem:[%s1643_s1 + $0x28] sm:$0xff]  }
   0x2   :  { %980 = vmatprep.subr.bf16.mxu0 %v1076_v0  ;;  %1060 = vmatprep.subr.bf16.mxu1 %v1076_v0  ;;  %v1079_v3 = vld [vmem:[%s1643_s1 + $0x20] sm:$0xff]   ;;  %v1080_v5 = vld [vmem:[%s1643_s1 + $0x18] sm:$0xff]   ;;  %v1081_v6 = vld [vmem:[%s1643_s1 + $0x10] sm:$0xff]  }
   0x3   :  { %981 = vmatpush3.bf16.msra.mxu0 %v1076_v0  ;;  %1068 = vmatpush3.bf16.msra.mxu1 %v1076_v0  ;;  %v1084_v4 = vld [vmem:[%s1644_s0] sm:$0xff]   ;;  %v1082_v7 = vld [vmem:[%s1643_s1 + $0x8] sm:$0xff]   ;;  %v1086_v11 = vld [vmem:[%s1644_s0 + $0x10] sm:$0xff]  }
   0x4   :  { %982 = vmatprep.subr.bf16.mxu0 %v1077_v1  ;;  %1061 = vmatprep.subr.bf16.mxu1 %v1077_v1  ;;  %v1083_v8 = vld [vmem:[%s1643_s1] sm:$0xff]   ;;  %v1085_v10 = vld [vmem:[%s1644_s0 + $0x8] sm:$0xff]   ;;  %v1102_v13 = vld [vmem:[%s1644_s0 + $0x90] sm:$0xff]  }
   0x5   :  { %996 = vmatprep.mubr.bf16.mxu0 %v1084_v4  ;;  %v1100_v9 = vld [vmem:[%s1644_s0 + $0x80] sm:$0xff]   ;;  %v1101_v12 = vld [vmem:[%s1644_s0 + $0x88] sm:$0xff]   ;;  %v1087_v14 = vld [vmem:[%s1644_s0 + $0x18] sm:$0xff]  }
   0x6   :  { %1028 = vmatprep.mubr.bf16.mxu1 %v1100_v9  ;;  %v1088_v15 = vld [vmem:[%s1644_s0 + $0x20] sm:$0xff]   ;;  %v1103_v16 = vld [vmem:[%s1644_s0 + $0x98] sm:$0xff]   ;;  %v1089_v18 = vld [vmem:[%s1644_s0 + $0x28] sm:$0xff]  }
   0x7   :  { %983 = vmatpush3.bf16.msra.mxu0 %v1077_v1  ;;  %1069 = vmatpush3.bf16.msra.mxu1 %v1077_v1  ;;  %v1104_v17 = vld [vmem:[%s1644_s0 + $0xa0] sm:$0xff]   ;;  %v1105_v19 = vld [vmem:[%s1644_s0 + $0xa8] sm:$0xff]   ;;  %v1090_v20 = vld [vmem:[%s1644_s0 + $0x30] sm:$0xff]  }
   0x8   :  { %984 = vmatprep.subr.bf16.mxu0 %v1078_v2  ;;  %1062 = vmatprep.subr.bf16.mxu1 %v1078_v2  ;;  %v1106_v21 = vld [vmem:[%s1644_s0 + $0xb0] sm:$0xff]   ;;  %v1091_v22 = vld [vmem:[%s1644_s0 + $0x38] sm:$0xff]   ;;  %v1092_v24 = vld [vmem:[%s1644_s0 + $0x40] sm:$0xff]  }
   0x9   :  { %v1107_v23 = vld [vmem:[%s1644_s0 + $0xb8] sm:$0xff]   ;;  %v1108_v25 = vld [vmem:[%s1644_s0 + $0xc0] sm:$0xff]   ;;  %v1093_v26 = vld [vmem:[%s1644_s0 + $0x48] sm:$0xff]  }
   0xa   :  { %v1109_v27 = vld [vmem:[%s1644_s0 + $0xc8] sm:$0xff]   ;;  %v1094_v28 = vld [vmem:[%s1644_s0 + $0x50] sm:$0xff]   ;;  %v1095_v30 = vld [vmem:[%s1644_s0 + $0x58] sm:$0xff]  }
   0xb   :  { %985 = vmatpush3.bf16.msra.mxu0 %v1078_v2  ;;  %1070 = vmatpush3.bf16.msra.mxu1 %v1078_v2  ;;  %v1110_v29 = vld [vmem:[%s1644_s0 + $0xd0] sm:$0xff]   ;;  %v1111_v31 = vld [vmem:[%s1644_s0 + $0xd8] sm:$0xff]   ;;  %v1096_v32 = vld [vmem:[%s1644_s0 + $0x60] sm:$0xff]  }
   0xc   :  { %986 = vmatprep.subr.bf16.mxu0 %v1079_v3  ;;  %1063 = vmatprep.subr.bf16.mxu1 %v1079_v3  ;;  %v1112_v33 = vld [vmem:[%s1644_s0 + $0xe0] sm:$0xff]   ;;  %v1097_v34 = vld [vmem:[%s1644_s0 + $0x68] sm:$0xff]   ;;  %v1098_v36 = vld [vmem:[%s1644_s0 + $0x70] sm:$0xff]  }
   0xd   :  { %v1113_v35 = vld [vmem:[%s1644_s0 + $0xe8] sm:$0xff]   ;;  %v1114_v37 = vld [vmem:[%s1644_s0 + $0xf0] sm:$0xff]   ;;  %v1099_v38 = vld [vmem:[%s1644_s0 + $0x78] sm:$0xff]  }
   0xe   :  { %v1115_v39 = vld [vmem:[%s1644_s0 + $0xf8] sm:$0xff]  }
   0xf   :  { %987 = vmatpush3.bf16.msra.mxu0 %v1079_v3  ;;  %1071 = vmatpush3.bf16.msra.mxu1 %v1079_v3 }
  0x10   :  { %988 = vmatprep.subr.bf16.mxu0 %v1080_v5  ;;  %1064 = vmatprep.subr.bf16.mxu1 %v1080_v5 }
  0x13   :  { %989 = vmatpush3.bf16.msra.mxu0 %v1080_v5  ;;  %1072 = vmatpush3.bf16.msra.mxu1 %v1080_v5 }
  0x14   :  { %990 = vmatprep.subr.bf16.mxu0 %v1081_v6  ;;  %1065 = vmatprep.subr.bf16.mxu1 %v1081_v6 }
  0x17   :  { %991 = vmatpush3.bf16.msra.mxu0 %v1081_v6  ;;  %1073 = vmatpush3.bf16.msra.mxu1 %v1081_v6 }
  0x18   :  { %992 = vmatprep.subr.bf16.mxu0 %v1082_v7  ;;  %1066 = vmatprep.subr.bf16.mxu1 %v1082_v7 }
  0x1b   :  { %993 = vmatpush3.bf16.msra.mxu0 %v1082_v7  ;;  %1074 = vmatpush3.bf16.msra.mxu1 %v1082_v7 }
  0x1c   :  { %994 = vmatprep.subr.bf16.mxu0 %v1083_v8  ;;  %1067 = vmatprep.subr.bf16.mxu1 %v1083_v8 }
  0x1f   :  { %995 = vmatpush3.bf16.msra.mxu0 %v1083_v8  ;;  %1075 = vmatpush3.bf16.msra.mxu1 %v1083_v8 }
  0x22   :  { %997 = vmatmul.mubr.bf16.vlgmr.msra.gmra.mxu0 %v1085_v10  ;;  %1029 = vmatmul.mubr.bf16.vlgmr.msra.gmra.mxu1 %v1101_v12 }
  0x23   :  { %1000 = vmatprep.mubr.bf16.mxu0 %v1086_v11  ;;  %1032 = vmatprep.mubr.bf16.mxu1 %v1102_v13 }
  0x2a   :  { %1001 = vmatmul.mubr.bf16.gmra.mxu0 %v1087_v14  ;;  %1033 = vmatmul.mubr.bf16.gmra.mxu1 %v1103_v16 }
  0x2b   :  { %1004 = vmatprep.mubr.bf16.mxu0 %v1088_v15  ;;  %1036 = vmatprep.mubr.bf16.mxu1 %v1104_v17 }
  0x32   :  { %1005 = vmatmul.mubr.bf16.gmra.mxu0 %v1089_v18  ;;  %1037 = vmatmul.mubr.bf16.gmra.mxu1 %v1105_v19 }
  0x33   :  { %1008 = vmatprep.mubr.bf16.mxu0 %v1090_v20  ;;  %1040 = vmatprep.mubr.bf16.mxu1 %v1106_v21 }
  0x3a   :  { %1009 = vmatmul.mubr.bf16.gmra.mxu0 %v1091_v22  ;;  %1041 = vmatmul.mubr.bf16.gmra.mxu1 %v1107_v23 }
  0x3b   :  { %1012 = vmatprep.mubr.bf16.mxu0 %v1092_v24  ;;  %1044 = vmatprep.mubr.bf16.mxu1 %v1108_v25 }
  0x42   :  { %1013 = vmatmul.mubr.bf16.gmra.mxu0 %v1093_v26  ;;  %1045 = vmatmul.mubr.bf16.gmra.mxu1 %v1109_v27 }
  0x43   :  { %1016 = vmatprep.mubr.bf16.mxu0 %v1094_v28  ;;  %1048 = vmatprep.mubr.bf16.mxu1 %v1110_v29 }
  0x4a   :  { %1017 = vmatmul.mubr.bf16.gmra.mxu0 %v1095_v30  ;;  %1049 = vmatmul.mubr.bf16.gmra.mxu1 %v1111_v31 }
  0x4b   :  { %1020 = vmatprep.mubr.bf16.mxu0 %v1096_v32  ;;  %1052 = vmatprep.mubr.bf16.mxu1 %v1112_v33 }
  0x52   :  { %1021 = vmatmul.mubr.bf16.gmra.mxu0 %v1097_v34  ;;  %1053 = vmatmul.mubr.bf16.gmra.mxu1 %v1113_v35 }
  0x53   :  { %1024 = vmatprep.mubr.bf16.mxu0 %v1098_v36  ;;  %1056 = vmatprep.mubr.bf16.mxu1 %v1114_v37 }
  0x5a   :  { %1025 = vmatmul.mubr.bf16.gmra.mxu0 %v1099_v38  ;;  %1057 = vmatmul.mubr.bf16.gmra.mxu1 %v1115_v39 }
  0xe2   :  { %v998_v40 = vpop.f32.mrf.mxu0  ;;  %v1256_v41 = vpop.f32.mrf.mxu1 }
  0xe3   :  { %625 = vst [vmem:[%s1645_s2 + $0x10] sm:$0xff] %v998_v40  ;;  %657 = vst [vmem:[%s1645_s2 + $0x110] sm:$0xff] %v1256_v41  ;;  %v758_v53 = vmul.f32 %v998_v40, %v998_v40 }
  0xe4   :  { %v368_v42 = vpop.f32.mrf.mxu0  ;;  %v1265_v43 = vpop.f32.mrf.mxu1 }
  0xe5   :  { %623 = vst [vmem:[%s1645_s2] sm:$0xff] %v368_v42  ;;  %655 = vst [vmem:[%s1645_s2 + $0x100] sm:$0xff] %v1265_v43  ;;  %v756_v48 = vmul.f32 %v368_v42, %v368_v42 }
  0xe6   :  { %v999_v44 = vpop.f32.mrf.mxu0  ;;  %v1274_v45 = vpop.f32.mrf.mxu1 }
  0xe7   :  { %626 = vst [vmem:[%s1645_s2 + $0x18] sm:$0xff] %v999_v44  ;;  %658 = vst [vmem:[%s1645_s2 + $0x118] sm:$0xff] %v1274_v45  ;;  %v759_v58 = vmul.f32 %v999_v44, %v999_v44 }
  0xe8   :  { %v371_v46 = vpop.f32.mrf.mxu0  ;;  %v1283_v47 = vpop.f32.mrf.mxu1 }
  0xe9   :  { %624 = vst [vmem:[%s1645_s2 + $0x8] sm:$0xff] %v371_v46  ;;  %v687_v49 = vadd.f32 %v371_v46, %v368_v42  ;;  %v757_v50 = vmul.f32 %v371_v46, %v371_v46  ;;  %656 = vst [vmem:[%s1645_s2 + $0x108] sm:$0xff] %v1283_v47 }
  0xea   :  { %v1002_v51 = vpop.f32.mrf.mxu0  ;;  %v1292_v52 = vpop.f32.mrf.mxu1 }
  0xeb   :  { %v688_v54 = vadd.f32 %v998_v40, %v687_v49  ;;  %v820_v55 = vadd.f32 %v757_v50, %v756_v48  ;;  %629 = vst [vmem:[%s1645_s2 + $0x30] sm:$0xff] %v1002_v51  ;;  %661 = vst [vmem:[%s1645_s2 + $0x130] sm:$0xff] %v1292_v52  ;;  %v762_v9 = vmul.f32 %v1002_v51, %v1002_v51 }
  0xec   :  { %v384_v56 = vpop.f32.mrf.mxu0  ;;  %v1301_v57 = vpop.f32.mrf.mxu1 }
  0xed   :  { %v821_v59 = vadd.f32 %v820_v55, %v758_v53  ;;  %627 = vst [vmem:[%s1645_s2 + $0x20] sm:$0xff] %v384_v56  ;;  %v689_v60 = vadd.f32 %v999_v44, %v688_v54  ;;  %659 = vst [vmem:[%s1645_s2 + $0x120] sm:$0xff] %v1301_v57  ;;  %v760_v0 = vmul.f32 %v384_v56, %v384_v56 }
  0xee   :  { %v1003_v61 = vpop.f32.mrf.mxu0  ;;  %v1310_v62 = vpop.f32.mrf.mxu1 }
  0xef   :  { %v690_v63 = vadd.f32 %v689_v60, %v384_v56  ;;  %v822_v1 = vadd.f32 %v821_v59, %v759_v58  ;;  %630 = vst [vmem:[%s1645_s2 + $0x38] sm:$0xff] %v1003_v61  ;;  %662 = vst [vmem:[%s1645_s2 + $0x138] sm:$0xff] %v1310_v62  ;;  %v763_v14 = vmul.f32 %v1003_v61, %v1003_v61 }
  0xf0   :  { %v387_v2 = vpop.f32.mrf.mxu0  ;;  %v1319_v3 = vpop.f32.mrf.mxu1 }
  0xf1   :  { %v823_v4 = vadd.f32 %v822_v1, %v760_v0  ;;  %628 = vst [vmem:[%s1645_s2 + $0x28] sm:$0xff] %v387_v2  ;;  %v691_v5 = vadd.f32 %v690_v63, %v387_v2  ;;  %v761_v6 = vmul.f32 %v387_v2, %v387_v2  ;;  %660 = vst [vmem:[%s1645_s2 + $0x128] sm:$0xff] %v1319_v3 }
  0xf2   :  { %v1006_v7 = vpop.f32.mrf.mxu0  ;;  %v1328_v8 = vpop.f32.mrf.mxu1 }
  0xf3   :  { %v692_v10 = vadd.f32 %v1002_v51, %v691_v5  ;;  %v824_v11 = vadd.f32 %v823_v4, %v761_v6  ;;  %633 = vst [vmem:[%s1645_s2 + $0x50] sm:$0xff] %v1006_v7  ;;  %665 = vst [vmem:[%s1645_s2 + $0x150] sm:$0xff] %v1328_v8  ;;  %v766_v29 = vmul.f32 %v1006_v7, %v1006_v7 }
  0xf4   :  { %v400_v12 = vpop.f32.mrf.mxu0  ;;  %v1337_v13 = vpop.f32.mrf.mxu1 }
  0xf5   :  { %v825_v15 = vadd.f32 %v824_v11, %v762_v9  ;;  %631 = vst [vmem:[%s1645_s2 + $0x40] sm:$0xff] %v400_v12  ;;  %v693_v16 = vadd.f32 %v1003_v61, %v692_v10  ;;  %663 = vst [vmem:[%s1645_s2 + $0x140] sm:$0xff] %v1337_v13  ;;  %v764_v20 = vmul.f32 %v400_v12, %v400_v12 }
  0xf6   :  { %v1007_v17 = vpop.f32.mrf.mxu0  ;;  %v1346_v18 = vpop.f32.mrf.mxu1 }
  0xf7   :  { %v694_v19 = vadd.f32 %v693_v16, %v400_v12  ;;  %v826_v21 = vadd.f32 %v825_v15, %v763_v14  ;;  %634 = vst [vmem:[%s1645_s2 + $0x58] sm:$0xff] %v1007_v17  ;;  %666 = vst [vmem:[%s1645_s2 + $0x158] sm:$0xff] %v1346_v18  ;;  %v767_v34 = vmul.f32 %v1007_v17, %v1007_v17 }
  0xf8   :  { %v403_v22 = vpop.f32.mrf.mxu0  ;;  %v1355_v23 = vpop.f32.mrf.mxu1 }
  0xf9   :  { %v827_v24 = vadd.f32 %v826_v21, %v764_v20  ;;  %632 = vst [vmem:[%s1645_s2 + $0x48] sm:$0xff] %v403_v22  ;;  %v695_v25 = vadd.f32 %v694_v19, %v403_v22  ;;  %v765_v26 = vmul.f32 %v403_v22, %v403_v22  ;;  %664 = vst [vmem:[%s1645_s2 + $0x148] sm:$0xff] %v1355_v23 }
  0xfa   :  { %v1010_v27 = vpop.f32.mrf.mxu0  ;;  %v1364_v28 = vpop.f32.mrf.mxu1 }
  0xfb   :  { %v696_v30 = vadd.f32 %v1006_v7, %v695_v25  ;;  %v828_v31 = vadd.f32 %v827_v24, %v765_v26  ;;  %637 = vst [vmem:[%s1645_s2 + $0x70] sm:$0xff] %v1010_v27  ;;  %669 = vst [vmem:[%s1645_s2 + $0x170] sm:$0xff] %v1364_v28  ;;  %v770_v54 = vmul.f32 %v1010_v27, %v1010_v27 }
  0xfc   :  { %v416_v32 = vpop.f32.mrf.mxu0  ;;  %v1373_v33 = vpop.f32.mrf.mxu1 }
  0xfd   :  { %v829_v35 = vadd.f32 %v828_v31, %v766_v29  ;;  %635 = vst [vmem:[%s1645_s2 + $0x60] sm:$0xff] %v416_v32  ;;  %v697_v36 = vadd.f32 %v1007_v17, %v696_v30  ;;  %667 = vst [vmem:[%s1645_s2 + $0x160] sm:$0xff] %v1373_v33  ;;  %v768_v40 = vmul.f32 %v416_v32, %v416_v32 }
  0xfe   :  { %v1011_v37 = vpop.f32.mrf.mxu0  ;;  %v1382_v38 = vpop.f32.mrf.mxu1 }
  0xff   :  { %v698_v39 = vadd.f32 %v697_v36, %v416_v32  ;;  %v830_v42 = vadd.f32 %v829_v35, %v767_v34  ;;  %638 = vst [vmem:[%s1645_s2 + $0x78] sm:$0xff] %v1011_v37  ;;  %670 = vst [vmem:[%s1645_s2 + $0x178] sm:$0xff] %v1382_v38  ;;  %v771_v60 = vmul.f32 %v1011_v37, %v1011_v37 }
 0x100   :  { %v419_v44 = vpop.f32.mrf.mxu0  ;;  %v1391_v46 = vpop.f32.mrf.mxu1 }
 0x101   :  { %v831_v48 = vadd.f32 %v830_v42, %v768_v40  ;;  %636 = vst [vmem:[%s1645_s2 + $0x68] sm:$0xff] %v419_v44  ;;  %v699_v49 = vadd.f32 %v698_v39, %v419_v44  ;;  %v769_v50 = vmul.f32 %v419_v44, %v419_v44  ;;  %668 = vst [vmem:[%s1645_s2 + $0x168] sm:$0xff] %v1391_v46 }
 0x102   :  { %v1014_v51 = vpop.f32.mrf.mxu0  ;;  %v1400_v53 = vpop.f32.mrf.mxu1 }
 0x103   :  { %v700_v55 = vadd.f32 %v1010_v27, %v699_v49  ;;  %v832_v56 = vadd.f32 %v831_v48, %v769_v50  ;;  %641 = vst [vmem:[%s1645_s2 + $0x90] sm:$0xff] %v1014_v51  ;;  %673 = vst [vmem:[%s1645_s2 + $0x190] sm:$0xff] %v1400_v53  ;;  %v774_v15 = vmul.f32 %v1014_v51, %v1014_v51 }
 0x104   :  { %v432_v58 = vpop.f32.mrf.mxu0  ;;  %v1409_v59 = vpop.f32.mrf.mxu1 }
 0x105   :  { %v833_v61 = vadd.f32 %v832_v56, %v770_v54  ;;  %639 = vst [vmem:[%s1645_s2 + $0x80] sm:$0xff] %v432_v58  ;;  %v701_v63 = vadd.f32 %v1011_v37, %v700_v55  ;;  %671 = vst [vmem:[%s1645_s2 + $0x180] sm:$0xff] %v1409_v59  ;;  %v772_v4 = vmul.f32 %v432_v58, %v432_v58 }
 0x106   :  { %v1015_v0 = vpop.f32.mrf.mxu0  ;;  %v1418_v1 = vpop.f32.mrf.mxu1 }
 0x107   :  { %v702_v2 = vadd.f32 %v701_v63, %v432_v58  ;;  %v834_v5 = vadd.f32 %v833_v61, %v771_v60  ;;  %642 = vst [vmem:[%s1645_s2 + $0x98] sm:$0xff] %v1015_v0  ;;  %674 = vst [vmem:[%s1645_s2 + $0x198] sm:$0xff] %v1418_v1  ;;  %v775_v21 = vmul.f32 %v1015_v0, %v1015_v0 }
 0x108   :  { %v435_v6 = vpop.f32.mrf.mxu0  ;;  %v1427_v7 = vpop.f32.mrf.mxu1 }
 0x109   :  { %v835_v9 = vadd.f32 %v834_v5, %v772_v4  ;;  %640 = vst [vmem:[%s1645_s2 + $0x88] sm:$0xff] %v435_v6  ;;  %v703_v10 = vadd.f32 %v702_v2, %v435_v6  ;;  %v773_v11 = vmul.f32 %v435_v6, %v435_v6  ;;  %672 = vst [vmem:[%s1645_s2 + $0x188] sm:$0xff] %v1427_v7 }
 0x10a   :  { %v1018_v12 = vpop.f32.mrf.mxu0  ;;  %v1436_v14 = vpop.f32.mrf.mxu1 }
 0x10b   :  { %v704_v16 = vadd.f32 %v1014_v51, %v703_v10  ;;  %v836_v17 = vadd.f32 %v835_v9, %v773_v11  ;;  %645 = vst [vmem:[%s1645_s2 + $0xb0] sm:$0xff] %v1018_v12  ;;  %677 = vst [vmem:[%s1645_s2 + $0x1b0] sm:$0xff] %v1436_v14  ;;  %v778_v40 = vmul.f32 %v1018_v12, %v1018_v12 }
 0x10c   :  { %v448_v19 = vpop.f32.mrf.mxu0  ;;  %v1445_v20 = vpop.f32.mrf.mxu1 }
 0x10d   :  { %v837_v22 = vadd.f32 %v836_v17, %v774_v15  ;;  %643 = vst [vmem:[%s1645_s2 + $0xa0] sm:$0xff] %v448_v19  ;;  %v705_v24 = vadd.f32 %v1015_v0, %v704_v16  ;;  %675 = vst [vmem:[%s1645_s2 + $0x1a0] sm:$0xff] %v1445_v20  ;;  %v776_v29 = vmul.f32 %v448_v19, %v448_v19 }
 0x10e   :  { %v1019_v25 = vpop.f32.mrf.mxu0  ;;  %v1454_v26 = vpop.f32.mrf.mxu1 }
 0x10f   :  { %v706_v27 = vadd.f32 %v705_v24, %v448_v19  ;;  %v838_v30 = vadd.f32 %v837_v22, %v775_v21  ;;  %646 = vst [vmem:[%s1645_s2 + $0xb8] sm:$0xff] %v1019_v25  ;;  %678 = vst [vmem:[%s1645_s2 + $0x1b8] sm:$0xff] %v1454_v26  ;;  %v779_v50 = vmul.f32 %v1019_v25, %v1019_v25 }
 0x110   :  { %v451_v31 = vpop.f32.mrf.mxu0  ;;  %v1463_v32 = vpop.f32.mrf.mxu1 }
 0x111   :  { %v839_v34 = vadd.f32 %v838_v30, %v776_v29  ;;  %644 = vst [vmem:[%s1645_s2 + $0xa8] sm:$0xff] %v451_v31  ;;  %v707_v35 = vadd.f32 %v706_v27, %v451_v31  ;;  %v777_v36 = vmul.f32 %v451_v31, %v451_v31  ;;  %676 = vst [vmem:[%s1645_s2 + $0x1a8] sm:$0xff] %v1463_v32 }
 0x112   :  { %v1022_v37 = vpop.f32.mrf.mxu0  ;;  %v1472_v39 = vpop.f32.mrf.mxu1 }
 0x113   :  { %v708_v42 = vadd.f32 %v1018_v12, %v707_v35  ;;  %v840_v44 = vadd.f32 %v839_v34, %v777_v36  ;;  %649 = vst [vmem:[%s1645_s2 + $0xd0] sm:$0xff] %v1022_v37  ;;  %681 = vst [vmem:[%s1645_s2 + $0x1d0] sm:$0xff] %v1472_v39  ;;  %v782_v10 = vmul.f32 %v1022_v37, %v1022_v37 }
 0x114   :  { %v464_v48 = vpop.f32.mrf.mxu0  ;;  %v1481_v49 = vpop.f32.mrf.mxu1 }
 0x115   :  { %v841_v51 = vadd.f32 %v840_v44, %v778_v40  ;;  %647 = vst [vmem:[%s1645_s2 + $0xc0] sm:$0xff] %v464_v48  ;;  %v709_v54 = vadd.f32 %v1019_v25, %v708_v42  ;;  %679 = vst [vmem:[%s1645_s2 + $0x1c0] sm:$0xff] %v1481_v49  ;;  %v780_v60 = vmul.f32 %v464_v48, %v464_v48 }
 0x116   :  { %v1023_v55 = vpop.f32.mrf.mxu0  ;;  %v1490_v56 = vpop.f32.mrf.mxu1 }
 0x117   :  { %v710_v58 = vadd.f32 %v709_v54, %v464_v48  ;;  %v842_v61 = vadd.f32 %v841_v51, %v779_v50  ;;  %650 = vst [vmem:[%s1645_s2 + $0xd8] sm:$0xff] %v1023_v55  ;;  %682 = vst [vmem:[%s1645_s2 + $0x1d8] sm:$0xff] %v1490_v56  ;;  %v783_v17 = vmul.f32 %v1023_v55, %v1023_v55 }
 0x118   :  { %v467_v63 = vpop.f32.mrf.mxu0  ;;  %v1499_v0 = vpop.f32.mrf.mxu1  ;;  %v788_v51 = vmul.f32 %v1265_v43, %v1265_v43 }
 0x119   :  { %v843_v2 = vadd.f32 %v842_v61, %v780_v60  ;;  %648 = vst [vmem:[%s1645_s2 + $0xc8] sm:$0xff] %v467_v63  ;;  %v711_v4 = vadd.f32 %v710_v58, %v467_v63  ;;  %v781_v5 = vmul.f32 %v467_v63, %v467_v63  ;;  %680 = vst [vmem:[%s1645_s2 + $0x1c8] sm:$0xff] %v1499_v0 }
 0x11a   :  { %v1026_v6 = vpop.f32.mrf.mxu0  ;;  %v1508_v9 = vpop.f32.mrf.mxu1  ;;  %v789_v60 = vmul.f32 %v1283_v47, %v1283_v47  ;;  %v790_v63 = vmul.f32 %v1256_v41, %v1256_v41 }
 0x11b   :  { %v712_v11 = vadd.f32 %v1022_v37, %v711_v4  ;;  %v844_v12 = vadd.f32 %v843_v2, %v781_v5  ;;  %653 = vst [vmem:[%s1645_s2 + $0xf0] sm:$0xff] %v1026_v6  ;;  %685 = vst [vmem:[%s1645_s2 + $0x1f0] sm:$0xff] %v1508_v9  ;;  %v786_v37 = vmul.f32 %v1026_v6, %v1026_v6 }
 0x11c   :  { %v480_v15 = vpop.f32.mrf.mxu0  ;;  %v1517_v16 = vpop.f32.mrf.mxu1  ;;  %v791_v5 = vmul.f32 %v1274_v45, %v1274_v45 }
 0x11d   :  { %v845_v19 = vadd.f32 %v844_v12, %v782_v10  ;;  %651 = vst [vmem:[%s1645_s2 + $0xe0] sm:$0xff] %v480_v15  ;;  %v713_v21 = vadd.f32 %v1023_v55, %v712_v11  ;;  %683 = vst [vmem:[%s1645_s2 + $0x1e0] sm:$0xff] %v1517_v16  ;;  %v784_v27 = vmul.f32 %v480_v15, %v480_v15 }
 0x11e   :  { %v1027_v22 = vpop.f32.mrf.mxu0  ;;  %v1526_v24 = vpop.f32.mrf.mxu1  ;;  %v792_v11 = vmul.f32 %v1301_v57, %v1301_v57 }
 0x11f   :  { %v714_v25 = vadd.f32 %v713_v21, %v480_v15  ;;  %v846_v29 = vadd.f32 %v845_v19, %v783_v17  ;;  %654 = vst [vmem:[%s1645_s2 + $0xf8] sm:$0xff] %v1027_v22  ;;  %686 = vst [vmem:[%s1645_s2 + $0x1f8] sm:$0xff] %v1526_v24  ;;  %v787_v44 = vmul.f32 %v1027_v22, %v1027_v22 }
 0x120   :  { %v483_v30 = vpop.f32.mrf.mxu0  ;;  %v1535_v31 = vpop.f32.mrf.mxu1  ;;  %v793_v17 = vmul.f32 %v1319_v3, %v1319_v3 }
 0x121   :  { %v847_v34 = vadd.f32 %v846_v29, %v784_v27  ;;  %652 = vst [vmem:[%s1645_s2 + $0xe8] sm:$0xff] %v483_v30  ;;  %v715_v35 = vadd.f32 %v714_v25, %v483_v30  ;;  %v785_v36 = vmul.f32 %v483_v30, %v483_v30  ;;  %684 = vst [vmem:[%s1645_s2 + $0x1e8] sm:$0xff] %v1535_v31 }
 0x122   :  { %v796_v27 = vmul.f32 %v1337_v13, %v1337_v13 }
 0x123   :  { %v716_v40 = vadd.f32 %v1026_v6, %v715_v35  ;;  %v848_v42 = vadd.f32 %v847_v34, %v785_v36  ;;  %v797_v34 = vmul.f32 %v1355_v23, %v1355_v23 }
 0x125   :  { %v717_v48 = vadd.f32 %v1027_v22, %v716_v40  ;;  %v849_v50 = vadd.f32 %v848_v42, %v786_v37  ;;  %v800_v42 = vmul.f32 %v1373_v33, %v1373_v33 }
 0x127   :  { %v850_v54 = vadd.f32 %v849_v50, %v787_v44  ;;  %v718_v55 = vadd.f32 %v717_v48, %v1265_v43  ;;  %v801_v50 = vmul.f32 %v1391_v46, %v1391_v46 }
 0x129   :  { %v719_v58 = vadd.f32 %v718_v55, %v1283_v47  ;;  %v851_v61 = vadd.f32 %v850_v54, %v788_v51 }
 0x12b   :  { %v720_v2 = vadd.f32 %v1256_v41, %v719_v58  ;;  %v852_v4 = vadd.f32 %v851_v61, %v789_v60  ;;  %v794_v41 = vmul.f32 %v1292_v52, %v1292_v52  ;;  %v804_v60 = vmul.f32 %v1409_v59, %v1409_v59 }
 0x12d   :  { %v853_v6 = vadd.f32 %v852_v4, %v790_v63  ;;  %v721_v10 = vadd.f32 %v1274_v45, %v720_v2  ;;  %v795_v45 = vmul.f32 %v1310_v62, %v1310_v62  ;;  %v805_v2 = vmul.f32 %v1427_v7, %v1427_v7 }
 0x12f   :  { %v722_v43 = vadd.f32 %v721_v10, %v1301_v57  ;;  %v854_v12 = vadd.f32 %v853_v6, %v791_v5 }
 0x131   :  { %v855_v47 = vadd.f32 %v854_v12, %v792_v11  ;;  %v723_v15 = vadd.f32 %v722_v43, %v1319_v3  ;;  %v808_v43 = vmul.f32 %v1445_v20, %v1445_v20 }
 0x133   :  { %v724_v19 = vadd.f32 %v1292_v52, %v723_v15  ;;  %v856_v21 = vadd.f32 %v855_v47, %v793_v17  ;;  %v798_v52 = vmul.f32 %v1328_v8, %v1328_v8  ;;  %v809_v47 = vmul.f32 %v1463_v32, %v1463_v32 }
 0x135   :  { %v857_v22 = vadd.f32 %v856_v21, %v794_v41  ;;  %v725_v25 = vadd.f32 %v1310_v62, %v724_v19  ;;  %v799_v62 = vmul.f32 %v1346_v18, %v1346_v18  ;;  %v812_v21 = vmul.f32 %v1481_v49, %v1481_v49 }
 0x137   :  { %v726_v57 = vadd.f32 %v725_v25, %v1337_v13  ;;  %v858_v29 = vadd.f32 %v857_v22, %v795_v45  ;;  %v813_v25 = vmul.f32 %v1499_v0, %v1499_v0 }
 0x139   :  { %v859_v30 = vadd.f32 %v858_v29, %v796_v27  ;;  %v727_v3 = vadd.f32 %v726_v57, %v1355_v23 }
 0x13b   :  { %v728_v35 = vadd.f32 %v1328_v8, %v727_v3  ;;  %v860_v36 = vadd.f32 %v859_v30, %v797_v34  ;;  %v802_v8 = vmul.f32 %v1364_v28, %v1364_v28  ;;  %v816_v3 = vmul.f32 %v1517_v16, %v1517_v16 }
 0x13d   :  { %v861_v37 = vadd.f32 %v860_v36, %v798_v52  ;;  %v729_v40 = vadd.f32 %v1346_v18, %v728_v35  ;;  %v803_v18 = vmul.f32 %v1382_v38, %v1382_v38  ;;  %v817_v35 = vmul.f32 %v1535_v31, %v1535_v31 }
 0x13f   :  { %v730_v13 = vadd.f32 %v729_v40, %v1373_v33  ;;  %v862_v44 = vadd.f32 %v861_v37, %v799_v62 }
 0x141   :  { %v863_v48 = vadd.f32 %v862_v44, %v800_v42  ;;  %v731_v23 = vadd.f32 %v730_v13, %v1391_v46 }
 0x143   :  { %v732_v51 = vadd.f32 %v1364_v28, %v731_v23  ;;  %v864_v54 = vadd.f32 %v863_v48, %v801_v50  ;;  %v806_v28 = vmul.f32 %v1400_v53, %v1400_v53 }
 0x145   :  { %v865_v55 = vadd.f32 %v864_v54, %v802_v8  ;;  %v733_v58 = vadd.f32 %v1382_v38, %v732_v51  ;;  %v807_v38 = vmul.f32 %v1418_v1, %v1418_v1 }
 0x147   :  { %v734_v33 = vadd.f32 %v733_v58, %v1409_v59  ;;  %v866_v61 = vadd.f32 %v865_v55, %v803_v18 }
 0x149   :  { %v867_v63 = vadd.f32 %v866_v61, %v804_v60  ;;  %v735_v46 = vadd.f32 %v734_v33, %v1427_v7 }
 0x14b   :  { %v736_v4 = vadd.f32 %v1400_v53, %v735_v46  ;;  %v868_v5 = vadd.f32 %v867_v63, %v805_v2  ;;  %v810_v53 = vmul.f32 %v1436_v14, %v1436_v14 }
 0x14d   :  { %v869_v6 = vadd.f32 %v868_v5, %v806_v28  ;;  %v737_v10 = vadd.f32 %v1418_v1, %v736_v4  ;;  %v811_v1 = vmul.f32 %v1454_v26, %v1454_v26 }
 0x14f   :  { %v738_v59 = vadd.f32 %v737_v10, %v1445_v20  ;;  %v870_v11 = vadd.f32 %v869_v6, %v807_v38 }
 0x151   :  { %v871_v12 = vadd.f32 %v870_v11, %v808_v43  ;;  %v739_v7 = vadd.f32 %v738_v59, %v1463_v32 }
 0x153   :  { %v740_v15 = vadd.f32 %v1436_v14, %v739_v7  ;;  %v872_v17 = vadd.f32 %v871_v12, %v809_v47  ;;  %v814_v14 = vmul.f32 %v1472_v39, %v1472_v39 }
 0x155   :  { %v873_v41 = vadd.f32 %v872_v17, %v810_v53  ;;  %v741_v19 = vadd.f32 %v1454_v26, %v740_v15  ;;  %v815_v26 = vmul.f32 %v1490_v56, %v1490_v56 }
 0x157   :  { %v742_v20 = vadd.f32 %v741_v19, %v1481_v49  ;;  %v874_v45 = vadd.f32 %v873_v41, %v811_v1 }
 0x159   :  { %v875_v22 = vadd.f32 %v874_v45, %v812_v21  ;;  %v743_v32 = vadd.f32 %v742_v20, %v1499_v0 }
 0x15b   :  { %v744_v57 = vadd.f32 %v1472_v39, %v743_v32  ;;  %v876_v27 = vadd.f32 %v875_v22, %v813_v25  ;;  %v818_v39 = vmul.f32 %v1508_v9, %v1508_v9 }
 0x15d   :  { %v877_v29 = vadd.f32 %v876_v27, %v814_v14  ;;  %v745_v30 = vadd.f32 %v1490_v56, %v744_v57  ;;  %v819_v56 = vmul.f32 %v1526_v24, %v1526_v24 }
 0x15f   :  { %v746_v49 = vadd.f32 %v745_v30, %v1517_v16  ;;  %v878_v34 = vadd.f32 %v877_v29, %v815_v26 }
 0x161   :  { %v879_v52 = vadd.f32 %v878_v34, %v816_v3  ;;  %v747_v0 = vadd.f32 %v746_v49, %v1535_v31 }
 0x163   :  { %v748_v36 = vadd.f32 %v1508_v9, %v747_v0  ;;  %v880_v62 = vadd.f32 %v879_v52, %v817_v35 }
 0x165   :  { %v749_v37 = vadd.f32 %v1526_v24, %v748_v36  ;;  %v881_v40 = vadd.f32 %v880_v62, %v818_v39 }
 0x167   :  { %v750_v16 = vrot.slane %v749_v37, 4  ;;  %v882_v13 = vadd.f32 %v881_v40, %v819_v56 }
 0x169   :  { %v751_v42 = vadd.f32 %v750_v16, %v749_v37  ;;  %v883_v44 = vrot.slane %v882_v13, 4 }
 0x16b   :  { %v752_v48 = vrot.slane %v751_v42, 2  ;;  %v884_v23 = vadd.f32 %v883_v44, %v882_v13 }
 0x16d   :  { %v753_v50 = vadd.f32 %v752_v48, %v751_v42  ;;  %v885_v31 = vrot.slane %v884_v23, 2 }
 0x16f   :  { %v754_v8 = vrot.slane %v753_v50, 1  ;;  %v886_v51 = vadd.f32 %v885_v31, %v884_v23 }
 0x171   :  { %v887_v54 = vrot.slane %v886_v51, 1  ;;  %v755_v9 = vadd.f32 %v754_v8, %v753_v50 }
 0x173   :  { %v888_v18 = vadd.f32 %v887_v54, %v886_v51 }
 0x175   :  { %v890_v55 = vsel %vm889_vm0, %v755_v9, %v888_v18 }
 0x176   :  { %891 = vst [vmem:[%s1646_s3] sm:$0x3] %v890_v55 }

// kernel: res_bottleneck_block.7
= control target key start
LH: loop header
LB: loop body
LE: loop exit
PB: predicated region body
PF: predicated region fallthrough
CT: control target
= control target key end

     0   :  { %s478_s0 = inlined_call_operand.vmem [shape: f32[128,128], index: 0, kind: input, shape index: {}]   ;;  %s479_s1 = inlined_call_operand.vmem [shape: f32[128,128], index: 1, kind: input, shape index: {}]   ;;  %s480_s2 = inlined_call_operand.vmem [shape: f32[1,128], index: 2, kind: input, shape index: {}]   ;;  %s481_s3 = inlined_call_operand.vmem [shape: f32[1,128], index: 3, kind: input, shape index: {}]   ;;  %s482_s4 = inlined_call_operand.vmem [shape: f32[1,128], index: 4, kind: input, shape index: {}]   ;;  %s483_s5 = inlined_call_operand.vmem [shape: f32[1,128], index: 5, kind: input, shape index: {}]   ;;  %s484_s6 = inlined_call_operand.hbm [shape: f32[128,128], index: 6, kind: output, shape index: {}]  }
   0x1   :  { %v24_v0 = vld [vmem:[%s478_s0] sm:$0xff]  ;;  %v25_v8 = vld [vmem:[%s478_s0 + $0x8] sm:$0xff]  ;;  %v26_v10 = vld [vmem:[%s478_s0 + $0x10] sm:$0xff] }
   0x2   :  { %v301_v1 = vld [vmem:[%s480_s2] ss:$0 sm:$0xff]  ;;  %v103_v9 = vld [vmem:[%s479_s1 + $0x8] sm:$0xff]  ;;  %v104_v15 = vld [vmem:[%s479_s1 + $0x10] sm:$0xff] }
   0x3   :  { %v306_v2 = vld [vmem:[%s481_s3] ss:$0 sm:$0xff]  ;;  %v47_v3 = vmul.f32 %v301_v1, %v24_v0  ;;  %v48_v12 = vmul.f32 %v301_v1, %v25_v8  ;;  %v49_v14 = vmul.f32 %v301_v1, %v26_v10  ;;  %v27_v16 = vld [vmem:[%s478_s0 + $0x18] sm:$0xff]  ;;  %v29_v28 = vld [vmem:[%s478_s0 + $0x28] sm:$0xff] }
   0x4   :  { %v102_v4 = vld [vmem:[%s479_s1] sm:$0xff]  ;;  %v105_v17 = vld [vmem:[%s479_s1 + $0x18] sm:$0xff]  ;;  %v50_v20 = vmul.f32 %v301_v1, %v27_v16  ;;  %v107_v29 = vld [vmem:[%s479_s1 + $0x28] sm:$0xff]  ;;  %v52_v40 = vmul.f32 %v301_v1, %v29_v28 }
   0x5   :  { %v315_v5 = vld [vmem:[%s482_s4] ss:$0 sm:$0xff]  ;;  %v70_v11 = vadd.f32 %v306_v2, %v47_v3  ;;  %v71_v25 = vadd.f32 %v306_v2, %v48_v12  ;;  %v72_v27 = vadd.f32 %v306_v2, %v49_v14  ;;  %v30_v42 = vld [vmem:[%s478_s0 + $0x30] sm:$0xff]  ;;  %v31_v48 = vld [vmem:[%s478_s0 + $0x38] sm:$0xff] }
   0x6   :  { %v320_v6 = vld [vmem:[%s483_s5] ss:$0 sm:$0xff]  ;;  %v125_v7 = vmul.f32 %v315_v5, %v102_v4  ;;  %v126_v13 = vmul.f32 %v315_v5, %v103_v9  ;;  %v127_v19 = vmul.f32 %v315_v5, %v104_v15  ;;  %v128_v21 = vmul.f32 %v315_v5, %v105_v17  ;;  %v108_v43 = vld [vmem:[%s479_s1 + $0x30] sm:$0xff]  ;;  %v109_v53 = vld [vmem:[%s479_s1 + $0x38] sm:$0xff] }
   0x7   :  { %v28_v22 = vld [vmem:[%s478_s0 + $0x20] sm:$0xff]  ;;  %v86_v24 = vmax.f32 %v70_v11, 0.0  ;;  %v73_v31 = vadd.f32 %v306_v2, %v50_v20  ;;  %v87_v35 = vmax.f32 %v71_v25, 0.0  ;;  %v88_v36 = vmax.f32 %v72_v27, 0.0  ;;  %v33_v0 = vld [vmem:[%s478_s0 + $0x48] sm:$0xff] }
   0x8   :  { %v148_v18 = vadd.f32 %v320_v6, %v125_v7  ;;  %v106_v23 = vld [vmem:[%s479_s1 + $0x20] sm:$0xff]  ;;  %v149_v26 = vadd.f32 %v320_v6, %v126_v13  ;;  %v150_v30 = vadd.f32 %v320_v6, %v127_v19  ;;  %v151_v32 = vadd.f32 %v320_v6, %v128_v21 }
   0x9   :  { %v51_v33 = vmul.f32 %v301_v1, %v28_v22  ;;  %v129_v37 = vmul.f32 %v315_v5, %v106_v23  ;;  %v89_v38 = vmax.f32 %v73_v31, 0.0  ;;  %v130_v41 = vmul.f32 %v315_v5, %v107_v29  ;;  %v32_v54 = vld [vmem:[%s478_s0 + $0x40] sm:$0xff] }
   0xa   :  { %v164_v34 = vadd.f32 %v148_v18, %v86_v24  ;;  %v165_v45 = vadd.f32 %v149_v26, %v87_v35  ;;  %v166_v46 = vadd.f32 %v150_v30, %v88_v36  ;;  %v75_v51 = vadd.f32 %v306_v2, %v52_v40  ;;  %v110_v59 = vld [vmem:[%s479_s1 + $0x40] sm:$0xff] }
   0xb   :  { %v74_v39 = vadd.f32 %v306_v2, %v51_v33  ;;  %v152_v47 = vadd.f32 %v320_v6, %v129_v37  ;;  %v167_v49 = vadd.f32 %v151_v32, %v89_v38  ;;  %v153_v52 = vadd.f32 %v320_v6, %v130_v41 }
   0xc   :  { %v180_v44 = vmax.f32 %v164_v34, 0.0  ;;  %v181_v55 = vmax.f32 %v165_v45, 0.0  ;;  %v182_v56 = vmax.f32 %v166_v46, 0.0  ;;  %v53_v57 = vmul.f32 %v301_v1, %v30_v42 }
   0xd   :  { %v90_v50 = vmax.f32 %v74_v39, 0.0  ;;  %v131_v58 = vmul.f32 %v315_v5, %v108_v43  ;;  %v183_v60 = vmax.f32 %v167_v49, 0.0  ;;  %v91_v62 = vmax.f32 %v75_v51, 0.0 }
   0xe   :  { %196 = vst [vmem:[#allocation2] sm:$0xff] %v180_v44  ;;  %v54_v63 = vmul.f32 %v301_v1, %v31_v48 }
   0xf   :  { %v168_v61 = vadd.f32 %v152_v47, %v90_v50 }
  0x10   :  { %11 = vsyncpa [#allocation3], 0  ;;  %197 = vst [vmem:[#allocation2 + $0x8] sm:$0xff] %v181_v55  ;;  %v76_v3 = vadd.f32 %v306_v2, %v53_v57  ;;  %v154_v4 = vadd.f32 %v320_v6, %v131_v58  ;;  %v132_v7 = vmul.f32 %v315_v5, %v109_v53  ;;  %v55_v8 = vmul.f32 %v301_v1, %v32_v54  ;;  %v111_v9 = vld [vmem:[%s479_s1 + $0x48] sm:$0xff]  ;;  %v34_v14 = vld [vmem:[%s478_s0 + $0x50] sm:$0xff] }
  0x11   :  { %198 = vst [vmem:[#allocation2 + $0x10] sm:$0xff] %v182_v56  ;;  %199 = vst [vmem:[#allocation2 + $0x18] sm:$0xff] %v183_v60  ;;  %v184_v10 = vmax.f32 %v168_v61, 0.0  ;;  %v169_v11 = vadd.f32 %v153_v52, %v91_v62  ;;  %v77_v12 = vadd.f32 %v306_v2, %v54_v63  ;;  %v133_v13 = vmul.f32 %v315_v5, %v110_v59  ;;  %v112_v19 = vld [vmem:[%s479_s1 + $0x50] sm:$0xff]  ;;  %v35_v20 = vld [vmem:[%s478_s0 + $0x58] sm:$0xff] }
  0x12   :  { %v92_v15 = vmax.f32 %v76_v3, 0.0  ;;  %v155_v16 = vadd.f32 %v320_v6, %v132_v7  ;;  %v78_v17 = vadd.f32 %v306_v2, %v55_v8  ;;  %v56_v18 = vmul.f32 %v301_v1, %v33_v0  ;;  %v113_v29 = vld [vmem:[%s479_s1 + $0x58] sm:$0xff]  ;;  %v36_v34 = vld [vmem:[%s478_s0 + $0x60] sm:$0xff]  ;;  %v37_v40 = vld [vmem:[%s478_s0 + $0x68] sm:$0xff] }
  0x13   :  { %200 = vst [vmem:[#allocation2 + $0x20] sm:$0xff] %v184_v10  ;;  %v185_v21 = vmax.f32 %v169_v11, 0.0  ;;  %v93_v22 = vmax.f32 %v77_v12, 0.0  ;;  %v156_v23 = vadd.f32 %v320_v6, %v133_v13  ;;  %v134_v24 = vmul.f32 %v315_v5, %v111_v9  ;;  %v114_v39 = vld [vmem:[%s479_s1 + $0x60] sm:$0xff]  ;;  %v115_v45 = vld [vmem:[%s479_s1 + $0x68] sm:$0xff]  ;;  %v38_v50 = vld [vmem:[%s478_s0 + $0x70] sm:$0xff] }
  0x14   :  { %v170_v25 = vadd.f32 %v154_v4, %v92_v15  ;;  %v94_v26 = vmax.f32 %v78_v17, 0.0  ;;  %v79_v27 = vadd.f32 %v306_v2, %v56_v18  ;;  %v57_v28 = vmul.f32 %v301_v1, %v34_v14  ;;  %v116_v55 = vld [vmem:[%s479_s1 + $0x70] sm:$0xff]  ;;  %v39_v60 = vld [vmem:[%s478_s0 + $0x78] sm:$0xff]  ;;  %s257_s0 = smov [#allocation2]  }
  0x15   :  { %201 = vst [vmem:[#allocation2 + $0x28] sm:$0xff] %v185_v21  ;;  %v171_v30 = vadd.f32 %v155_v16, %v93_v22  ;;  %v157_v31 = vadd.f32 %v320_v6, %v134_v24  ;;  %v135_v32 = vmul.f32 %v315_v5, %v112_v19  ;;  %v58_v33 = vmul.f32 %v301_v1, %v35_v20  ;;  %v117_v3 = vld [vmem:[%s479_s1 + $0x78] sm:$0xff]  ;;  %s217_s1 = sshll.u32 %s257_s0, 4  ;;  %s218_s1 = int_to_ptr.vmem [resolvable:$true] %s217_s1 }
  0x16   :  { %v186_v35 = vmax.f32 %v170_v25, 0.0  ;;  %v172_v36 = vadd.f32 %v156_v23, %v94_v26  ;;  %v95_v37 = vmax.f32 %v79_v27, 0.0  ;;  %v80_v38 = vadd.f32 %v306_v2, %v57_v28  ;;  %s235_s11 = scalar_lea.vmem %s218_s1, 2048  ;;  %p240_p1 = scmp.lt.s32.totalorder %s218_s1, %s218_s1 }
  0x17   :  { %v187_v41 = vmax.f32 %v171_v30, 0.0  ;;  %v158_v42 = vadd.f32 %v320_v6, %v135_v32  ;;  %v81_v43 = vadd.f32 %v306_v2, %v58_v33  ;;  %v136_v44 = vmul.f32 %v315_v5, %v113_v29  ;;  %p236_p0 = scmp.ne.s32.totalorder %s218_s1, %s235_s11  ;;  %p241_p2 = scmp.lt.s32.totalorder %s235_s11, %s235_s11 }
  0x18   :  { %202 = vst [vmem:[#allocation2 + $0x30] sm:$0xff] %v186_v35  ;;  %v188_v46 = vmax.f32 %v172_v36, 0.0  ;;  %v173_v47 = vadd.f32 %v157_v31, %v95_v37  ;;  %v96_v48 = vmax.f32 %v80_v38, 0.0  ;;  %v59_v49 = vmul.f32 %v301_v1, %v36_v34 }
  0x19   :  { %203 = vst [vmem:[#allocation2 + $0x38] sm:$0xff] %v187_v41  ;;  %v97_v51 = vmax.f32 %v81_v43, 0.0  ;;  %v159_v52 = vadd.f32 %v320_v6, %v136_v44  ;;  %v137_v53 = vmul.f32 %v315_v5, %v114_v39  ;;  %v60_v54 = vmul.f32 %v301_v1, %v37_v40  ;;  %p242_p3 = por %p241_p2, %p240_p1 }
  0x1a   :  { %204 = vst [vmem:[#allocation2 + $0x40] sm:$0xff] %v188_v46  ;;  %v189_v56 = vmax.f32 %v173_v47, 0.0  ;;  %v174_v57 = vadd.f32 %v158_v42, %v96_v48  ;;  %v82_v58 = vadd.f32 %v306_v2, %v59_v49  ;;  %v138_v59 = vmul.f32 %v315_v5, %v115_v45 }
  0x1b   :  { %v175_v61 = vadd.f32 %v159_v52, %v97_v51  ;;  %v160_v62 = vadd.f32 %v320_v6, %v137_v53  ;;  %v83_v63 = vadd.f32 %v306_v2, %v60_v54  ;;  %v61_v0 = vmul.f32 %v301_v1, %v38_v50  ;;  %p243_p4 = pnand %p242_p3, %p236_p0 }
  0x1c   :  { %205 = vst [vmem:[#allocation2 + $0x48] sm:$0xff] %v189_v56  ;;  %v190_v4 = vmax.f32 %v174_v57, 0.0  ;;  %v98_v7 = vmax.f32 %v82_v58, 0.0  ;;  %v161_v8 = vadd.f32 %v320_v6, %v138_v59  ;;  %v139_v9 = vmul.f32 %v315_v5, %v116_v55 }
  0x1d   :  { %v191_v10 = vmax.f32 %v175_v61, 0.0  ;;  %v99_v11 = vmax.f32 %v83_v63, 0.0  ;;  %v84_v12 = vadd.f32 %v306_v2, %v61_v0  ;;  %v62_v13 = vmul.f32 %v301_v1, %v39_v60 }
  0x1e   :  { %206 = vst [vmem:[#allocation2 + $0x50] sm:$0xff] %v190_v4  ;;  %v176_v14 = vadd.f32 %v160_v62, %v98_v7  ;;  %v162_v15 = vadd.f32 %v320_v6, %v139_v9  ;;  %v140_v16 = vmul.f32 %v315_v5, %v117_v3 }
  0x1f   :  { %207 = vst [vmem:[#allocation2 + $0x58] sm:$0xff] %v191_v10  ;;  %v177_v17 = vadd.f32 %v161_v8, %v99_v11  ;;  %v100_v18 = vmax.f32 %v84_v12, 0.0  ;;  %v85_v19 = vadd.f32 %v306_v2, %v62_v13 }
  0x20   :  { %v192_v20 = vmax.f32 %v176_v14, 0.0  ;;  %v163_v21 = vadd.f32 %v320_v6, %v140_v16 }
  0x21   :  { %v193_v22 = vmax.f32 %v177_v17, 0.0  ;;  %v178_v23 = vadd.f32 %v162_v15, %v100_v18  ;;  %v101_v24 = vmax.f32 %v85_v19, 0.0 }
  0x22   :  { %208 = vst [vmem:[#allocation2 + $0x60] sm:$0xff] %v192_v20 }
  0x23   :  { %209 = vst [vmem:[#allocation2 + $0x68] sm:$0xff] %v193_v22  ;;  %v194_v1 = vmax.f32 %v178_v23, 0.0  ;;  %v179_v25 = vadd.f32 %v163_v21, %v101_v24 }
  0x25   :  { %210 = vst [vmem:[#allocation2 + $0x70] sm:$0xff] %v194_v1  ;;  %v195_v5 = vmax.f32 %v179_v25, 0.0 }
  0x27   :  { %211 = vst [vmem:[#allocation2 + $0x78] sm:$0xff] %v195_v5 }
  0x28   :  { %246 = shalt.err (!%p243_p4)
}
  0x29   :  { %s258_s12 = smov 128   ;;  %s259_s4 = smov 8  }
  0x2a   :  { %223 = dma.vmem_to_hbm [thread:$0]  %s218_s1, 2048, %s484_s6, [#allocation3], %s258_s12, %s258_s12, %s259_s4  }
  0x2b   :  { %255 = dma.done.wait [#allocation3], 2048  }
  0x2c   :  { %256 = vsyncadd [#allocation3], 4294965248 }
  0x2d   :  { %227 = vsyncpa [#allocation3], 1 }

// kernel: res_bottleneck_block.5
= control target key start
LH: loop header
LB: loop body
LE: loop exit
PB: predicated region body
PF: predicated region fallthrough
CT: control target
= control target key end

     0   :  { %s2735_s18 = smov 0   ;;  %s3278_s0 = inlined_call_operand.vmem [shape: f32[2,8,2,8,256], index: 0, kind: input, shape index: {}]   ;;  %s3279_s1 = inlined_call_operand.vmem [shape: f32[1,256], index: 1, kind: input, shape index: {}]   ;;  %s3280_s2 = inlined_call_operand.vmem [shape: f32[1,256], index: 2, kind: input, shape index: {}]   ;;  %s3281_s3 = inlined_call_operand.vmem [shape: bf16[3,384,128], index: 3, kind: input, shape index: {}]   ;;  %s3282_s4 = inlined_call_operand.vmem [shape: f32[2,8,8,128], index: 4, kind: output, shape index: {0}]   ;;  %s3283_s5 = inlined_call_operand.vmem [shape: f32[2,2,128], index: 5, kind: output, shape index: {1}]  }
   0x1 LB: > { %s2189_s19 = sadd.s32 4294967295, %s2702_s18   ;;  %p2193_p0 = scmp.ge.s32.totalorder %s2702_s18, 1  ;;  %s2702_s18 = sphi %s2735_s18, %s16_s18  }
   0x2   : > { %p190_p1 = scmp.lt.s32.totalorder %s2702_s18, 3 }
   0x4   : > { %p191_p2 = pnand %p2193_p0, %p190_p1 }
   0x5   : > { %p222_p3 = scmp.lt.s32.totalorder (!%p191_p2), %s2189_s19, 1 }
   0x6   : > { %194 = sbr.rel (%p191_p2) target bundleno = 380 (0x17c), region = 36 }
   0xb   : > { %v2624_v0 = vld [vmem:[%s3281_s3 + $0x38] sm:$0xff]   ;;  %v241_v2 = vlaneseq  ;;  %v2704_v4 = vmov 0.0   ;;  %v2627_v5 = vld [vmem:[%s3281_s3 + $0x30] sm:$0xff]   ;;  %v2630_v9 = vld [vmem:[%s3281_s3 + $0x28] sm:$0xff]   ;;  %s3287_s19 = smov (!%p222_p3, %s2189_s19), 1  ;;  %vm685_vm1 = vcmask 1046528  }
   0xc   : > { %v2625_v1 = vld [vmem:[%s3281_s3 + $0xb8] sm:$0xff]   ;;  %2543 = vmatprep.subr.bf16.mxu0 %v2624_v0  ;;  %237 = vst [vmem:[#allocation2] sm:$0xff] %v2704_v4  ;;  %238 = vst [vmem:[#allocation2 + $0x8] sm:$0xff] %v2704_v4  ;;  %v2628_v7 = vld [vmem:[%s3281_s3 + $0xb0] sm:$0xff]   ;;  %s2385_s6 = sshll.u32 %s3287_s19, 8  ;;  %s2198_s17 = sshll.u32 %s3287_s19, 1 }
   0xd   : > { %v2626_v3 = vld [vmem:[%s3281_s3 + $0x78] sm:$0xff]   ;;  %239 = vst [vmem:[#allocation2 + $0x10] sm:$0x1] %v2704_v4  ;;  %240 = vst [vmem:[#allocation2 + $0x18] sm:$0x1] %v2704_v4  ;;  %2399 = vmatprep.subr.bf16.mxu1 %v2625_v1  ;;  %2544 = vmatpush3.bf16.msra.mxu0 %v2624_v0  ;;  %vm2755_vm0 = vcmp.lt.s32.totalorder %v241_v2, 256  ;;  %s2851_s15 = scalar_lea.vmem %s3278_s0, %s2385_s6  ;;  %s235_s22 = scalar_lea.vmem %s3283_s5, %s2198_s17 }
   0xe   : > { %2400 = vmatpush3.bf16.msra.mxu1 %v2626_v3  ;;  %245 = vst.msk [vmem:[#allocation2] ss:$8 sm:$0x3] %vm2755_vm0, %v2704_v4  ;;  %248 = vst.msk [vmem:[#allocation2 + $0x20] ss:$8 sm:$0x3] %vm2755_vm0, %v2704_v4  ;;  %2545 = vmatprep.subr.bf16.mxu0 %v2627_v5 }
   0xf   : > { %251 = vst.msk [vmem:[#allocation2 + $0x40] ss:$8 sm:$0x3] %vm2755_vm0, %v2704_v4  ;;  %254 = vst.msk [vmem:[#allocation2 + $0x60] ss:$8 sm:$0x3] %vm2755_vm0, %v2704_v4  ;;  %2401 = vmatprep.subr.bf16.mxu1 %v2628_v7 }
  0x10   : > { %257 = vst.msk [vmem:[#allocation2 + $0x80] ss:$8 sm:$0x3] %vm2755_vm0, %v2704_v4  ;;  %260 = vst.msk [vmem:[#allocation2 + $0xa0] ss:$8 sm:$0x3] %vm2755_vm0, %v2704_v4 }
  0x11   : > { %263 = vst.msk [vmem:[#allocation2 + $0xc0] ss:$8 sm:$0x3] %vm2755_vm0, %v2704_v4  ;;  %266 = vst.msk [vmem:[#allocation2 + $0xe0] ss:$8 sm:$0x3] %vm2755_vm0, %v2704_v4  ;;  %2546 = vmatpush3.bf16.msra.mxu0 %v2627_v5 }
  0x12   : > { %269 = vst.msk [vmem:[#allocation2 + $0x100] ss:$8 sm:$0x3] %vm2755_vm0, %v2704_v4  ;;  %272 = vst.msk [vmem:[#allocation2 + $0x120] ss:$8 sm:$0x3] %vm2755_vm0, %v2704_v4  ;;  %2547 = vmatprep.subr.bf16.mxu0 %v2630_v9 }
  0x13   : > { %275 = vst.msk [vmem:[#allocation2 + $0x140] ss:$8 sm:$0x3] %vm2755_vm0, %v2704_v4  ;;  %278 = vst.msk [vmem:[#allocation2 + $0x160] ss:$8 sm:$0x3] %vm2755_vm0, %v2704_v4 }
  0x14   : > { %281 = vst.msk [vmem:[#allocation2 + $0x180] ss:$8 sm:$0x3] %vm2755_vm0, %v2704_v4  ;;  %284 = vst.msk [vmem:[#allocation2 + $0x1a0] ss:$8 sm:$0x3] %vm2755_vm0, %v2704_v4 }
  0x15   : > { %287 = vst.msk [vmem:[#allocation2 + $0x1c0] ss:$8 sm:$0x3] %vm2755_vm0, %v2704_v4  ;;  %290 = vst.msk [vmem:[#allocation2 + $0x1e0] ss:$8 sm:$0x3] %vm2755_vm0, %v2704_v4  ;;  %2548 = vmatpush3.bf16.msra.mxu0 %v2630_v9 }
  0x16   : > { %293 = vst.msk [vmem:[#allocation2 + $0x200] ss:$8 sm:$0x3] %vm2755_vm0, %v2704_v4  ;;  %v2629_v8 = vld [vmem:[%s3281_s3 + $0x70] sm:$0xff]   ;;  %v2631_v10 = vld [vmem:[%s3281_s3 + $0xa8] sm:$0xff]   ;;  %v2633_v12 = vld [vmem:[%s3281_s3 + $0x20] sm:$0xff]  }
  0x17   : > { %2402 = vmatpush3.bf16.msra.mxu1 %v2629_v8  ;;  %v2632_v11 = vld [vmem:[%s3281_s3 + $0x68] sm:$0xff]   ;;  %v2634_v13 = vld [vmem:[%s3281_s3 + $0xa0] sm:$0xff]   ;;  %2549 = vmatprep.subr.bf16.mxu0 %v2633_v12  ;;  %v2636_v15 = vld [vmem:[%s3281_s3 + $0x18] sm:$0xff]   ;;  %v317_v19 = vshrl.u32 %v241_v2, 7  ;;  %vm2100_vm2 = vcmask 1040384  }
  0x18   : > { %2403 = vmatprep.subr.bf16.mxu1 %v2631_v10  ;;  %v2635_v14 = vld [vmem:[%s3281_s3 + $0x60] sm:$0xff]   ;;  %v2637_v16 = vld [vmem:[%s3281_s3 + $0x98] sm:$0xff]   ;;  %v2639_v18 = vld [vmem:[%s3281_s3 + $0x10] sm:$0xff]  }
  0x19   : > { %2550 = vmatpush3.bf16.msra.mxu0 %v2633_v12  ;;  %v2638_v17 = vld [vmem:[%s3281_s3 + $0x58] sm:$0xff]   ;;  %v2640_v20 = vld [vmem:[%s3281_s3 + $0x90] sm:$0xff]   ;;  %v2642_v22 = vld [vmem:[%s3281_s3 + $0x8] sm:$0xff]   ;;  %v318_v23 = vsub.s32 0, %v317_v19  ;;  %v322_v25 = vsub.s32 1, %v317_v19 }
  0x1a   : > { %2551 = vmatprep.subr.bf16.mxu0 %v2636_v15  ;;  %v2641_v21 = vld [vmem:[%s3281_s3 + $0x50] sm:$0xff]   ;;  %v2643_v24 = vld [vmem:[%s3281_s3 + $0x88] sm:$0xff]   ;;  %v2645_v27 = vld [vmem:[%s3281_s3] sm:$0xff]  }
  0x1b   : > { %2404 = vmatpush3.bf16.msra.mxu1 %v2632_v11  ;;  %v2644_v26 = vld [vmem:[%s3281_s3 + $0x48] sm:$0xff]   ;;  %v314_v28 = vld [vmem:[%s3279_s1] sm:$0x3]  ;;  %v2200_v30 = vld [vmem:[%s2851_s15 + $0x18] sm:$0xff] }
  0x1c   : > { %2405 = vmatprep.subr.bf16.mxu1 %v2634_v13  ;;  %v342_v29 = vld [vmem:[%s3280_s2] sm:$0x3]  ;;  %v2869_v32 = vrot.slane %v314_v28, %v318_v23  ;;  %v2871_v33 = vrot.slane %v314_v28, %v322_v25  ;;  %v2202_v36 = vld [vmem:[%s2851_s15 + $0x38] sm:$0xff]  ;;  %v2199_v38 = vld [vmem:[%s2851_s15 + $0x10] sm:$0xff] }
  0x1d   : > { %2552 = vmatpush3.bf16.msra.mxu0 %v2636_v15  ;;  %v2646_v31 = vld [vmem:[%s3281_s3 + $0x80] sm:$0xff]   ;;  %v2873_v34 = vrot.slane %v342_v29, %v318_v23  ;;  %v2875_v35 = vrot.slane %v342_v29, %v322_v25  ;;  %v2204_v37 = vld [vmem:[%s2851_s15 + $0x58] sm:$0xff]  ;;  %v614_v50 = vld [vmem:[#allocation2 + $0x8] sm:$0xfe] }
  0x1e   : > { %2553 = vmatprep.subr.bf16.mxu0 %v2639_v18  ;;  %v404_v39 = vmul.f32 %v2200_v30, %v2871_v33  ;;  %v406_v40 = vmul.f32 %v2202_v36, %v2871_v33  ;;  %v408_v41 = vmul.f32 %v2204_v37, %v2871_v33  ;;  %v403_v42 = vmul.f32 %v2199_v38, %v2869_v32  ;;  %v2647_v43 = vld [vmem:[%s3281_s3 + $0x40] sm:$0xff]   ;;  %v2648_v44 = vld [vmem:[%s3281_s3 + $0x178] sm:$0xff]   ;;  %v2201_v61 = vld [vmem:[%s2851_s15 + $0x30] sm:$0xff] }
  0x1f   : > { %2406 = vmatpush3.bf16.msra.mxu1 %v2635_v14  ;;  %v616_v54 = vld [vmem:[#allocation2 + $0x18] sm:$0x1]  ;;  %v613_v55 = vld [vmem:[#allocation2] sm:$0xfe]  ;;  %v2203_v62 = vld [vmem:[%s2851_s15 + $0x50] sm:$0xff]  ;;  %v405_v63 = vmul.f32 %v2201_v61, %v2869_v32  ;;  %v689_v2 = vrot.slane %v614_v50, 1 }
  0x20   : > { %2407 = vmatprep.subr.bf16.mxu1 %v2637_v16  ;;  %v420_v45 = vadd.f32 %v404_v39, %v2875_v35  ;;  %v422_v46 = vadd.f32 %v406_v40, %v2875_v35  ;;  %v424_v47 = vadd.f32 %v408_v41, %v2875_v35  ;;  %v419_v48 = vadd.f32 %v403_v42, %v2873_v34  ;;  %v2897_v56 = vld [vmem:[%s3281_s3 + $0xf8] sm:$0xff]   ;;  %v615_v0 = vld [vmem:[#allocation2 + $0x10] sm:$0x1]  ;;  %v645_v10 = vld [vmem:[#allocation2 + $0x8] sm:$0xff] }
  0x21   : > { %2554 = vmatpush3.bf16.msra.mxu0 %v2639_v18  ;;  %v407_v1 = vmul.f32 %v2203_v62, %v2869_v32  ;;  %v421_v3 = vadd.f32 %v405_v63, %v2873_v34  ;;  %v690_v4 = vrot.slane %v616_v54, 1  ;;  %v686_v5 = vrot.slane %v613_v55, 1  ;;  %v2206_v12 = vld [vmem:[%s2851_s15 + $0x78] sm:$0xff]  ;;  %v2205_v18 = vld [vmem:[%s2851_s15 + $0x70] sm:$0xff] }
  0x22   : > { %2555 = vmatprep.subr.bf16.mxu0 %v2642_v22  ;;  %v436_v49 = vmax.f32 %v420_v45, 0.0  ;;  %v438_v51 = vmax.f32 %v422_v46, 0.0  ;;  %v440_v52 = vmax.f32 %v424_v47, 0.0  ;;  %v435_v53 = vmax.f32 %v419_v48, 0.0  ;;  %v2208_v13 = vld [vmem:[%s2851_s15 + $0x98] sm:$0xff]  ;;  %v2207_v19 = vld [vmem:[%s2851_s15 + $0x90] sm:$0xff] }
  0x23   : > { %2408 = vmatpush3.bf16.msra.mxu1 %v2638_v17  ;;  %v423_v6 = vadd.f32 %v407_v1, %v2873_v34  ;;  %v687_v7 = vrot.slane %v615_v0, 1  ;;  %v437_v8 = vmax.f32 %v421_v3, 0.0  ;;  %v2649_v14 = vld [vmem:[%s3281_s3 + $0x138] sm:$0xff]   ;;  %v410_v16 = vmul.f32 %v2206_v12, %v2871_v33  ;;  %v2650_v41 = vld [vmem:[%s3281_s3 + $0x170] sm:$0xff]  }
  0x24   : > { %2409 = vmatprep.subr.bf16.mxu1 %v2640_v20  ;;  %v549_v57 = vrot.slane %v436_v49, 7  ;;  %v551_v58 = vrot.slane %v438_v51, 7  ;;  %v553_v59 = vrot.slane %v440_v52, 7  ;;  %v548_v60 = vrot.slane %v435_v53, 7  ;;  %v2652_v47 = vld [vmem:[%s3281_s3 + $0x130] sm:$0xff]  }
  0x25   : > { %2556 = vmatpush3.bf16.msra.mxu0 %v2642_v22  ;;  %v439_v9 = vmax.f32 %v423_v6, 0.0  ;;  %v550_v11 = vrot.slane %v437_v8, 7  ;;  %v412_v17 = vmul.f32 %v2208_v13, %v2871_v33  ;;  %v691_v23 = vsel %vm685_vm1, %v689_v2, %v690_v4  ;;  %v2654_v61 = vld [vmem:[%s3281_s3 + $0xf0] sm:$0xff]  }
  0x26   : > { %2557 = vmatprep.subr.bf16.mxu0 %v2645_v27  ;;  %582 = vst [vmem:[#allocation2 + $0x28] sm:$0xfe] %v549_v57  ;;  %584 = vst [vmem:[#allocation2 + $0x38] sm:$0x1] %v549_v57  ;;  %v409_v25 = vmul.f32 %v2205_v18, %v2869_v32  ;;  %v426_v37 = vadd.f32 %v410_v16, %v2875_v35  ;;  %v2653_v57 = vld [vmem:[%s3281_s3 + $0x168] sm:$0xff]  }
  0x27   : > { %2410 = vmatpush3.bf16.msra.mxu1 %v2641_v21  ;;  %586 = vst [vmem:[#allocation2 + $0x48] sm:$0xfe] %v551_v58  ;;  %588 = vst [vmem:[#allocation2 + $0x58] sm:$0x1] %v551_v58  ;;  %v552_v15 = vrot.slane %v439_v9, 7  ;;  %v2657_v16 = vld [vmem:[%s3281_s3 + $0xe8] sm:$0xff]  }
  0x28   : > { %2411 = vmatprep.subr.bf16.mxu1 %v2643_v24  ;;  %590 = vst [vmem:[#allocation2 + $0x68] sm:$0xfe] %v553_v59  ;;  %592 = vst [vmem:[#allocation2 + $0x78] sm:$0x1] %v553_v59  ;;  %v688_v24 = vsel %vm685_vm1, %v686_v5, %v687_v7  ;;  %v442_v58 = vmax.f32 %v426_v37, 0.0  ;;  %v2655_v7 = vld [vmem:[%s3281_s3 + $0x128] sm:$0xff]  }
  0x29   : > { %2558 = vmatpush3.bf16.msra.mxu0 %v2645_v27  ;;  %581 = vst [vmem:[#allocation2 + $0x20] sm:$0xfe] %v548_v60  ;;  %583 = vst [vmem:[#allocation2 + $0x30] sm:$0x1] %v548_v60  ;;  %v2211_v37 = vld [vmem:[%s2851_s15 + $0xd0] sm:$0xff] }
  0x2a   : > { %2439 = vmatprep.subr.bf16.mxu0 %v2648_v44  ;;  %585 = vst [vmem:[#allocation2 + $0x40] sm:$0xfe] %v550_v11  ;;  %587 = vst [vmem:[#allocation2 + $0x50] sm:$0x1] %v550_v11  ;;  %v425_v44 = vadd.f32 %v409_v25, %v2873_v34  ;;  %v555_v2 = vrot.slane %v442_v58, 7 }
  0x2b   : > { %2412 = vmatpush3.bf16.msra.mxu1 %v2644_v26  ;;  %v411_v26 = vmul.f32 %v2207_v19, %v2869_v32  ;;  %589 = vst [vmem:[#allocation2 + $0x60] sm:$0xfe] %v552_v15  ;;  %591 = vst [vmem:[#allocation2 + $0x70] sm:$0x1] %v552_v15  ;;  %v2656_v15 = vld [vmem:[%s3281_s3 + $0x160] sm:$0xff]  }
  0x2c   : > { %2413 = vmatprep.subr.bf16.mxu1 %v2646_v31  ;;  %v441_v63 = vmax.f32 %v425_v44, 0.0  ;;  %594 = vst [vmem:[#allocation2 + $0x88] sm:$0xfe] %v555_v2  ;;  %596 = vst [vmem:[#allocation2 + $0x98] sm:$0x1] %v555_v2  ;;  %v415_v44 = vmul.f32 %v2211_v37, %v2869_v32  ;;  %v2671_v37 = vld [vmem:[%s3281_s3 + $0xc0] sm:$0xff]  }
  0x2d   : > { %v646_v20 = vld [vmem:[#allocation2 + $0x28] sm:$0xff]  ;;  %v620_v22 = vld [vmem:[#allocation2 + $0x38] sm:$0x1]  ;;  %v427_v51 = vadd.f32 %v411_v26, %v2873_v34 }
  0x2e   : > { %v618_v21 = vld [vmem:[#allocation2 + $0x28] sm:$0xfe]  ;;  %v790_v27 = vpack.c.bf16 %v646_v20, %v645_v10  ;;  %v696_v29 = vrot.slane %v620_v22, 1  ;;  %v624_v48 = vld [vmem:[#allocation2 + $0x58] sm:$0x1]  ;;  %v554_v9 = vrot.slane %v441_v63, 7 }
  0x2f   : > { %2414 = vmatpush3.bf16.msra.mxu1 %v2647_v43  ;;  %v695_v28 = vrot.slane %v618_v21, 1  ;;  %v647_v30 = vld [vmem:[#allocation2 + $0x48] sm:$0xff]  ;;  %v428_v43 = vadd.f32 %v412_v17, %v2875_v35  ;;  %v628_v53 = vld [vmem:[#allocation2 + $0x78] sm:$0x1]  ;;  %v702_v54 = vrot.slane %v624_v48, 1  ;;  %v443_v3 = vmax.f32 %v427_v51, 0.0 }
  0x30   : > { %2567 = vmatprep.subr.bf16.mxu1 %v2897_v56  ;;  %v648_v31 = vld [vmem:[#allocation2 + $0x68] sm:$0xff]  ;;  %v617_v36 = vld [vmem:[#allocation2 + $0x20] sm:$0xfe]  ;;  %v619_v39 = vld [vmem:[#allocation2 + $0x30] sm:$0x1]  ;;  %2559 = vmatprep.mubr.bf16.mxu0 %v790_v27  ;;  %v708_v60 = vrot.slane %v628_v53, 1 }
  0x31   : > { %v791_v38 = vpack.c.bf16 %v648_v31, %v647_v30  ;;  %v692_v40 = vrot.slane %v617_v36, 1  ;;  %v622_v42 = vld [vmem:[#allocation2 + $0x48] sm:$0xfe]  ;;  %v697_v45 = vsel %vm685_vm1, %v695_v28, %v696_v29  ;;  %v693_v46 = vrot.slane %v619_v39, 1  ;;  %v621_v5 = vld [vmem:[#allocation2 + $0x40] sm:$0xfe] }
  0x32   : > { %v626_v49 = vld [vmem:[#allocation2 + $0x68] sm:$0xfe]  ;;  %v701_v50 = vrot.slane %v622_v42, 1  ;;  %v751_v52 = vpack.c.bf16 %v697_v45, %v691_v23  ;;  %v444_v62 = vmax.f32 %v428_v43, 0.0  ;;  %v623_v6 = vld [vmem:[#allocation2 + $0x50] sm:$0x1] }
  0x33   : > { %2560 = vmatmul.mubr.bf16.vlgmr.msra.gmra.mxu0 %v791_v38  ;;  %v707_v55 = vrot.slane %v626_v49, 1  ;;  %v694_v59 = vsel %vm685_vm1, %v692_v40, %v693_v46  ;;  %v625_v11 = vld [vmem:[#allocation2 + $0x60] sm:$0xfe]  ;;  %v627_v12 = vld [vmem:[#allocation2 + $0x70] sm:$0x1]  ;;  %v698_v13 = vrot.slane %v621_v5, 1 }
  0x34   : > { %2440 = vmatpush3.bf16.msra.mxu0 %v2649_v14  ;;  %1051 = vmatprep.mubr.bf16.mxu1 %v751_v52  ;;  %v750_v0 = vpack.c.bf16 %v694_v59, %v688_v24  ;;  %v703_v1 = vsel %vm685_vm1, %v701_v50, %v702_v54  ;;  %v557_v8 = vrot.slane %v444_v62, 7  ;;  %v699_v14 = vrot.slane %v623_v6, 1  ;;  %593 = vst [vmem:[#allocation2 + $0x80] sm:$0xfe] %v554_v9  ;;  %v2210_v20 = vld [vmem:[%s2851_s15 + $0xb8] sm:$0xff]  ;;  %v2660_v29 = vld [vmem:[%s3281_s3 + $0xe0] sm:$0xff]  }
  0x35   : > { %2441 = vmatprep.subr.bf16.mxu0 %v2650_v41  ;;  %v709_v4 = vsel %vm685_vm1, %v707_v55, %v708_v60  ;;  %v704_v17 = vrot.slane %v625_v11, 1  ;;  %v705_v18 = vrot.slane %v627_v12, 1  ;;  %v556_v19 = vrot.slane %v443_v3, 7  ;;  %595 = vst [vmem:[#allocation2 + $0x90] sm:$0x1] %v554_v9  ;;  %v2212_v22 = vld [vmem:[%s2851_s15 + $0xd8] sm:$0xff] }
  0x36   : > { %1052 = vmatmul.mubr.bf16.vlgmr.msra.gmra.mxu1 %v750_v0  ;;  %v753_v10 = vpack.c.bf16 %v709_v4, %v703_v1  ;;  %598 = vst [vmem:[#allocation2 + $0xa8] sm:$0xfe] %v557_v8  ;;  %600 = vst [vmem:[#allocation2 + $0xb8] sm:$0x1] %v557_v8  ;;  %v700_v21 = vsel %vm685_vm1, %v698_v13, %v699_v14  ;;  %v414_v23 = vmul.f32 %v2210_v20, %v2871_v33  ;;  %v2659_v27 = vld [vmem:[%s3281_s3 + $0x158] sm:$0xff]   ;;  %v2209_v31 = vld [vmem:[%s2851_s15 + $0xb0] sm:$0xff] }
  0x37   : > { %2568 = vmatpush3.bf16.msra.mxu1 %v2897_v56  ;;  %v706_v24 = vsel %vm685_vm1, %v704_v17, %v705_v18  ;;  %v2658_v56 = vld [vmem:[%s3281_s3 + $0x120] sm:$0xff]   ;;  %597 = vst [vmem:[#allocation2 + $0xa0] sm:$0xfe] %v556_v19  ;;  %599 = vst [vmem:[#allocation2 + $0xb0] sm:$0x1] %v556_v19  ;;  %v416_v25 = vmul.f32 %v2212_v22, %v2871_v33  ;;  %v413_v38 = vmul.f32 %v2209_v31, %v2869_v32  ;;  %v2661_v41 = vld [vmem:[%s3281_s3 + $0x118] sm:$0xff]  }
  0x38   : > { %2442 = vmatpush3.bf16.msra.mxu0 %v2652_v47  ;;  %1059 = vmatprep.mubr.bf16.mxu1 %v753_v10  ;;  %v752_v26 = vpack.c.bf16 %v706_v24, %v700_v21  ;;  %v430_v28 = vadd.f32 %v414_v23, %v2875_v35  ;;  %v630_v39 = vld [vmem:[#allocation2 + $0x88] sm:$0xfe]  ;;  %v632_v40 = vld [vmem:[#allocation2 + $0x98] sm:$0x1]  ;;  %v2662_v53 = vld [vmem:[%s3281_s3 + $0x150] sm:$0xff]   ;;  %v431_v55 = vadd.f32 %v415_v44, %v2873_v34 }
  0x39   : > { %2443 = vmatprep.subr.bf16.mxu0 %v2653_v57  ;;  %2569 = vmatprep.subr.bf16.mxu1 %v2654_v61  ;;  %v432_v30 = vadd.f32 %v416_v25, %v2875_v35  ;;  %v2972_v42 = vld [vmem:[#allocation2 + $0x88] sm:$0xff]  ;;  %v713_v47 = vrot.slane %v630_v39, 1  ;;  %v714_v48 = vrot.slane %v632_v40, 1  ;;  %v429_v54 = vadd.f32 %v413_v38, %v2873_v34  ;;  %v2663_v3 = vld [vmem:[%s3281_s3 + $0xd8] sm:$0xff]   ;;  %v2664_v4 = vld [vmem:[%s3281_s3 + $0x110] sm:$0xff]  }
  0x3a   : > { %v446_v36 = vmax.f32 %v430_v28, 0.0  ;;  %v2665_v9 = vld [vmem:[%s3281_s3 + $0x148] sm:$0xff]   ;;  %v447_v12 = vmax.f32 %v431_v55, 0.0  ;;  %v2666_v14 = vld [vmem:[%s3281_s3 + $0xd0] sm:$0xff]   ;;  %v2668_v18 = vld [vmem:[%s3281_s3 + $0x140] sm:$0xff]  }
  0x3b   : > { %2570 = vmatpush3.bf16.msra.mxu1 %v2654_v61  ;;  %v448_v43 = vmax.f32 %v432_v30, 0.0  ;;  %v629_v51 = vld [vmem:[#allocation2 + $0x80] sm:$0xfe]  ;;  %v715_v57 = vsel %vm685_vm1, %v713_v47, %v714_v48  ;;  %v445_v11 = vmax.f32 %v429_v54, 0.0  ;;  %v2667_v17 = vld [vmem:[%s3281_s3 + $0x108] sm:$0xff]  }
  0x3c   : > { %2444 = vmatpush3.bf16.msra.mxu0 %v2655_v7  ;;  %2571 = vmatprep.subr.bf16.mxu1 %v2657_v16  ;;  %v631_v52 = vld [vmem:[#allocation2 + $0x90] sm:$0x1]  ;;  %v710_v60 = vrot.slane %v629_v51, 1  ;;  %v559_v2 = vrot.slane %v446_v36, 7  ;;  %v2669_v19 = vld [vmem:[%s3281_s3 + $0xc8] sm:$0xff]   ;;  %v298_v24 = vld [vmem:[%s2851_s15] sm:$0xff] }
  0x3d   : > { %2445 = vmatprep.subr.bf16.mxu0 %v2656_v15  ;;  %v634_v45 = vld [vmem:[#allocation2 + $0xa8] sm:$0xfe]  ;;  %v636_v46 = vld [vmem:[#allocation2 + $0xb8] sm:$0x1]  ;;  %v711_v61 = vrot.slane %v631_v52, 1  ;;  %v561_v8 = vrot.slane %v448_v43, 7 }
  0x3e   : > { %1060 = vmatmul.mubr.bf16.gmra.mxu1 %v752_v26  ;;  %v719_v49 = vrot.slane %v634_v45, 1  ;;  %v720_v50 = vrot.slane %v636_v46, 1  ;;  %v633_v58 = vld [vmem:[#allocation2 + $0xa0] sm:$0xfe]  ;;  %v635_v59 = vld [vmem:[#allocation2 + $0xb0] sm:$0x1]  ;;  %v326_v26 = vmul.f32 %v2869_v32, %v298_v24 }
  0x3f   : > { %2572 = vmatpush3.bf16.msra.mxu1 %v2657_v16  ;;  %v716_v63 = vrot.slane %v633_v58, 1  ;;  %v717_v0 = vrot.slane %v635_v59, 1  ;;  %v2982_v1 = vld [vmem:[#allocation2 + $0xa8] sm:$0xff]  ;;  %v712_v6 = vsel %vm685_vm1, %v710_v60, %v711_v61  ;;  %602 = vst [vmem:[#allocation2 + $0xc8] sm:$0xfe] %v559_v2  ;;  %v558_v15 = vrot.slane %v445_v11, 7 }
  0x40   : > { %2446 = vmatpush3.bf16.msra.mxu0 %v2658_v56  ;;  %2573 = vmatprep.subr.bf16.mxu1 %v2660_v29  ;;  %v721_v62 = vsel %vm685_vm1, %v719_v49, %v720_v50  ;;  %v792_v7 = vpack.c.bf16 %v2982_v1, %v2972_v42  ;;  %604 = vst [vmem:[#allocation2 + $0xd8] sm:$0x1] %v559_v2  ;;  %606 = vst [vmem:[#allocation2 + $0xe8] sm:$0xfe] %v561_v8  ;;  %v560_v16 = vrot.slane %v447_v12, 7  ;;  %v299_v20 = vld [vmem:[%s2851_s15 + $0x8] sm:$0xff] }
  0x41   : > { %2447 = vmatprep.subr.bf16.mxu0 %v2659_v27  ;;  %v755_v5 = vpack.c.bf16 %v721_v62, %v715_v57  ;;  %v718_v10 = vsel %vm685_vm1, %v716_v63, %v717_v0  ;;  %608 = vst [vmem:[#allocation2 + $0xf8] sm:$0x1] %v561_v8  ;;  %601 = vst [vmem:[#allocation2 + $0xc0] sm:$0xfe] %v558_v15  ;;  %v301_v21 = vld [vmem:[%s2851_s15 + $0x28] sm:$0xff]  ;;  %v327_v22 = vmul.f32 %v2871_v33, %v299_v20  ;;  %v300_v56 = vld [vmem:[%s2851_s15 + $0x20] sm:$0xff] }
  0x42   : > { %v754_v13 = vpack.c.bf16 %v718_v10, %v712_v6  ;;  %2563 = vmatprep.mubr.bf16.mxu0 %v792_v7  ;;  %603 = vst [vmem:[#allocation2 + $0xd0] sm:$0x1] %v558_v15  ;;  %605 = vst [vmem:[#allocation2 + $0xe0] sm:$0xfe] %v560_v16  ;;  %v329_v23 = vmul.f32 %v2871_v33, %v301_v21  ;;  %v2670_v25 = vld [vmem:[%s3281_s3 + $0x100] sm:$0xff]   ;;  %v328_v27 = vmul.f32 %v2869_v32, %v300_v56  ;;  %v2672_v49 = vld [vmem:[%s3281_s3 + $0x238] sm:$0xff]  }
  0x43   : > { %2574 = vmatpush3.bf16.msra.mxu1 %v2660_v29  ;;  %1067 = vmatprep.mubr.bf16.mxu1 %v755_v5  ;;  %607 = vst [vmem:[#allocation2 + $0xf0] sm:$0x1] %v560_v16  ;;  %v355_v31 = vadd.f32 %v2875_v35, %v327_v22  ;;  %v354_v43 = vadd.f32 %v2873_v34, %v326_v26  ;;  %v303_v8 = vld [vmem:[%s2851_s15 + $0x48] sm:$0xff] }
  0x44   : > { %2448 = vmatpush3.bf16.msra.mxu0 %v2661_v41  ;;  %2575 = vmatprep.subr.bf16.mxu1 %v2663_v3  ;;  %v357_v36 = vadd.f32 %v2875_v35, %v329_v23  ;;  %v356_v44 = vadd.f32 %v2873_v34, %v328_v27  ;;  %v331_v11 = vmul.f32 %v2871_v33, %v303_v8 }
  0x45   : > { %2449 = vmatprep.subr.bf16.mxu0 %v2662_v53  ;;  %v371_v50 = vmax.f32 %v355_v31, 0.0  ;;  %v370_v52 = vmax.f32 %v354_v43, 0.0 }
  0x46   : > { %1068 = vmatmul.mubr.bf16.gmra.mxu1 %v754_v13  ;;  %v3020_v28 = vld [vmem:[#allocation2 + $0xc8] sm:$0xff]  ;;  %v373_v51 = vmax.f32 %v357_v36, 0.0  ;;  %v372_v53 = vmax.f32 %v356_v44, 0.0  ;;  %v359_v15 = vadd.f32 %v2875_v35, %v331_v11 }
  0x47   : > { %2576 = vmatpush3.bf16.msra.mxu1 %v2663_v3  ;;  %v638_v29 = vld [vmem:[#allocation2 + $0xc8] sm:$0xfe]  ;;  %v640_v30 = vld [vmem:[#allocation2 + $0xd8] sm:$0x1]  ;;  %v468_v3 = vrot.slane %v371_v50, 7  ;;  %v467_v5 = vrot.slane %v370_v52, 7 }
  0x48   : > { %2450 = vmatpush3.bf16.msra.mxu0 %v2664_v4  ;;  %2577 = vmatprep.subr.bf16.mxu1 %v2666_v14  ;;  %v3027_v38 = vld [vmem:[#allocation2 + $0xe8] sm:$0xff]  ;;  %v644_v40 = vld [vmem:[#allocation2 + $0xf8] sm:$0x1]  ;;  %v725_v41 = vrot.slane %v638_v29, 1  ;;  %v726_v46 = vrot.slane %v640_v30, 1  ;;  %v470_v4 = vrot.slane %v373_v51, 7 }
  0x49   : > { %2451 = vmatprep.subr.bf16.mxu0 %v2665_v9  ;;  %v642_v39 = vld [vmem:[#allocation2 + $0xe8] sm:$0xfe]  ;;  %v793_v45 = vpack.c.bf16 %v3027_v38, %v3020_v28  ;;  %v732_v48 = vrot.slane %v644_v40, 1  ;;  %v637_v57 = vld [vmem:[#allocation2 + $0xc0] sm:$0xfe]  ;;  %v469_v7 = vrot.slane %v372_v53, 7 }
  0x4a   : > { %v731_v47 = vrot.slane %v642_v39, 1  ;;  %v727_v54 = vsel %vm685_vm1, %v725_v41, %v726_v46  ;;  %v639_v58 = vld [vmem:[#allocation2 + $0xd0] sm:$0x1]  ;;  %v641_v59 = vld [vmem:[#allocation2 + $0xe0] sm:$0xfe]  ;;  %v722_v62 = vrot.slane %v637_v57, 1 }
  0x4b   : > { %2578 = vmatpush3.bf16.msra.mxu1 %v2666_v14  ;;  %2564 = vmatmul.mubr.bf16.gmra.mxu0 %v793_v45  ;;  %v643_v61 = vld [vmem:[#allocation2 + $0xf0] sm:$0x1]  ;;  %v723_v63 = vrot.slane %v639_v58, 1  ;;  %v728_v0 = vrot.slane %v641_v59, 1  ;;  %v305_v9 = vld [vmem:[%s2851_s15 + $0x68] sm:$0xff]  ;;  %v3047_v14 = vld [vmem:[%s3281_s3 + $0x1b8] sm:$0xff]  }
  0x4c   : > { %2452 = vmatpush3.bf16.msra.mxu0 %v2667_v17  ;;  %2579 = vmatprep.subr.bf16.mxu1 %v2669_v19  ;;  %v733_v55 = vsel %vm685_vm1, %v731_v47, %v732_v48  ;;  %v729_v2 = vrot.slane %v643_v61, 1  ;;  %501 = vst [vmem:[#allocation2 + $0x128] sm:$0xfe] %v468_v3  ;;  %503 = vst [vmem:[#allocation2 + $0x138] sm:$0x1] %v468_v3  ;;  %v333_v12 = vmul.f32 %v2871_v33, %v305_v9  ;;  %v302_v17 = vld [vmem:[%s2851_s15 + $0x40] sm:$0xff] }
  0x4d   : > { %2453 = vmatprep.subr.bf16.mxu0 %v2668_v18  ;;  %v757_v60 = vpack.c.bf16 %v733_v55, %v727_v54  ;;  %v724_v6 = vsel %vm685_vm1, %v722_v62, %v723_v63  ;;  %505 = vst [vmem:[#allocation2 + $0x148] sm:$0xfe] %v470_v4  ;;  %507 = vst [vmem:[#allocation2 + $0x158] sm:$0x1] %v470_v4  ;;  %v304_v18 = vld [vmem:[%s2851_s15 + $0x60] sm:$0xff]  ;;  %v375_v20 = vmax.f32 %v359_v15, 0.0 }
  0x4e   : > { %v730_v10 = vsel %vm685_vm1, %v728_v0, %v729_v2  ;;  %500 = vst [vmem:[#allocation2 + $0x120] sm:$0xfe] %v467_v5  ;;  %502 = vst [vmem:[#allocation2 + $0x130] sm:$0x1] %v467_v5  ;;  %v361_v16 = vadd.f32 %v2875_v35, %v333_v12  ;;  %v332_v22 = vmul.f32 %v2869_v32, %v304_v18  ;;  %v2673_v54 = vld [vmem:[%s3281_s3 + $0x1f8] sm:$0xff]   ;;  %v2674_v59 = vld [vmem:[%s3281_s3 + $0x230] sm:$0xff]  }
  0x4f   : > { %2580 = vmatpush3.bf16.msra.mxu1 %v2669_v19  ;;  %1075 = vmatprep.mubr.bf16.mxu1 %v757_v60  ;;  %v756_v13 = vpack.c.bf16 %v730_v10, %v724_v6  ;;  %504 = vst [vmem:[#allocation2 + $0x140] sm:$0xfe] %v469_v7  ;;  %506 = vst [vmem:[#allocation2 + $0x150] sm:$0x1] %v469_v7  ;;  %v330_v19 = vmul.f32 %v2869_v32, %v302_v17  ;;  %v472_v23 = vrot.slane %v375_v20, 7  ;;  %v307_v63 = vld [vmem:[%s2851_s15 + $0x88] sm:$0xff] }
  0x50   : > { %2454 = vmatpush3.bf16.msra.mxu0 %v2670_v25  ;;  %2581 = vmatprep.subr.bf16.mxu1 %v2671_v37  ;;  %v377_v21 = vmax.f32 %v361_v16, 0.0  ;;  %v360_v39 = vadd.f32 %v2873_v34, %v332_v22  ;;  %v2678_v3 = vld [vmem:[%s3281_s3 + $0x1b0] sm:$0xff]   ;;  %v309_v4 = vld [vmem:[%s2851_s15 + $0xa8] sm:$0xff]  ;;  %v335_v5 = vmul.f32 %v2871_v33, %v307_v63  ;;  %v306_v6 = vld [vmem:[%s2851_s15 + $0x80] sm:$0xff] }
  0x51   : > { %2491 = vmatprep.subr.bf16.mxu0 %v2672_v49  ;;  %1076 = vmatmul.mubr.bf16.gmra.mxu1 %v756_v13  ;;  %v358_v27 = vadd.f32 %v2873_v34, %v330_v19  ;;  %509 = vst [vmem:[#allocation2 + $0x168] sm:$0xfe] %v472_v23  ;;  %511 = vst [vmem:[#allocation2 + $0x178] sm:$0x1] %v472_v23  ;;  %v308_v7 = vld [vmem:[%s2851_s15 + $0xa0] sm:$0xff]  ;;  %v2676_v10 = vld [vmem:[%s3281_s3 + $0x1f0] sm:$0xff]   ;;  %v337_v12 = vmul.f32 %v2871_v33, %v309_v4 }
  0x52   : > { %v474_v24 = vrot.slane %v377_v21, 7  ;;  %v376_v60 = vmax.f32 %v360_v39, 0.0  ;;  %v334_v13 = vmul.f32 %v2869_v32, %v306_v6  ;;  %v336_v15 = vmul.f32 %v2869_v32, %v308_v7  ;;  %v2680_v39 = vld [vmem:[%s3281_s3 + $0x220] sm:$0xff]   ;;  %v2683_v4 = vld [vmem:[%s3281_s3 + $0x218] sm:$0xff]  }
  0x53   : > { %2582 = vmatpush3.bf16.msra.mxu1 %v2671_v37  ;;  %v1085_v56 = vld [vmem:[#allocation2 + $0x128] sm:$0xfe]  ;;  %v1087_v25 = vld [vmem:[#allocation2 + $0x138] sm:$0x1]  ;;  %v374_v55 = vmax.f32 %v358_v27, 0.0  ;;  %v363_v20 = vadd.f32 %v2875_v35, %v335_v5 }
  0x54   : > { %2591 = vmatprep.subr.bf16.mxu1 %v3047_v14  ;;  %v1089_v26 = vld [vmem:[#allocation2 + $0x148] sm:$0xfe]  ;;  %v1091_v29 = vld [vmem:[#allocation2 + $0x158] sm:$0x1]  ;;  %v1159_v30 = vrot.slane %v1085_v56, 1  ;;  %v1160_v31 = vrot.slane %v1087_v25, 1  ;;  %v365_v25 = vadd.f32 %v2875_v35, %v337_v12  ;;  %v362_v27 = vadd.f32 %v2873_v34, %v334_v13 }
  0x55   : > { %v1165_v36 = vrot.slane %v1089_v26, 1  ;;  %v1116_v37 = vld [vmem:[#allocation2 + $0x128] sm:$0xff]  ;;  %513 = vst [vmem:[#allocation2 + $0x188] sm:$0xfe] %v474_v24  ;;  %515 = vst [vmem:[#allocation2 + $0x198] sm:$0x1] %v474_v24 }
  0x56   : > { %v1166_v40 = vrot.slane %v1091_v29, 1  ;;  %v1084_v41 = vld [vmem:[#allocation2 + $0x120] sm:$0xfe]  ;;  %v1086_v43 = vld [vmem:[#allocation2 + $0x130] sm:$0x1]  ;;  %v1117_v44 = vld [vmem:[#allocation2 + $0x148] sm:$0xff]  ;;  %v1161_v45 = vsel %vm685_vm1, %v1159_v30, %v1160_v31  ;;  %v364_v29 = vadd.f32 %v2873_v34, %v336_v15 }
  0x57   : > { %v1088_v46 = vld [vmem:[#allocation2 + $0x140] sm:$0xfe]  ;;  %v1090_v47 = vld [vmem:[#allocation2 + $0x150] sm:$0x1]  ;;  %v1156_v48 = vrot.slane %v1084_v41, 1  ;;  %v1157_v49 = vrot.slane %v1086_v43, 1  ;;  %v1430_v50 = vpack.c.bf16 %v1117_v44, %v1116_v37 }
  0x58   : > { %v1167_v51 = vsel %vm685_vm1, %v1165_v36, %v1166_v40  ;;  %v1162_v52 = vrot.slane %v1088_v46, 1  ;;  %v1163_v53 = vrot.slane %v1090_v47, 1  ;;  %v471_v62 = vrot.slane %v374_v55, 7  ;;  %v1118_v8 = vld [vmem:[#allocation2 + $0x168] sm:$0xff]  ;;  %v1095_v17 = vld [vmem:[#allocation2 + $0x178] sm:$0x1] }
  0x59   : > { %v1221_v57 = vpack.c.bf16 %v1167_v51, %v1161_v45  ;;  %v1158_v58 = vsel %vm685_vm1, %v1156_v48, %v1157_v49  ;;  %2583 = vmatprep.mubr.bf16.mxu1 %v1430_v50  ;;  %v473_v2 = vrot.slane %v376_v60, 7  ;;  %v1093_v11 = vld [vmem:[#allocation2 + $0x168] sm:$0xfe]  ;;  %v1172_v22 = vrot.slane %v1095_v17, 1  ;;  %v2685_v17 = vld [vmem:[%s3281_s3 + $0x1d8] sm:$0xff]  }
  0x5a   : > { %v1164_v61 = vsel %vm685_vm1, %v1162_v52, %v1163_v53  ;;  %508 = vst [vmem:[#allocation2 + $0x160] sm:$0xfe] %v471_v62  ;;  %510 = vst [vmem:[#allocation2 + $0x170] sm:$0x1] %v471_v62  ;;  %v1171_v21 = vrot.slane %v1093_v11, 1  ;;  %v2677_v56 = vld [vmem:[%s3281_s3 + $0x228] sm:$0xff]  }
  0x5b   : > { %1389 = vmatprep.mubr.bf16.mxu0 %v1221_v57  ;;  %v1220_v0 = vpack.c.bf16 %v1164_v61, %v1158_v58  ;;  %512 = vst [vmem:[#allocation2 + $0x180] sm:$0xfe] %v473_v2  ;;  %514 = vst [vmem:[#allocation2 + $0x190] sm:$0x1] %v473_v2  ;;  %v379_v26 = vmax.f32 %v363_v20, 0.0  ;;  %v2679_v36 = vld [vmem:[%s3281_s3 + $0x1e8] sm:$0xff]  }
  0x5c   : > { %v1119_v9 = vld [vmem:[#allocation2 + $0x188] sm:$0xff]  ;;  %v1099_v19 = vld [vmem:[#allocation2 + $0x198] sm:$0x1]  ;;  %v1173_v30 = vsel %vm685_vm1, %v1171_v21, %v1172_v22  ;;  %v381_v41 = vmax.f32 %v365_v25, 0.0  ;;  %v378_v43 = vmax.f32 %v362_v27, 0.0  ;;  %v380_v44 = vmax.f32 %v364_v29, 0.0 }
  0x5d   : > { %1390 = vmatmul.mubr.bf16.vlgmr.msra.gmra.mxu0 %v1220_v0  ;;  %v1431_v16 = vpack.c.bf16 %v1119_v9, %v1118_v8  ;;  %v1097_v18 = vld [vmem:[#allocation2 + $0x188] sm:$0xfe]  ;;  %v1178_v24 = vrot.slane %v1099_v19, 1  ;;  %v2684_v61 = vld [vmem:[%s3281_s3 + $0x1a0] sm:$0xff]   ;;  %v2687_v11 = vld [vmem:[%s3281_s3 + $0x198] sm:$0xff]  }
  0x5e   : > { %2492 = vmatpush3.bf16.msra.mxu0 %v2673_v54  ;;  %v1177_v23 = vrot.slane %v1097_v18, 1  ;;  %v2681_v40 = vld [vmem:[%s3281_s3 + $0x1a8] sm:$0xff]   ;;  %v478_v49 = vrot.slane %v381_v41, 7  ;;  %v475_v50 = vrot.slane %v378_v43, 7  ;;  %v477_v60 = vrot.slane %v380_v44, 7  ;;  %v2682_v0 = vld [vmem:[%s3281_s3 + $0x1e0] sm:$0xff]  }
  0x5f   : > { %2584 = vmatmul.mubr.bf16.vlgmr.msra.gmra.mxu1 %v1431_v16  ;;  %2493 = vmatprep.subr.bf16.mxu0 %v2674_v59  ;;  %v311_v45 = vld [vmem:[%s2851_s15 + $0xc8] sm:$0xff]  ;;  %v310_v8 = vld [vmem:[%s2851_s15 + $0xc0] sm:$0xff]  ;;  %v2686_v22 = vld [vmem:[%s3281_s3 + $0x210] sm:$0xff]  }
  0x60   : > { %2592 = vmatpush3.bf16.msra.mxu1 %v3047_v14  ;;  %v1179_v31 = vsel %vm685_vm1, %v1177_v23, %v1178_v24  ;;  %v476_v14 = vrot.slane %v379_v26, 7  ;;  %v313_v46 = vld [vmem:[%s2851_s15 + $0xe8] sm:$0xff]  ;;  %v339_v51 = vmul.f32 %v2871_v33, %v311_v45  ;;  %521 = vst [vmem:[#allocation2 + $0x1c8] sm:$0xfe] %v478_v49  ;;  %523 = vst [vmem:[#allocation2 + $0x1d8] sm:$0x1] %v478_v49 }
  0x61   : > { %v1223_v37 = vpack.c.bf16 %v1179_v31, %v1173_v30  ;;  %2593 = vmatprep.subr.bf16.mxu1 %v2678_v3  ;;  %v1092_v47 = vld [vmem:[#allocation2 + $0x160] sm:$0xfe]  ;;  %v1094_v48 = vld [vmem:[#allocation2 + $0x170] sm:$0x1]  ;;  %v341_v52 = vmul.f32 %v2871_v33, %v313_v46  ;;  %516 = vst [vmem:[#allocation2 + $0x1a0] sm:$0xfe] %v475_v50  ;;  %v338_v12 = vmul.f32 %v2869_v32, %v310_v8 }
  0x62   : > { %2494 = vmatpush3.bf16.msra.mxu0 %v2676_v10  ;;  %517 = vst [vmem:[#allocation2 + $0x1a8] sm:$0xfe] %v476_v14  ;;  %519 = vst [vmem:[#allocation2 + $0x1b8] sm:$0x1] %v476_v14  ;;  %v1096_v53 = vld [vmem:[#allocation2 + $0x180] sm:$0xfe]  ;;  %v367_v62 = vadd.f32 %v2875_v35, %v339_v51 }
  0x63   : > { %1397 = vmatprep.mubr.bf16.mxu0 %v1223_v37  ;;  %2495 = vmatprep.subr.bf16.mxu0 %v2677_v56  ;;  %v1098_v54 = vld [vmem:[#allocation2 + $0x190] sm:$0x1]  ;;  %v1168_v55 = vrot.slane %v1092_v47, 1  ;;  %v1169_v57 = vrot.slane %v1094_v48, 1  ;;  %v1174_v58 = vrot.slane %v1096_v53, 1  ;;  %v369_v2 = vadd.f32 %v2875_v35, %v341_v52  ;;  %v312_v9 = vld [vmem:[%s2851_s15 + $0xe0] sm:$0xff] }
  0x64   : > { %2594 = vmatpush3.bf16.msra.mxu1 %v2678_v3  ;;  %v1175_v59 = vrot.slane %v1098_v54, 1  ;;  %518 = vst [vmem:[#allocation2 + $0x1b0] sm:$0x1] %v475_v50  ;;  %520 = vst [vmem:[#allocation2 + $0x1c0] sm:$0xfe] %v477_v60  ;;  %v383_v5 = vmax.f32 %v367_v62, 0.0  ;;  %v340_v13 = vmul.f32 %v2869_v32, %v312_v9  ;;  %v366_v23 = vadd.f32 %v2873_v34, %v338_v12 }
  0x65   : > { %2595 = vmatprep.subr.bf16.mxu1 %v2681_v40  ;;  %v1170_v63 = vsel %vm685_vm1, %v1168_v55, %v1169_v57  ;;  %522 = vst [vmem:[#allocation2 + $0x1d0] sm:$0x1] %v477_v60  ;;  %v385_v7 = vmax.f32 %v369_v2, 0.0  ;;  %v2690_v27 = vld [vmem:[%s3281_s3 + $0x190] sm:$0xff]   ;;  %v2689_v53 = vld [vmem:[%s3281_s3 + $0x208] sm:$0xff]   ;;  %v2695_v9 = vld [vmem:[%s3281_s3 + $0x180] sm:$0xff]  }
  0x66   : > { %2496 = vmatpush3.bf16.msra.mxu0 %v2679_v36  ;;  %v1176_v3 = vsel %vm685_vm1, %v1174_v58, %v1175_v59  ;;  %v480_v10 = vrot.slane %v383_v5, 7  ;;  %v368_v24 = vadd.f32 %v2873_v34, %v340_v13  ;;  %v382_v44 = vmax.f32 %v366_v23, 0.0  ;;  %v2688_v48 = vld [vmem:[%s3281_s3 + $0x1d0] sm:$0xff]   ;;  %v2691_v57 = vld [vmem:[%s3281_s3 + $0x1c8] sm:$0xff]  }
  0x67   : > { %2497 = vmatprep.subr.bf16.mxu0 %v2680_v39  ;;  %v1222_v6 = vpack.c.bf16 %v1176_v3, %v1170_v63  ;;  %v482_v18 = vrot.slane %v385_v7, 7  ;;  %v1105_v56 = vld [vmem:[#allocation2 + $0x1c8] sm:$0xfe]  ;;  %v1107_v25 = vld [vmem:[#allocation2 + $0x1d8] sm:$0x1]  ;;  %v2692_v63 = vld [vmem:[%s3281_s3 + $0x200] sm:$0xff]  }
  0x68   : > { %2596 = vmatpush3.bf16.msra.mxu1 %v2681_v40  ;;  %525 = vst [vmem:[#allocation2 + $0x1e8] sm:$0xfe] %v480_v10  ;;  %527 = vst [vmem:[#allocation2 + $0x1f8] sm:$0x1] %v480_v10  ;;  %v1100_v26 = vld [vmem:[#allocation2 + $0x1a0] sm:$0xfe] }
  0x69   : > { %2597 = vmatprep.subr.bf16.mxu1 %v2684_v61  ;;  %1398 = vmatmul.mubr.bf16.gmra.mxu0 %v1222_v6  ;;  %v1101_v15 = vld [vmem:[#allocation2 + $0x1a8] sm:$0xfe]  ;;  %v1103_v16 = vld [vmem:[#allocation2 + $0x1b8] sm:$0x1]  ;;  %529 = vst [vmem:[#allocation2 + $0x208] sm:$0xfe] %v482_v18 }
  0x6a   : > { %2498 = vmatpush3.bf16.msra.mxu0 %v2682_v0  ;;  %v1183_v19 = vrot.slane %v1101_v15, 1  ;;  %v1184_v20 = vrot.slane %v1103_v16, 1  ;;  %v1120_v21 = vld [vmem:[#allocation2 + $0x1a8] sm:$0xff]  ;;  %531 = vst [vmem:[#allocation2 + $0x218] sm:$0x1] %v482_v18  ;;  %v1189_v30 = vrot.slane %v1105_v56, 1 }
  0x6b   : > { %2499 = vmatprep.subr.bf16.mxu0 %v2683_v4  ;;  %v1190_v31 = vrot.slane %v1107_v25, 1  ;;  %v1102_v36 = vld [vmem:[#allocation2 + $0x1b0] sm:$0x1]  ;;  %v1180_v37 = vrot.slane %v1100_v26, 1  ;;  %v1121_v39 = vld [vmem:[#allocation2 + $0x1c8] sm:$0xff]  ;;  %v384_v49 = vmax.f32 %v368_v24, 0.0 }
  0x6c   : > { %2598 = vmatpush3.bf16.msra.mxu1 %v2684_v61  ;;  %v1185_v29 = vsel %vm685_vm1, %v1183_v19, %v1184_v20  ;;  %v1104_v40 = vld [vmem:[#allocation2 + $0x1c0] sm:$0xfe]  ;;  %v1106_v41 = vld [vmem:[#allocation2 + $0x1d0] sm:$0x1]  ;;  %v1181_v14 = vrot.slane %v1102_v36, 1  ;;  %v1432_v43 = vpack.c.bf16 %v1121_v39, %v1120_v21  ;;  %v479_v52 = vrot.slane %v382_v44, 7 }
  0x6d   : > { %2599 = vmatprep.subr.bf16.mxu1 %v2687_v11  ;;  %v1191_v45 = vsel %vm685_vm1, %v1189_v30, %v1190_v31  ;;  %v1186_v46 = vrot.slane %v1104_v40, 1  ;;  %v1187_v47 = vrot.slane %v1106_v41, 1  ;;  %v481_v55 = vrot.slane %v384_v49, 7  ;;  %v2693_v58 = vld [vmem:[%s3281_s3 + $0x188] sm:$0xff]   ;;  %v2694_v10 = vld [vmem:[%s3281_s3 + $0x1c0] sm:$0xff]  }
  0x6e   : > { %2500 = vmatpush3.bf16.msra.mxu0 %v2685_v17  ;;  %v1225_v50 = vpack.c.bf16 %v1191_v45, %v1185_v29  ;;  %v1182_v51 = vsel %vm685_vm1, %v1180_v37, %v1181_v14  ;;  %2587 = vmatprep.mubr.bf16.mxu1 %v1432_v43  ;;  %524 = vst [vmem:[#allocation2 + $0x1e0] sm:$0xfe] %v479_v52  ;;  %526 = vst [vmem:[#allocation2 + $0x1f0] sm:$0x1] %v479_v52  ;;  %v1574_v15 = vld [vmem:[#allocation2 + $0x38] sm:$0x1] }
  0x6f   : > { %2501 = vmatprep.subr.bf16.mxu0 %v2686_v22  ;;  %v1188_v54 = vsel %vm685_vm1, %v1186_v46, %v1187_v47  ;;  %v1122_v60 = vld [vmem:[#allocation2 + $0x1e8] sm:$0xff]  ;;  %v1111_v62 = vld [vmem:[#allocation2 + $0x1f8] sm:$0x1]  ;;  %528 = vst [vmem:[#allocation2 + $0x200] sm:$0xfe] %v481_v55  ;;  %v1647_v20 = vrot.slane %v1574_v15, 1  ;;  %v1919_v46 = vpack.c.bf16 %v3020_v28, %v2982_v1 }
  0x70   : > { %2600 = vmatpush3.bf16.msra.mxu1 %v2687_v11  ;;  %1405 = vmatprep.mubr.bf16.mxu0 %v1225_v50  ;;  %v1224_v59 = vpack.c.bf16 %v1188_v54, %v1182_v51  ;;  %v1109_v61 = vld [vmem:[#allocation2 + $0x1e8] sm:$0xfe]  ;;  %530 = vst [vmem:[#allocation2 + $0x210] sm:$0x1] %v481_v55  ;;  %v1196_v6 = vrot.slane %v1111_v62, 1  ;;  %v2214_v52 = vld [vmem:[%s2851_s15 + $0xf8] sm:$0xff] }
  0x71   : > { %2601 = vmatprep.subr.bf16.mxu1 %v2690_v27  ;;  %v1123_v0 = vld [vmem:[#allocation2 + $0x208] sm:$0xff]  ;;  %v1115_v3 = vld [vmem:[#allocation2 + $0x218] sm:$0x1]  ;;  %v1195_v4 = vrot.slane %v1109_v61, 1  ;;  %v1571_v22 = vld [vmem:[#allocation2 + $0x20] sm:$0xfe] }
  0x72   : > { %2502 = vmatpush3.bf16.msra.mxu0 %v2688_v48  ;;  %v1113_v2 = vld [vmem:[#allocation2 + $0x208] sm:$0xfe]  ;;  %v1433_v5 = vpack.c.bf16 %v1123_v0, %v1122_v60  ;;  %v1202_v8 = vrot.slane %v1115_v3, 1  ;;  %v1578_v17 = vld [vmem:[#allocation2 + $0x58] sm:$0x1]  ;;  %v1643_v26 = vrot.slane %v1571_v22, 1  ;;  %v418_v60 = vmul.f32 %v2214_v52, %v2871_v33 }
  0x73   : > { %1406 = vmatmul.mubr.bf16.gmra.mxu0 %v1224_v59  ;;  %v1201_v7 = vrot.slane %v1113_v2, 1  ;;  %2503 = vmatprep.subr.bf16.mxu0 %v2689_v53  ;;  %v1572_v11 = vld [vmem:[#allocation2 + $0x28] sm:$0xfe]  ;;  %v1197_v12 = vsel %vm685_vm1, %v1195_v4, %v1196_v6  ;;  %v1653_v24 = vrot.slane %v1578_v17, 1  ;;  %v1573_v56 = vld [vmem:[#allocation2 + $0x30] sm:$0x1] }
  0x74   : > { %2602 = vmatpush3.bf16.msra.mxu1 %v2690_v27  ;;  %v1576_v16 = vld [vmem:[#allocation2 + $0x48] sm:$0xfe]  ;;  %v1646_v19 = vrot.slane %v1572_v11, 1  ;;  %v1575_v25 = vld [vmem:[#allocation2 + $0x40] sm:$0xfe]  ;;  %v1644_v44 = vrot.slane %v1573_v56, 1  ;;  %v434_v2 = vadd.f32 %v418_v60, %v2875_v35 }
  0x75   : > { %2588 = vmatmul.mubr.bf16.gmra.mxu1 %v1433_v5  ;;  %v1203_v13 = vsel %vm685_vm1, %v1201_v7, %v1202_v8  ;;  %2603 = vmatprep.subr.bf16.mxu1 %v2693_v58  ;;  %v1652_v21 = vrot.slane %v1576_v16, 1  ;;  %v1603_v23 = vld [vmem:[#allocation2 + $0x28] sm:$0xff]  ;;  %v1108_v27 = vld [vmem:[#allocation2 + $0x1e0] sm:$0xfe]  ;;  %v1110_v29 = vld [vmem:[#allocation2 + $0x1f0] sm:$0x1] }
  0x76   : > { %v1227_v18 = vpack.c.bf16 %v1203_v13, %v1197_v12  ;;  %2504 = vmatpush3.bf16.msra.mxu0 %v2691_v57  ;;  %v1577_v30 = vld [vmem:[#allocation2 + $0x50] sm:$0x1]  ;;  %v1112_v31 = vld [vmem:[#allocation2 + $0x200] sm:$0xfe]  ;;  %v1192_v37 = vrot.slane %v1108_v27, 1  ;;  %v1193_v39 = vrot.slane %v1110_v29, 1  ;;  %v1648_v40 = vsel %vm685_vm1, %v1646_v19, %v1647_v20 }
  0x77   : > { %2505 = vmatprep.subr.bf16.mxu0 %v2692_v63  ;;  %v1114_v36 = vld [vmem:[#allocation2 + $0x210] sm:$0x1]  ;;  %v1654_v41 = vsel %vm685_vm1, %v1652_v21, %v1653_v24  ;;  %v1198_v14 = vrot.slane %v1112_v31, 1  ;;  %v1604_v45 = vld [vmem:[#allocation2 + $0x48] sm:$0xff]  ;;  %v1649_v48 = vrot.slane %v1575_v25, 1  ;;  %v1650_v49 = vrot.slane %v1577_v30, 1 }
  0x78   : > { %1413 = vmatprep.mubr.bf16.mxu0 %v1227_v18  ;;  %2604 = vmatpush3.bf16.msra.mxu1 %v2693_v58  ;;  %v1199_v43 = vrot.slane %v1114_v36, 1  ;;  %v1194_v47 = vsel %vm685_vm1, %v1192_v37, %v1193_v39  ;;  %v1917_v50 = vpack.c.bf16 %v1604_v45, %v1603_v23  ;;  %v1605_v51 = vld [vmem:[#allocation2 + $0x68] sm:$0xff]  ;;  %v1708_v54 = vpack.c.bf16 %v1654_v41, %v1648_v40  ;;  %v1582_v58 = vld [vmem:[#allocation2 + $0x78] sm:$0x1]  ;;  %v1579_v3 = vld [vmem:[#allocation2 + $0x60] sm:$0xfe] }
  0x79   : > { %2605 = vmatprep.subr.bf16.mxu1 %v2695_v9  ;;  %v1918_v55 = vpack.c.bf16 %v2972_v42, %v1605_v51  ;;  %v1580_v57 = vld [vmem:[#allocation2 + $0x68] sm:$0xfe]  ;;  %v1586_v28 = vld [vmem:[#allocation2 + $0x98] sm:$0x1]  ;;  %v1659_v62 = vrot.slane %v1582_v58, 1  ;;  %v2213_v4 = vld [vmem:[%s2851_s15 + $0xf0] sm:$0xff]  ;;  %v1645_v42 = vsel %vm685_vm1, %v1643_v26, %v1644_v44  ;;  %v1651_v5 = vsel %vm685_vm1, %v1649_v48, %v1650_v49 }
  0x7a   : > { %2506 = vmatpush3.bf16.msra.mxu0 %v2694_v10  ;;  %v1200_v53 = vsel %vm685_vm1, %v1198_v14, %v1199_v43  ;;  %v1584_v59 = vld [vmem:[#allocation2 + $0x88] sm:$0xfe]  ;;  %2607 = vmatprep.mubr.bf16.mxu1 %v1917_v50  ;;  %v1658_v61 = vrot.slane %v1580_v57, 1  ;;  %v1665_v0 = vrot.slane %v1586_v28, 1  ;;  %v1581_v6 = vld [vmem:[#allocation2 + $0x70] sm:$0x1]  ;;  %v417_v8 = vmul.f32 %v2213_v4, %v2869_v32 }
  0x7b   : > { %v1226_v1 = vpack.c.bf16 %v1200_v53, %v1194_v47  ;;  %v1664_v63 = vrot.slane %v1584_v59, 1  ;;  %v1583_v33 = vld [vmem:[#allocation2 + $0x80] sm:$0xfe]  ;;  %v450_v7 = vmax.f32 %v434_v2, 0.0  ;;  %v1585_v35 = vld [vmem:[#allocation2 + $0x90] sm:$0x1]  ;;  %v1707_v17 = vpack.c.bf16 %v1651_v5, %v1645_v42 }
  0x7c   : > { %2606 = vmatpush3.bf16.msra.mxu1 %v2695_v9  ;;  %v1660_v9 = vsel %vm685_vm1, %v1658_v61, %v1659_v62  ;;  %v1588_v11 = vld [vmem:[#allocation2 + $0xa8] sm:$0xfe]  ;;  %v1590_v12 = vld [vmem:[#allocation2 + $0xb8] sm:$0x1]  ;;  %v433_v16 = vadd.f32 %v417_v8, %v2873_v34  ;;  %v1655_v18 = vrot.slane %v1579_v3, 1  ;;  %v1656_v19 = vrot.slane %v1581_v6, 1 }
  0x7d   : > { %1414 = vmatmul.mubr.bf16.gmra.mxu0 %v1226_v1  ;;  %v1666_v10 = vsel %vm685_vm1, %v1664_v63, %v1665_v0  ;;  %v1592_v13 = vld [vmem:[#allocation2 + $0xc8] sm:$0xfe]  ;;  %v1594_v15 = vld [vmem:[#allocation2 + $0xd8] sm:$0x1]  ;;  %v1661_v20 = vrot.slane %v1583_v33, 1  ;;  %v1662_v22 = vrot.slane %v1585_v35, 1 }
  0x7e   : > { %1876 = vmatprep.mubr.bf16.mxu0 %v1708_v54  ;;  %v1710_v21 = vpack.c.bf16 %v1666_v10, %v1660_v9  ;;  %v1670_v23 = vrot.slane %v1588_v11, 1  ;;  %v563_v24 = vrot.slane %v450_v7, 7  ;;  %v1671_v32 = vrot.slane %v1590_v12, 1  ;;  %v1587_v30 = vld [vmem:[#allocation2 + $0xa0] sm:$0xfe]  ;;  %s2386_s15 = sshll.u32 %s3287_s19, 6 }
  0x7f   : > { %2608 = vmatmul.mubr.bf16.vlgmr.msra.gmra.mxu1 %v1918_v55  ;;  %v1676_v56 = vrot.slane %v1592_v13, 1  ;;  %v1677_v25 = vrot.slane %v1594_v15, 1  ;;  %v449_v26 = vmax.f32 %v433_v16, 0.0  ;;  %v1657_v29 = vsel %vm685_vm1, %v1655_v18, %v1656_v19  ;;  %v1589_v31 = vld [vmem:[#allocation2 + $0xb0] sm:$0x1]  ;;  %s3239_s16 = scalar_lea.vmem %s3282_s4, %s2386_s15 }
  0x80   : > { %2611 = vmatprep.mubr.bf16.mxu1 %v1919_v46  ;;  %610 = vst [vmem:[#allocation2 + $0x108] sm:$0xfe] %v563_v24  ;;  %612 = vst [vmem:[#allocation2 + $0x118] sm:$0x1] %v563_v24  ;;  %v1663_v34 = vsel %vm685_vm1, %v1661_v20, %v1662_v22  ;;  %v1672_v36 = vsel %vm685_vm1, %v1670_v23, %v1671_v32  ;;  %v1591_v39 = vld [vmem:[#allocation2 + $0xc0] sm:$0xfe] }
  0x81   : > { %v562_v27 = vrot.slane %v449_v26, 7  ;;  %v1678_v37 = vsel %vm685_vm1, %v1676_v56, %v1677_v25  ;;  %v1593_v40 = vld [vmem:[#allocation2 + $0xd0] sm:$0x1]  ;;  %v1596_v41 = vld [vmem:[#allocation2 + $0xe8] sm:$0xfe]  ;;  %v1709_v43 = vpack.c.bf16 %v1663_v34, %v1657_v29  ;;  %v1667_v44 = vrot.slane %v1587_v30, 1 }
  0x82   : > { %v1598_v14 = vld [vmem:[#allocation2 + $0xf8] sm:$0x1]  ;;  %v1668_v45 = vrot.slane %v1589_v31, 1  ;;  %v1712_v46 = vpack.c.bf16 %v1678_v37, %v1672_v36  ;;  %v1673_v47 = vrot.slane %v1591_v39, 1  ;;  %v1674_v48 = vrot.slane %v1593_v40, 1 }
  0x83   : > { %609 = vst [vmem:[#allocation2 + $0x100] sm:$0xfe] %v562_v27  ;;  %611 = vst [vmem:[#allocation2 + $0x110] sm:$0x1] %v562_v27  ;;  %v1682_v49 = vrot.slane %v1596_v41, 1  ;;  %v1683_v53 = vrot.slane %v1598_v14, 1 }
  0x84   : > { %v1669_v58 = vsel %vm685_vm1, %v1667_v44, %v1668_v45  ;;  %v1675_v59 = vsel %vm685_vm1, %v1673_v47, %v1674_v48  ;;  %v1595_v60 = vld [vmem:[#allocation2 + $0xe0] sm:$0xfe]  ;;  %v1597_v61 = vld [vmem:[#allocation2 + $0xf0] sm:$0x1] }
  0x85   : > { %1877 = vmatmul.mubr.bf16.vlgmr.msra.gmra.mxu0 %v1707_v17  ;;  %v1684_v1 = vsel %vm685_vm1, %v1682_v49, %v1683_v53  ;;  %v1711_v0 = vpack.c.bf16 %v1675_v59, %v1669_v58  ;;  %v1679_v2 = vrot.slane %v1595_v60, 1  ;;  %v1680_v3 = vrot.slane %v1597_v61, 1 }
  0x86   : > { %1884 = vmatprep.mubr.bf16.mxu0 %v1710_v21 }
  0x87   : > { %v1610_v50 = vld [vmem:[#allocation2 + $0x108] sm:$0xff]  ;;  %v1602_v52 = vld [vmem:[#allocation2 + $0x118] sm:$0x1]  ;;  %v1681_v5 = vsel %vm685_vm1, %v1679_v2, %v1680_v3 }
  0x88   : > { %v1600_v51 = vld [vmem:[#allocation2 + $0x108] sm:$0xfe]  ;;  %v1920_v54 = vpack.c.bf16 %v1610_v50, %v3027_v38  ;;  %v1689_v57 = vrot.slane %v1602_v52, 1 }
  0x89   : > { %v1688_v55 = vrot.slane %v1600_v51, 1 }
  0x8a   : > { %2612 = vmatmul.mubr.bf16.gmra.mxu1 %v1920_v54  ;;  %v1599_v62 = vld [vmem:[#allocation2 + $0x100] sm:$0xfe]  ;;  %v1601_v63 = vld [vmem:[#allocation2 + $0x110] sm:$0x1] }
  0x8b   : > { %v1690_v28 = vsel %vm685_vm1, %v1688_v55, %v1689_v57  ;;  %v1685_v4 = vrot.slane %v1599_v62, 1  ;;  %v1686_v42 = vrot.slane %v1601_v63, 1 }
  0x8c   : > { %v1714_v38 = vpack.c.bf16 %v1690_v28, %v1684_v1 }
  0x8d   : > { %1885 = vmatmul.mubr.bf16.gmra.mxu0 %v1709_v43  ;;  %v1687_v6 = vsel %vm685_vm1, %v1685_v4, %v1686_v42 }
  0x8e   : > { %1892 = vmatprep.mubr.bf16.mxu0 %v1712_v46  ;;  %v1713_v33 = vpack.c.bf16 %v1687_v6, %v1681_v5 }
  0x95   : > { %1893 = vmatmul.mubr.bf16.gmra.mxu0 %v1711_v0 }
  0x96   : > { %1900 = vmatprep.mubr.bf16.mxu0 %v1714_v38 }
  0x9d   : > { %1901 = vmatmul.mubr.bf16.gmra.mxu0 %v1713_v33 }
  0xf3   : > { %v2561_v12 = vpop.f32.mrf.mxu0 }
  0xf5   : > { %v892_v15 = vpop.f32.mrf.mxu0 }
  0xf6   : > { %v2415_v7 = vpop.f32.mrf.mxu1 }
  0xf7   : > { %v3191_v17 = vpop.f32.mrf.mxu0 }
  0xf8   : > { %v2416_v8 = vpop.f32.mrf.mxu1 }
  0xf9   : > { %v895_v19 = vpop.f32.mrf.mxu0  ;;  %v2417_v54 = vadd.f32 %v2416_v8, %v2415_v7 }
  0xfa   : > { %v2418_v9 = vpop.f32.mrf.mxu1 }
  0xfb   : > { %v1054_v28 = vadd.f32 %v2417_v54, %v892_v15 }
  0xfc   : > { %v2419_v10 = vpop.f32.mrf.mxu1 }
  0xfd   : > { %v2420_v59 = vadd.f32 %v2419_v10, %v2418_v9 }
  0xfe   : > { %v2421_v35 = vpop.f32.mrf.mxu1 }
  0xff   : > { %v1057_v0 = vadd.f32 %v2420_v59, %v895_v19 }
 0x100   : > { %v2422_v11 = vpop.f32.mrf.mxu1 }
 0x101   : > { %v2423_v3 = vadd.f32 %v2422_v11, %v2421_v35 }
 0x102   : > { %v2424_v13 = vpop.f32.mrf.mxu1 }
 0x103   : > { %v1062_v9 = vadd.f32 %v2561_v12, %v2423_v3 }
 0x104   : > { %v2425_v16 = vpop.f32.mrf.mxu1 }
 0x105   : > { %v2426_v10 = vadd.f32 %v2425_v16, %v2424_v13 }
 0x106   : > { %v3193_v18 = vpop.f32.mrf.mxu1 }
 0x107   : > { %v1065_v13 = vadd.f32 %v3191_v17, %v2426_v10 }
 0x108   : > { %v3195_v20 = vpop.f32.mrf.mxu1 }
 0x10a   : > { %v3199_v22 = vpop.f32.mrf.mxu1 }
 0x10b   : > { %v3197_v21 = vpop.f32.mrf.mxu0 }
 0x10c   : > { %v3203_v24 = vpop.f32.mrf.mxu1 }
 0x10d   : > { %v3201_v23 = vpop.f32.mrf.mxu0 }
 0x10f   : > { %v3205_v32 = vpop.f32.mrf.mxu0 }
 0x111   : > { %v3207_v56 = vpop.f32.mrf.mxu1  ;;  %v3209_v25 = vpop.f32.mrf.mxu0 }
 0x113   : > { %v3211_v27 = vpop.f32.mrf.mxu1 }
 0x115   : > { %v3213_v34 = vpop.f32.mrf.mxu1 }
 0x117   : > { %v3215_v31 = vpop.f32.mrf.mxu1 }
 0x11d   : > { %v2455_v26 = vpop.f32.mrf.mxu0 }
 0x11f   : > { %v2456_v29 = vpop.f32.mrf.mxu0  ;;  %v2585_v37 = vpop.f32.mrf.mxu1 }
 0x120   : > { %v2457_v58 = vadd.f32 %v2456_v29, %v2455_v26 }
 0x121   : > { %v2458_v30 = vpop.f32.mrf.mxu0  ;;  %v1532_v40 = vpop.f32.mrf.mxu1 }
 0x122   : > { %v1422_v63 = vadd.f32 %v2457_v58, %v1054_v28 }
 0x123   : > { %v2459_v36 = vpop.f32.mrf.mxu0  ;;  %v3217_v43 = vpop.f32.mrf.mxu1 }
 0x124   : > { %v2460_v61 = vadd.f32 %v2459_v36, %v2458_v30  ;;  %v1563_v5 = vadd.f32 %v1532_v40, %v1422_v63  ;;  %v2429_v36 = vadd.f32 %v3195_v20, %v3193_v18  ;;  %v2432_v18 = vadd.f32 %v3203_v24, %v3199_v22 }
 0x125   : > { %v1535_v45 = vpop.f32.mrf.mxu1 }
 0x126   : > { %v1423_v4 = vadd.f32 %v2460_v61, %v1057_v0 }
 0x128   : > { %v1564_v15 = vadd.f32 %v1535_v45, %v1423_v4  ;;  %v2438_v4 = vadd.f32 %v3215_v31, %v3213_v34 }
 0x129   : > { %v2461_v39 = vpop.f32.mrf.mxu0 }
 0x12b   : > { %v2462_v41 = vpop.f32.mrf.mxu0 }
 0x12c   : > { %v2463_v6 = vadd.f32 %v2462_v41, %v2461_v39 }
 0x12d   : > { %v2464_v14 = vpop.f32.mrf.mxu0 }
 0x12e   : > { %v1424_v35 = vadd.f32 %v2463_v6, %v1062_v9 }
 0x12f   : > { %v2465_v44 = vpop.f32.mrf.mxu0 }
 0x130   : > { %v2466_v11 = vadd.f32 %v2465_v44, %v2464_v14  ;;  %v1565_v54 = vadd.f32 %v2585_v37, %v1424_v35  ;;  %v1070_v14 = vadd.f32 %v2429_v36, %v3201_v23  ;;  %v2435_v23 = vadd.f32 %v3211_v27, %v3207_v56 }
 0x132   : > { %v1425_v45 = vadd.f32 %v2466_v11, %v1065_v13 }
 0x133   : > { %v2467_v46 = vpop.f32.mrf.mxu0 }
 0x135   : > { %v2468_v47 = vpop.f32.mrf.mxu0  ;;  %v3219_v48 = vpop.f32.mrf.mxu1 }
 0x136   : > { %v2469_v40 = vadd.f32 %v2468_v47, %v2467_v46  ;;  %v1566_v46 = vadd.f32 %v3217_v43, %v1425_v45 }
 0x137   : > { %v2470_v49 = vpop.f32.mrf.mxu0  ;;  %v3221_v50 = vpop.f32.mrf.mxu1 }
 0x138   : > { %v1426_v28 = vadd.f32 %v2469_v40, %v1070_v14 }
 0x139   : > { %v2471_v51 = vpop.f32.mrf.mxu0  ;;  %v3223_v52 = vpop.f32.mrf.mxu1 }
 0x13a   : > { %v2472_v63 = vadd.f32 %v2471_v51, %v2470_v49  ;;  %v1567_v22 = vadd.f32 %v3221_v50, %v1426_v28 }
 0x13b   : > { %v3229_v57 = vpop.f32.mrf.mxu1 }
 0x13d   : > { %v3225_v53 = vpop.f32.mrf.mxu0 }
 0x13f   : > { %v3227_v55 = vpop.f32.mrf.mxu0  ;;  %v2609_v1 = vpop.f32.mrf.mxu1 }
 0x140   : > { %v2475_v49 = vadd.f32 %v3227_v55, %v3225_v53 }
 0x141   : > { %v3231_v60 = vpop.f32.mrf.mxu0  ;;  %v2019_v38 = vpop.f32.mrf.mxu1 }
 0x143   : > { %v3233_v62 = vpop.f32.mrf.mxu0  ;;  %v2610_v8 = vpop.f32.mrf.mxu1 }
 0x144   : > { %v2478_v27 = vadd.f32 %v3233_v62, %v3231_v60 }
 0x145   : > { %v2507_v2 = vpop.f32.mrf.mxu0  ;;  %v2022_v12 = vpop.f32.mrf.mxu1 }
 0x147   : > { %v2508_v42 = vpop.f32.mrf.mxu0 }
 0x148   : > { %v2509_v33 = vadd.f32 %v2508_v42, %v2507_v2  ;;  %v1073_v2 = vadd.f32 %v2432_v18, %v3209_v25  ;;  %v1078_v25 = vadd.f32 %v3197_v21, %v2435_v23 }
 0x149   : > { %v2510_v7 = vpop.f32.mrf.mxu0 }
 0x14a   : > { %v1909_v26 = vadd.f32 %v2509_v33, %v1563_v5  ;;  %v2613_v17 = vpop.f32.mrf.mxu1  ;;  %v1427_v51 = vadd.f32 %v2472_v63, %v1073_v2  ;;  %v1428_v33 = vadd.f32 %v2475_v49, %v1078_v25 }
 0x14b   : > { %v2511_v29 = vpop.f32.mrf.mxu0 }
 0x14c   : > { %v2512_v19 = vadd.f32 %v2511_v29, %v2510_v7  ;;  %v2050_v30 = vadd.f32 %v2019_v38, %v1909_v26  ;;  %v2035_v3 = vpop.f32.mrf.mxu1  ;;  %v1568_v53 = vadd.f32 %v3229_v57, %v1427_v51  ;;  %v1569_v57 = vadd.f32 %v3219_v48, %v1428_v33 }
 0x14d   : > { %v2513_v39 = vpop.f32.mrf.mxu0 }
 0x14e   : > { %2058 = vst [vmem:[%s3239_s16] sm:$0xff] %v2050_v30  ;;  %v1910_v16 = vadd.f32 %v2512_v19, %v1564_v15  ;;  %v2614_v6 = vpop.f32.mrf.mxu1  ;;  %v2079_v34 = vmul.f32 %v2050_v30, %v2050_v30 }
 0x14f   : > { %v2514_v41 = vpop.f32.mrf.mxu0 }
 0x150   : > { %v2515_v58 = vadd.f32 %v2514_v41, %v2513_v39  ;;  %v2051_v59 = vadd.f32 %v2022_v12, %v1910_v16  ;;  %v2038_v62 = vpop.f32.mrf.mxu1 }
 0x151   : > { %v2516_v44 = vpop.f32.mrf.mxu0 }
 0x152   : > { %v1911_v20 = vadd.f32 %v2515_v58, %v1565_v54  ;;  %2059 = vst [vmem:[%s3239_s16 + $0x8] sm:$0xff] %v2051_v59  ;;  %v2080_v50 = vmul.f32 %v2051_v59, %v2051_v59  ;;  %v2066_v21 = vadd.f32 %v2051_v59, %v2050_v30 }
 0x153   : > { %v2517_v61 = vpop.f32.mrf.mxu0 }
 0x154   : > { %v2052_v0 = vadd.f32 %v2609_v1, %v1911_v20  ;;  %v2518_v47 = vadd.f32 %v2517_v61, %v2516_v44  ;;  %v2087_v15 = vadd.f32 %v2080_v50, %v2079_v34 }
 0x155   : > { %v2519_v37 = vpop.f32.mrf.mxu0 }
 0x156   : > { %2060 = vst [vmem:[%s3239_s16 + $0x10] sm:$0xff] %v2052_v0  ;;  %v1912_v38 = vadd.f32 %v2518_v47, %v1566_v46  ;;  %v2081_v31 = vmul.f32 %v2052_v0, %v2052_v0  ;;  %v2067_v35 = vadd.f32 %v2066_v21, %v2052_v0 }
 0x157   : > { %v2520_v24 = vpop.f32.mrf.mxu0 }
 0x158   : > { %v2053_v1 = vadd.f32 %v2610_v8, %v1912_v38  ;;  %v2521_v43 = vadd.f32 %v2520_v24, %v2519_v37  ;;  %v1081_v8 = vadd.f32 %v3205_v32, %v2438_v4  ;;  %v2088_v36 = vadd.f32 %v2087_v15, %v2081_v31 }
 0x159   : > { %v2522_v42 = vpop.f32.mrf.mxu0 }
 0x15a   : > { %2061 = vst [vmem:[%s3239_s16 + $0x18] sm:$0xff] %v2053_v1  ;;  %v1913_v56 = vadd.f32 %v2521_v43, %v1567_v22  ;;  %v1429_v26 = vadd.f32 %v2478_v27, %v1081_v8  ;;  %v2082_v60 = vmul.f32 %v2053_v1, %v2053_v1  ;;  %v2068_v39 = vadd.f32 %v2067_v35, %v2053_v1 }
 0x15b   : > { %v2523_v5 = vpop.f32.mrf.mxu0 }
 0x15c   : > { %v2054_v55 = vadd.f32 %v2035_v3, %v1913_v56  ;;  %v2524_v7 = vadd.f32 %v2523_v5, %v2522_v42  ;;  %v2089_v13 = vadd.f32 %v2088_v36, %v2082_v60  ;;  %v1570_v16 = vadd.f32 %v3223_v52, %v1429_v26 }
 0x15d   : > { %v2525_v9 = vpop.f32.mrf.mxu0 }
 0x15e   : > { %2062 = vst [vmem:[%s3239_s16 + $0x20] sm:$0xff] %v2054_v55  ;;  %v1914_v10 = vadd.f32 %v2524_v7, %v1568_v53  ;;  %v2083_v12 = vmul.f32 %v2054_v55, %v2054_v55  ;;  %v2069_v41 = vadd.f32 %v2068_v39, %v2054_v55 }
 0x15f   : > { %v2526_v29 = vpop.f32.mrf.mxu0 }
 0x160   : > { %v2055_v11 = vadd.f32 %v2038_v62, %v1914_v10  ;;  %v2527_v19 = vadd.f32 %v2526_v29, %v2525_v9  ;;  %v2090_v59 = vadd.f32 %v2089_v13, %v2083_v12 }
 0x161   : > { %v2528_v32 = vpop.f32.mrf.mxu0 }
 0x162   : > { %2063 = vst [vmem:[%s3239_s16 + $0x28] sm:$0xff] %v2055_v11  ;;  %v1915_v30 = vadd.f32 %v2527_v19, %v1569_v57  ;;  %v2084_v45 = vmul.f32 %v2055_v11, %v2055_v11  ;;  %v2070_v14 = vadd.f32 %v2069_v41, %v2055_v11 }
 0x163   : > { %v2529_v40 = vpop.f32.mrf.mxu0 }
 0x164   : > { %v2056_v54 = vadd.f32 %v2613_v17, %v1915_v30  ;;  %v2530_v58 = vadd.f32 %v2529_v40, %v2528_v32  ;;  %v2091_v18 = vadd.f32 %v2090_v59, %v2084_v45 }
 0x166   : > { %2064 = vst [vmem:[%s3239_s16 + $0x30] sm:$0xff] %v2056_v54  ;;  %v2085_v48 = vmul.f32 %v2056_v54, %v2056_v54  ;;  %v1916_v44 = vadd.f32 %v2530_v58, %v1570_v16  ;;  %v2071_v20 = vadd.f32 %v2070_v14, %v2056_v54 }
 0x168   : > { %v2057_v28 = vadd.f32 %v2614_v6, %v1916_v44  ;;  %v2092_v61 = vadd.f32 %v2091_v18, %v2085_v48 }
 0x16a   : > { %2065 = vst [vmem:[%s3239_s16 + $0x38] sm:$0xff] %v2057_v28  ;;  %v2072_v63 = vadd.f32 %v2071_v20, %v2057_v28  ;;  %v2086_v0 = vmul.f32 %v2057_v28, %v2057_v28 }
 0x16c   : > { %v2073_v46 = vrot.slane %v2072_v63, 4  ;;  %v2093_v52 = vadd.f32 %v2092_v61, %v2086_v0 }
 0x16e   : > { %v2074_v47 = vadd.f32 %v2073_v46, %v2072_v63  ;;  %v2094_v37 = vrot.slane %v2093_v52, 4 }
 0x170   : > { %v2075_v2 = vrot.slane %v2074_v47, 2  ;;  %v2095_v17 = vadd.f32 %v2094_v37, %v2093_v52 }
 0x172   : > { %v2076_v23 = vadd.f32 %v2075_v2, %v2074_v47  ;;  %v2096_v38 = vrot.slane %v2095_v17, 2 }
 0x174   : > { %v2077_v22 = vrot.slane %v2076_v23, 1  ;;  %v2097_v24 = vadd.f32 %v2096_v38, %v2095_v17 }
 0x176   : > { %v2098_v3 = vrot.slane %v2097_v24, 1  ;;  %v2078_v49 = vadd.f32 %v2077_v22, %v2076_v23 }
 0x178   : > { %v2099_v51 = vadd.f32 %v2098_v3, %v2097_v24 }
 0x17a   : > { %v2101_v1 = vsel %vm2100_vm2, %v2078_v49, %v2099_v51 }
 0x17b   : > { %2102 = vst [vmem:[%s235_s22] sm:$0x3] %v2101_v1 }
 0x17c PF: > { %s16_s18 = sadd.s32 1, %s2702_s18  }
 0x17d   : > { %p13_p4 = scmp.ge.s32.totalorder %s16_s18, 4  }
 0x17f   :  { %15 = sbr.rel (!%p13_p4) target bundleno = 1 (0x1), region = 100 }

// kernel: res_bottleneck_block.6
= control target key start
LH: loop header
LB: loop body
LE: loop exit
PB: predicated region body
PF: predicated region fallthrough
CT: control target
= control target key end

     0   :  { %vm590_vm0 = vcmask 1040384   ;;  %s1129_s3 = inlined_call_operand.vmem [shape: bf16[128,128], index: 3, kind: input, shape index: {}]   ;;  %s1130_s5 = inlined_call_operand.vmem [shape: bf16[128,128], index: 5, kind: input, shape index: {}]   ;;  %s1131_s0 = inlined_call_operand.vmem [shape: f32[128,128], index: 0, kind: input, shape index: {}]   ;;  %s1132_s1 = inlined_call_operand.vmem [shape: f32[1,128], index: 1, kind: input, shape index: {}]   ;;  %s1133_s2 = inlined_call_operand.vmem [shape: f32[1,128], index: 2, kind: input, shape index: {}]   ;;  %s1134_s4 = inlined_call_operand.vmem [shape: bf16[128,128], index: 4, kind: input, shape index: {}]   ;;  %s1135_s6 = inlined_call_operand.vmem [shape: f32[128,128], index: 6, kind: output, shape index: {0}]   ;;  %s1136_s7 = inlined_call_operand.vmem [shape: f32[128,128], index: 7, kind: output, shape index: {1}]   ;;  %s1137_s8 = inlined_call_operand.vmem [shape: f32[1,2,128], index: 8, kind: output, shape index: {2}]   ;;  %s1138_s9 = inlined_call_operand.vmem [shape: f32[1,2,128], index: 9, kind: output, shape index: {3}]  }
   0x1   :  { %v791_v0 = vld [vmem:[%s1129_s3 + $0x38] sm:$0xff]   ;;  %v793_v2 = vld [vmem:[%s1129_s3 + $0x30] sm:$0xff]   ;;  %v795_v4 = vld [vmem:[%s1129_s3 + $0x28] sm:$0xff]  }
   0x2   :  { %v792_v1 = vld [vmem:[%s1130_s5 + $0x38] sm:$0xff]   ;;  %727 = vmatprep.subr.bf16.mxu0 %v791_v0  ;;  %v794_v3 = vld [vmem:[%s1130_s5 + $0x30] sm:$0xff]   ;;  %v796_v5 = vld [vmem:[%s1130_s5 + $0x28] sm:$0xff]  }
   0x3   :  { %759 = vmatprep.subr.bf16.mxu1 %v792_v1  ;;  %728 = vmatpush3.bf16.msra.mxu0 %v791_v0  ;;  %v797_v6 = vld [vmem:[%s1129_s3 + $0x20] sm:$0xff]   ;;  %v799_v8 = vld [vmem:[%s1129_s3 + $0x18] sm:$0xff]   ;;  %v801_v10 = vld [vmem:[%s1129_s3 + $0x10] sm:$0xff]  }
   0x4   :  { %760 = vmatpush3.bf16.msra.mxu1 %v792_v1  ;;  %729 = vmatprep.subr.bf16.mxu0 %v793_v2  ;;  %v798_v7 = vld [vmem:[%s1130_s5 + $0x20] sm:$0xff]   ;;  %v800_v9 = vld [vmem:[%s1130_s5 + $0x18] sm:$0xff]   ;;  %v802_v11 = vld [vmem:[%s1130_s5 + $0x10] sm:$0xff]  }
   0x5   :  { %761 = vmatprep.subr.bf16.mxu1 %v794_v3  ;;  %v28_v12 = vld [vmem:[%s1131_s0] sm:$0xff]  ;;  %v29_v13 = vld [vmem:[%s1131_s0 + $0x8] sm:$0xff]  ;;  %v30_v19 = vld [vmem:[%s1131_s0 + $0x10] sm:$0xff] }
   0x6   :  { %v910_v14 = vld [vmem:[%s1132_s1] ss:$0 sm:$0xff]  ;;  %v31_v20 = vld [vmem:[%s1131_s0 + $0x18] sm:$0xff]  ;;  %v803_v21 = vld [vmem:[%s1129_s3 + $0x8] sm:$0xff]  }
   0x7   :  { %730 = vmatpush3.bf16.msra.mxu0 %v793_v2  ;;  %v51_v15 = vmul.f32 %v910_v14, %v28_v12  ;;  %v52_v16 = vmul.f32 %v910_v14, %v29_v13  ;;  %v917_v17 = vld [vmem:[%s1133_s2] ss:$0 sm:$0xff]  ;;  %v53_v24 = vmul.f32 %v910_v14, %v30_v19  ;;  %v54_v25 = vmul.f32 %v910_v14, %v31_v20  ;;  %v33_v27 = vld [vmem:[%s1131_s0 + $0x28] sm:$0xff]  ;;  %v34_v37 = vld [vmem:[%s1131_s0 + $0x30] sm:$0xff] }
   0x8   :  { %762 = vmatpush3.bf16.msra.mxu1 %v794_v3  ;;  %731 = vmatprep.subr.bf16.mxu0 %v795_v4  ;;  %v807_v18 = vld [vmem:[%s1134_s4] sm:$0xff]   ;;  %v804_v28 = vld [vmem:[%s1130_s5 + $0x8] sm:$0xff]   ;;  %v56_v35 = vmul.f32 %v910_v14, %v33_v27  ;;  %v35_v38 = vld [vmem:[%s1131_s0 + $0x38] sm:$0xff]  ;;  %v57_v46 = vmul.f32 %v910_v14, %v34_v37 }
   0x9   :  { %763 = vmatprep.subr.bf16.mxu1 %v796_v5  ;;  %v74_v22 = vadd.f32 %v917_v17, %v51_v15  ;;  %v75_v23 = vadd.f32 %v917_v17, %v52_v16  ;;  %v32_v26 = vld [vmem:[%s1131_s0 + $0x20] sm:$0xff]  ;;  %775 = vmatprep.mubr.bf16.mxu1 %v807_v18  ;;  %v76_v32 = vadd.f32 %v917_v17, %v53_v24  ;;  %v37_v42 = vld [vmem:[%s1131_s0 + $0x48] sm:$0xff]  ;;  %v38_v59 = vld [vmem:[%s1131_s0 + $0x50] sm:$0xff] }
   0xa   :  { %v805_v31 = vld [vmem:[%s1129_s3] sm:$0xff]   ;;  %v77_v33 = vadd.f32 %v917_v17, %v54_v25  ;;  %v55_v34 = vmul.f32 %v910_v14, %v32_v26  ;;  %v79_v41 = vadd.f32 %v917_v17, %v56_v35  ;;  %v58_v47 = vmul.f32 %v910_v14, %v35_v38  ;;  %v808_v55 = vld [vmem:[%s1134_s4 + $0x8] sm:$0xff]   ;;  %v39_v60 = vld [vmem:[%s1131_s0 + $0x58] sm:$0xff] }
   0xb   :  { %732 = vmatpush3.bf16.msra.mxu0 %v795_v4  ;;  %v90_v29 = vmax.f32 %v74_v22, 0.0  ;;  %v91_v30 = vmax.f32 %v75_v23, 0.0  ;;  %v36_v39 = vld [vmem:[%s1131_s0 + $0x40] sm:$0xff]  ;;  %v92_v44 = vmax.f32 %v76_v32, 0.0  ;;  %v60_v51 = vmul.f32 %v910_v14, %v37_v42  ;;  %v809_v61 = vld [vmem:[%s1134_s4 + $0x10] sm:$0xff]   ;;  %v41_v63 = vld [vmem:[%s1131_s0 + $0x68] sm:$0xff] }
   0xc   :  { %764 = vmatpush3.bf16.msra.mxu1 %v796_v5  ;;  %733 = vmatprep.subr.bf16.mxu0 %v797_v6  ;;  %v78_v40 = vadd.f32 %v917_v17, %v55_v34  ;;  %v806_v43 = vld [vmem:[%s1130_s5] sm:$0xff]   ;;  %v93_v45 = vmax.f32 %v77_v33, 0.0  ;;  %v95_v49 = vmax.f32 %v79_v41, 0.0  ;;  %v59_v50 = vmul.f32 %v910_v14, %v36_v39  ;;  %v42_v16 = vld [vmem:[%s1131_s0 + $0x70] sm:$0xff]  ;;  %v43_v18 = vld [vmem:[%s1131_s0 + $0x78] sm:$0xff] }
   0xd   :  { %765 = vmatprep.subr.bf16.mxu1 %v798_v7  ;;  %v106_v36 = vpack.c.bf16 %v91_v30, %v90_v29  ;;  %v80_v53 = vadd.f32 %v917_v17, %v57_v46  ;;  %v81_v54 = vadd.f32 %v917_v17, %v58_v47  ;;  %v83_v58 = vadd.f32 %v917_v17, %v60_v51  ;;  %v40_v62 = vld [vmem:[%s1131_s0 + $0x60] sm:$0xff]  ;;  %v812_v29 = vld [vmem:[%s1134_s4 + $0x28] sm:$0xff]  }
   0xe   :  { %v94_v48 = vmax.f32 %v78_v40, 0.0  ;;  %v107_v52 = vpack.c.bf16 %v93_v45, %v92_v44  ;;  %v82_v57 = vadd.f32 %v917_v17, %v59_v50  ;;  %v61_v2 = vmul.f32 %v910_v14, %v38_v59  ;;  %v811_v19 = vld [vmem:[%s1134_s4 + $0x20] sm:$0xff]  }
   0xf   :  { %734 = vmatpush3.bf16.msra.mxu0 %v797_v6  ;;  %743 = vmatprep.mubr.bf16.mxu0 %v106_v36  ;;  %v96_v0 = vmax.f32 %v80_v53, 0.0  ;;  %v97_v1 = vmax.f32 %v81_v54, 0.0  ;;  %v62_v3 = vmul.f32 %v910_v14, %v39_v60  ;;  %v99_v5 = vmax.f32 %v83_v58, 0.0 }
  0x10   :  { %766 = vmatpush3.bf16.msra.mxu1 %v798_v7  ;;  %735 = vmatprep.subr.bf16.mxu0 %v799_v8  ;;  %v108_v56 = vpack.c.bf16 %v95_v49, %v94_v48  ;;  %v98_v4 = vmax.f32 %v82_v57, 0.0  ;;  %v63_v6 = vmul.f32 %v910_v14, %v40_v62  ;;  %v64_v7 = vmul.f32 %v910_v14, %v41_v63 }
  0x11   :  { %767 = vmatprep.subr.bf16.mxu1 %v800_v9  ;;  %v65_v22 = vmul.f32 %v910_v14, %v42_v16  ;;  %v66_v23 = vmul.f32 %v910_v14, %v43_v18 }
  0x12   :  { %v110_v12 = vpack.c.bf16 %v99_v5, %v98_v4  ;;  %v86_v13 = vadd.f32 %v917_v17, %v63_v6  ;;  %v87_v15 = vadd.f32 %v917_v17, %v64_v7 }
  0x13   :  { %736 = vmatpush3.bf16.msra.mxu0 %v799_v8  ;;  %v109_v8 = vpack.c.bf16 %v97_v1, %v96_v0  ;;  %v88_v27 = vadd.f32 %v917_v17, %v65_v22 }
  0x14   :  { %768 = vmatpush3.bf16.msra.mxu1 %v800_v9  ;;  %737 = vmatprep.subr.bf16.mxu0 %v801_v10  ;;  %v84_v9 = vadd.f32 %v917_v17, %v61_v2  ;;  %v102_v24 = vmax.f32 %v86_v13, 0.0  ;;  %v103_v25 = vmax.f32 %v87_v15, 0.0 }
  0x15   :  { %769 = vmatprep.subr.bf16.mxu1 %v802_v11  ;;  %v104_v14 = vmax.f32 %v88_v27, 0.0 }
  0x16   :  { %v100_v20 = vmax.f32 %v84_v9, 0.0  ;;  %v112_v30 = vpack.c.bf16 %v103_v25, %v102_v24 }
  0x17   :  { %738 = vmatpush3.bf16.msra.mxu0 %v801_v10  ;;  %v85_v10 = vadd.f32 %v917_v17, %v62_v3 }
  0x18   :  { %770 = vmatpush3.bf16.msra.mxu1 %v802_v11  ;;  %739 = vmatprep.subr.bf16.mxu0 %v803_v21  ;;  %v810_v11 = vld [vmem:[%s1134_s4 + $0x18] sm:$0xff]  }
  0x19   :  { %771 = vmatprep.subr.bf16.mxu1 %v804_v28 }
  0x1b   :  { %740 = vmatpush3.bf16.msra.mxu0 %v803_v21  ;;  %v101_v21 = vmax.f32 %v85_v10, 0.0 }
  0x1c   :  { %772 = vmatpush3.bf16.msra.mxu1 %v804_v28  ;;  %741 = vmatprep.subr.bf16.mxu0 %v805_v31  ;;  %v89_v28 = vadd.f32 %v917_v17, %v66_v23  ;;  %v814_v17 = vld [vmem:[%s1134_s4 + $0x38] sm:$0xff]  }
  0x1d   :  { %773 = vmatprep.subr.bf16.mxu1 %v806_v43  ;;  %v111_v26 = vpack.c.bf16 %v101_v21, %v100_v20 }
  0x1e   :  { %v105_v32 = vmax.f32 %v89_v28, 0.0 }
  0x1f   :  { %742 = vmatpush3.bf16.msra.mxu0 %v805_v31  ;;  %v813_v31 = vld [vmem:[%s1134_s4 + $0x30] sm:$0xff]  }
  0x20   :  { %774 = vmatpush3.bf16.msra.mxu1 %v806_v43  ;;  %v113_v33 = vpack.c.bf16 %v105_v32, %v104_v14 }
  0x22   :  { %744 = vmatmul.mubr.bf16.vlgmr.msra.gmra.mxu0 %v107_v52 }
  0x23   :  { %776 = vmatmul.mubr.bf16.vlgmr.msra.gmra.mxu1 %v808_v55  ;;  %747 = vmatprep.mubr.bf16.mxu0 %v108_v56 }
  0x24   :  { %779 = vmatprep.mubr.bf16.mxu1 %v809_v61 }
  0x2a   :  { %748 = vmatmul.mubr.bf16.gmra.mxu0 %v109_v8 }
  0x2b   :  { %780 = vmatmul.mubr.bf16.gmra.mxu1 %v810_v11  ;;  %751 = vmatprep.mubr.bf16.mxu0 %v110_v12 }
  0x2c   :  { %783 = vmatprep.mubr.bf16.mxu1 %v811_v19 }
  0x32   :  { %752 = vmatmul.mubr.bf16.gmra.mxu0 %v111_v26 }
  0x33   :  { %784 = vmatmul.mubr.bf16.gmra.mxu1 %v812_v29  ;;  %755 = vmatprep.mubr.bf16.mxu0 %v112_v30 }
  0x34   :  { %787 = vmatprep.mubr.bf16.mxu1 %v813_v31 }
  0x3a   :  { %756 = vmatmul.mubr.bf16.gmra.mxu0 %v113_v33 }
  0x3b   :  { %788 = vmatmul.mubr.bf16.gmra.mxu1 %v814_v17 }
  0xe2   :  { %v745_v34 = vpop.f32.mrf.mxu0 }
  0xe3   :  { %502 = vst [vmem:[%s1135_s6 + $0x10] sm:$0xff] %v745_v34  ;;  %v777_v35 = vpop.f32.mrf.mxu1  ;;  %v555_v49 = vmul.f32 %v745_v34, %v745_v34 }
  0xe4   :  { %518 = vst [vmem:[%s1136_s7 + $0x10] sm:$0xff] %v777_v35  ;;  %v212_v36 = vpop.f32.mrf.mxu0  ;;  %v616_v53 = vmul.f32 %v777_v35, %v777_v35 }
  0xe5   :  { %500 = vst [vmem:[%s1135_s6] sm:$0xff] %v212_v36  ;;  %v437_v37 = vpop.f32.mrf.mxu1  ;;  %v553_v41 = vmul.f32 %v212_v36, %v212_v36 }
  0xe6   :  { %516 = vst [vmem:[%s1136_s7] sm:$0xff] %v437_v37  ;;  %v746_v38 = vpop.f32.mrf.mxu0  ;;  %v614_v45 = vmul.f32 %v437_v37, %v437_v37 }
  0xe7   :  { %503 = vst [vmem:[%s1135_s6 + $0x18] sm:$0xff] %v746_v38  ;;  %v778_v39 = vpop.f32.mrf.mxu1  ;;  %v556_v57 = vmul.f32 %v746_v38, %v746_v38 }
  0xe8   :  { %519 = vst [vmem:[%s1136_s7 + $0x18] sm:$0xff] %v778_v39  ;;  %v215_v40 = vpop.f32.mrf.mxu0  ;;  %v617_v61 = vmul.f32 %v778_v39, %v778_v39 }
  0xe9   :  { %501 = vst [vmem:[%s1135_s6 + $0x8] sm:$0xff] %v215_v40  ;;  %v532_v42 = vadd.f32 %v215_v40, %v212_v36  ;;  %v554_v43 = vmul.f32 %v215_v40, %v215_v40  ;;  %v440_v44 = vpop.f32.mrf.mxu1 }
  0xea   :  { %517 = vst [vmem:[%s1136_s7 + $0x8] sm:$0xff] %v440_v44  ;;  %v593_v46 = vadd.f32 %v440_v44, %v437_v37  ;;  %v615_v47 = vmul.f32 %v440_v44, %v440_v44  ;;  %v749_v48 = vpop.f32.mrf.mxu0 }
  0xeb   :  { %v533_v50 = vadd.f32 %v745_v34, %v532_v42  ;;  %v569_v51 = vadd.f32 %v554_v43, %v553_v41  ;;  %506 = vst [vmem:[%s1135_s6 + $0x30] sm:$0xff] %v749_v48  ;;  %v781_v52 = vpop.f32.mrf.mxu1  ;;  %v559_v19 = vmul.f32 %v749_v48, %v749_v48 }
  0xec   :  { %v594_v54 = vadd.f32 %v777_v35, %v593_v46  ;;  %v630_v55 = vadd.f32 %v615_v47, %v614_v45  ;;  %522 = vst [vmem:[%s1136_s7 + $0x30] sm:$0xff] %v781_v52  ;;  %v228_v56 = vpop.f32.mrf.mxu0  ;;  %v620_v23 = vmul.f32 %v781_v52, %v781_v52 }
  0xed   :  { %v570_v58 = vadd.f32 %v569_v51, %v555_v49  ;;  %504 = vst [vmem:[%s1135_s6 + $0x20] sm:$0xff] %v228_v56  ;;  %v534_v59 = vadd.f32 %v746_v38, %v533_v50  ;;  %v453_v60 = vpop.f32.mrf.mxu1  ;;  %v557_v2 = vmul.f32 %v228_v56, %v228_v56 }
  0xee   :  { %v631_v62 = vadd.f32 %v630_v55, %v616_v53  ;;  %520 = vst [vmem:[%s1136_s7 + $0x20] sm:$0xff] %v453_v60  ;;  %v595_v63 = vadd.f32 %v778_v39, %v594_v54  ;;  %v750_v0 = vpop.f32.mrf.mxu0  ;;  %v618_v6 = vmul.f32 %v453_v60, %v453_v60 }
  0xef   :  { %v535_v1 = vadd.f32 %v534_v59, %v228_v56  ;;  %v571_v3 = vadd.f32 %v570_v58, %v556_v57  ;;  %507 = vst [vmem:[%s1135_s6 + $0x38] sm:$0xff] %v750_v0  ;;  %v782_v4 = vpop.f32.mrf.mxu1  ;;  %v560_v27 = vmul.f32 %v750_v0, %v750_v0 }
  0xf0   :  { %v596_v5 = vadd.f32 %v595_v63, %v453_v60  ;;  %v632_v7 = vadd.f32 %v631_v62, %v617_v61  ;;  %523 = vst [vmem:[%s1136_s7 + $0x38] sm:$0xff] %v782_v4  ;;  %v231_v8 = vpop.f32.mrf.mxu0  ;;  %v621_v31 = vmul.f32 %v782_v4, %v782_v4 }
  0xf1   :  { %v572_v9 = vadd.f32 %v571_v3, %v557_v2  ;;  %505 = vst [vmem:[%s1135_s6 + $0x28] sm:$0xff] %v231_v8  ;;  %v536_v10 = vadd.f32 %v535_v1, %v231_v8  ;;  %v558_v11 = vmul.f32 %v231_v8, %v231_v8  ;;  %v456_v12 = vpop.f32.mrf.mxu1 }
  0xf2   :  { %v633_v13 = vadd.f32 %v632_v7, %v618_v6  ;;  %521 = vst [vmem:[%s1136_s7 + $0x28] sm:$0xff] %v456_v12  ;;  %v597_v15 = vadd.f32 %v596_v5, %v456_v12  ;;  %v619_v16 = vmul.f32 %v456_v12, %v456_v12  ;;  %v753_v18 = vpop.f32.mrf.mxu0 }
  0xf3   :  { %v537_v20 = vadd.f32 %v749_v48, %v536_v10  ;;  %v573_v21 = vadd.f32 %v572_v9, %v558_v11  ;;  %510 = vst [vmem:[%s1135_s6 + $0x50] sm:$0xff] %v753_v18  ;;  %v785_v22 = vpop.f32.mrf.mxu1  ;;  %v563_v49 = vmul.f32 %v753_v18, %v753_v18 }
  0xf4   :  { %v598_v24 = vadd.f32 %v781_v52, %v597_v15  ;;  %v634_v25 = vadd.f32 %v633_v13, %v619_v16  ;;  %526 = vst [vmem:[%s1136_s7 + $0x50] sm:$0xff] %v785_v22  ;;  %v244_v26 = vpop.f32.mrf.mxu0  ;;  %v624_v53 = vmul.f32 %v785_v22, %v785_v22 }
  0xf5   :  { %v574_v28 = vadd.f32 %v573_v21, %v559_v19  ;;  %508 = vst [vmem:[%s1135_s6 + $0x40] sm:$0xff] %v244_v26  ;;  %v538_v29 = vadd.f32 %v750_v0, %v537_v20  ;;  %v469_v30 = vpop.f32.mrf.mxu1  ;;  %v561_v34 = vmul.f32 %v244_v26, %v244_v26 }
  0xf6   :  { %v635_v14 = vadd.f32 %v634_v25, %v620_v23  ;;  %524 = vst [vmem:[%s1136_s7 + $0x40] sm:$0xff] %v469_v30  ;;  %v599_v32 = vadd.f32 %v782_v4, %v598_v24  ;;  %v754_v33 = vpop.f32.mrf.mxu0  ;;  %v622_v38 = vmul.f32 %v469_v30, %v469_v30 }
  0xf7   :  { %v539_v17 = vadd.f32 %v538_v29, %v244_v26  ;;  %v575_v35 = vadd.f32 %v574_v28, %v560_v27  ;;  %511 = vst [vmem:[%s1135_s6 + $0x58] sm:$0xff] %v754_v33  ;;  %v786_v36 = vpop.f32.mrf.mxu1  ;;  %v564_v57 = vmul.f32 %v754_v33, %v754_v33 }
  0xf8   :  { %v600_v37 = vadd.f32 %v599_v32, %v469_v30  ;;  %v636_v39 = vadd.f32 %v635_v14, %v621_v31  ;;  %527 = vst [vmem:[%s1136_s7 + $0x58] sm:$0xff] %v786_v36  ;;  %v247_v40 = vpop.f32.mrf.mxu0  ;;  %v625_v61 = vmul.f32 %v786_v36, %v786_v36 }
  0xf9   :  { %v576_v41 = vadd.f32 %v575_v35, %v561_v34  ;;  %509 = vst [vmem:[%s1135_s6 + $0x48] sm:$0xff] %v247_v40  ;;  %v540_v42 = vadd.f32 %v539_v17, %v247_v40  ;;  %v562_v43 = vmul.f32 %v247_v40, %v247_v40  ;;  %v472_v44 = vpop.f32.mrf.mxu1 }
  0xfa   :  { %v637_v45 = vadd.f32 %v636_v39, %v622_v38  ;;  %525 = vst [vmem:[%s1136_s7 + $0x48] sm:$0xff] %v472_v44  ;;  %v601_v46 = vadd.f32 %v600_v37, %v472_v44  ;;  %v623_v47 = vmul.f32 %v472_v44, %v472_v44  ;;  %v757_v48 = vpop.f32.mrf.mxu0 }
  0xfb   :  { %v541_v50 = vadd.f32 %v753_v18, %v540_v42  ;;  %v577_v51 = vadd.f32 %v576_v41, %v562_v43  ;;  %514 = vst [vmem:[%s1135_s6 + $0x70] sm:$0xff] %v757_v48  ;;  %v789_v52 = vpop.f32.mrf.mxu1  ;;  %v567_v18 = vmul.f32 %v757_v48, %v757_v48 }
  0xfc   :  { %v602_v54 = vadd.f32 %v785_v22, %v601_v46  ;;  %v638_v55 = vadd.f32 %v637_v45, %v623_v47  ;;  %530 = vst [vmem:[%s1136_s7 + $0x70] sm:$0xff] %v789_v52  ;;  %v260_v56 = vpop.f32.mrf.mxu0  ;;  %v628_v21 = vmul.f32 %v789_v52, %v789_v52 }
  0xfd   :  { %v578_v58 = vadd.f32 %v577_v51, %v563_v49  ;;  %512 = vst [vmem:[%s1135_s6 + $0x60] sm:$0xff] %v260_v56  ;;  %v542_v59 = vadd.f32 %v754_v33, %v541_v50  ;;  %v485_v60 = vpop.f32.mrf.mxu1  ;;  %v565_v2 = vmul.f32 %v260_v56, %v260_v56 }
  0xfe   :  { %v639_v62 = vadd.f32 %v638_v55, %v624_v53  ;;  %528 = vst [vmem:[%s1136_s7 + $0x60] sm:$0xff] %v485_v60  ;;  %v603_v63 = vadd.f32 %v786_v36, %v602_v54  ;;  %v758_v0 = vpop.f32.mrf.mxu0  ;;  %v626_v6 = vmul.f32 %v485_v60, %v485_v60 }
  0xff   :  { %v543_v1 = vadd.f32 %v542_v59, %v260_v56  ;;  %v579_v3 = vadd.f32 %v578_v58, %v564_v57  ;;  %515 = vst [vmem:[%s1135_s6 + $0x78] sm:$0xff] %v758_v0  ;;  %v790_v4 = vpop.f32.mrf.mxu1  ;;  %v568_v24 = vmul.f32 %v758_v0, %v758_v0 }
 0x100   :  { %v604_v5 = vadd.f32 %v603_v63, %v485_v60  ;;  %v640_v7 = vadd.f32 %v639_v62, %v625_v61  ;;  %531 = vst [vmem:[%s1136_s7 + $0x78] sm:$0xff] %v790_v4  ;;  %v263_v8 = vpop.f32.mrf.mxu0  ;;  %v629_v27 = vmul.f32 %v790_v4, %v790_v4 }
 0x101   :  { %v580_v9 = vadd.f32 %v579_v3, %v565_v2  ;;  %513 = vst [vmem:[%s1135_s6 + $0x68] sm:$0xff] %v263_v8  ;;  %v544_v10 = vadd.f32 %v543_v1, %v263_v8  ;;  %v566_v11 = vmul.f32 %v263_v8, %v263_v8  ;;  %v488_v12 = vpop.f32.mrf.mxu1 }
 0x102   :  { %v641_v13 = vadd.f32 %v640_v7, %v626_v6  ;;  %529 = vst [vmem:[%s1136_s7 + $0x68] sm:$0xff] %v488_v12  ;;  %v605_v15 = vadd.f32 %v604_v5, %v488_v12  ;;  %v627_v16 = vmul.f32 %v488_v12, %v488_v12 }
 0x103   :  { %v545_v19 = vadd.f32 %v757_v48, %v544_v10  ;;  %v581_v20 = vadd.f32 %v580_v9, %v566_v11 }
 0x104   :  { %v606_v22 = vadd.f32 %v789_v52, %v605_v15  ;;  %v642_v23 = vadd.f32 %v641_v13, %v627_v16 }
 0x105   :  { %v546_v25 = vadd.f32 %v758_v0, %v545_v19  ;;  %v582_v26 = vadd.f32 %v581_v20, %v567_v18 }
 0x106   :  { %v607_v28 = vadd.f32 %v790_v4, %v606_v22  ;;  %v643_v29 = vadd.f32 %v642_v23, %v628_v21 }
 0x107   :  { %v547_v30 = vrot.slane %v546_v25, 4  ;;  %v583_v31 = vadd.f32 %v582_v26, %v568_v24 }
 0x108   :  { %v608_v14 = vrot.slane %v607_v28, 4  ;;  %v644_v32 = vadd.f32 %v643_v29, %v629_v27 }
 0x109   :  { %v548_v33 = vadd.f32 %v547_v30, %v546_v25  ;;  %v584_v17 = vrot.slane %v583_v31, 4 }
 0x10a   :  { %v609_v34 = vadd.f32 %v608_v14, %v607_v28  ;;  %v645_v35 = vrot.slane %v644_v32, 4 }
 0x10b   :  { %v549_v36 = vrot.slane %v548_v33, 2  ;;  %v585_v37 = vadd.f32 %v584_v17, %v583_v31 }
 0x10c   :  { %v610_v38 = vrot.slane %v609_v34, 2  ;;  %v646_v39 = vadd.f32 %v645_v35, %v644_v32 }
 0x10d   :  { %v550_v40 = vadd.f32 %v549_v36, %v548_v33  ;;  %v586_v41 = vrot.slane %v585_v37, 2 }
 0x10e   :  { %v611_v42 = vadd.f32 %v610_v38, %v609_v34  ;;  %v647_v43 = vrot.slane %v646_v39, 2 }
 0x10f   :  { %v551_v44 = vrot.slane %v550_v40, 1  ;;  %v587_v45 = vadd.f32 %v586_v41, %v585_v37 }
 0x110   :  { %v612_v46 = vrot.slane %v611_v42, 1  ;;  %v648_v47 = vadd.f32 %v647_v43, %v646_v39 }
 0x111   :  { %v588_v48 = vrot.slane %v587_v45, 1  ;;  %v552_v50 = vadd.f32 %v551_v44, %v550_v40 }
 0x112   :  { %v649_v49 = vrot.slane %v648_v47, 1  ;;  %v613_v52 = vadd.f32 %v612_v46, %v611_v42 }
 0x113   :  { %v589_v51 = vadd.f32 %v588_v48, %v587_v45 }
 0x114   :  { %v650_v53 = vadd.f32 %v649_v49, %v648_v47 }
 0x115   :  { %v591_v54 = vsel %vm590_vm0, %v552_v50, %v589_v51 }
 0x116   :  { %592 = vst [vmem:[%s1137_s8] sm:$0x3] %v591_v54  ;;  %v651_v55 = vsel %vm590_vm0, %v613_v52, %v650_v53 }
 0x117   :  { %652 = vst [vmem:[%s1138_s9] sm:$0x3] %v651_v55 }

</bundles_post_ra>
